<compile_context>
chip_gen: v7x
topology: tpu7x:2x2x1
jax: 0.10.0
libtpu: 0.0.40
codegen_flags: <defaults>
</compile_context>

<pallas_src>
import random
from functools import partial

import jax
import jax.numpy as jnp
from jax.experimental import pallas as pl
from jax.experimental.pallas import tpu as pltpu

# ----------------------------- model sizes ---------------------------------
SRC_VOCAB = 20
TRG_VOCAB = 16          # decoder.output_dim
EMB = 16
ENC_HID = 16            # per-direction encoder hidden
DEC_HID = 32
HE2 = 2 * ENC_HID       # bidirectional encoder feature dim
PAD_IDX = 0

S = 8                   # source length
T = 6                   # target length
B = 4                   # batch


def _vmem_specs(n):
    return [pl.BlockSpec(memory_space=pltpu.MemorySpace.VMEM) for _ in range(n)]


# ----------------------------- fused seq2seq kernel ------------------------
def _make_seq2seq_kernel(tf_flags):
    """tf_flags[t-1] is the (trace-time static) teacher-forcing draw made at loop step t."""

    def kernel(src_emb_ref, valid_ref, mask_ref, trg_emb_ref, emb_tbl_ref,
               wih_fb_ref, b_fb_ref, whh_f_ref, whh_b_ref,
               fc_h_wf_ref, fc_h_wb_ref, fc_h_b_ref,
               fc_c_wf_ref, fc_c_wb_ref, fc_c_b_ref,
               attn_wh_ref, attn_we_ref, attn_b_ref, attn_v_ref,
               wih_e_ref, wih_w_ref, whh_ref, b_ref,
               fc_h_ref, fc_w_ref, fc_e_ref, fc_b_ref,
               out_ref,
               enc_scr):
        Ss, Bb, E = src_emb_ref.shape
        He = whh_f_ref.shape[0]                     # per-direction encoder hidden
        He2 = enc_scr.shape[2]
        Tt = trg_emb_ref.shape[0]
        Hd = whh_ref.shape[0]                       # decoder hidden
        V = emb_tbl_ref.shape[0]

        # ======================= encoder =======================
        # Hoisted input-gate GEMM: all timesteps x both directions in one MXU matmul.
        emb_flat = src_emb_ref[...].reshape(Ss * Bb, E)
        xg_all = (jnp.dot(emb_flat, wih_fb_ref[...], preferred_element_type=jnp.float32)
                  + b_fb_ref[...]).reshape(Ss, Bb, 8 * He)
        xg_f = xg_all[:, :, :4 * He]
        xg_b = xg_all[:, :, 4 * He:]

        def enc_cell(xg, h, c, whh):
            gates = xg + jnp.dot(h, whh, preferred_element_type=jnp.float32)
            i = jax.nn.sigmoid(gates[:, 0 * He:1 * He])
            f = jax.nn.sigmoid(gates[:, 1 * He:2 * He])
            g = jnp.tanh(gates[:, 2 * He:3 * He])
            o = jax.nn.sigmoid(gates[:, 3 * He:4 * He])
            c_new = f * c + i * g
            h_new = o * jnp.tanh(c_new)
            return h_new, c_new

        zeros = jnp.zeros((Bb, He), jnp.float32)
        whh_f = whh_f_ref[...]
        whh_b = whh_b_ref[...]

        # Forward direction (pack_padded emulation: padded steps freeze state, output zeros).
        h, c = zeros, zeros
        for t in range(Ss):
            h_new, c_new = enc_cell(xg_f[t], h, c, whh_f)
            v = valid_ref[t]                                   # [B, 1]
            h = v * h_new + (1.0 - v) * h
            c = v * c_new + (1.0 - v) * c
            enc_scr[t, :, 0:He] = v * h_new
        h_f, c_f = h, c

        # Backward direction.
        h, c = zeros, zeros
        for t in range(Ss - 1, -1, -1):
            h_new, c_new = enc_cell(xg_b[t], h, c, whh_b)
            v = valid_ref[t]
            h = v * h_new + (1.0 - v) * h
            c = v * c_new + (1.0 - v) * c
            enc_scr[t, :, He:2 * He] = v * h_new
        h_b, c_b = h, c

        # Bridge to decoder initial state (concat-free: per-half partial dots).
        hidden = jnp.tanh(
            jnp.dot(h_f, fc_h_wf_ref[...], preferred_element_type=jnp.float32)
            + jnp.dot(h_b, fc_h_wb_ref[...], preferred_element_type=jnp.float32)
            + fc_h_b_ref[...])
        cell = jnp.tanh(
            jnp.dot(c_f, fc_c_wf_ref[...], preferred_element_type=jnp.float32)
            + jnp.dot(c_b, fc_c_wb_ref[...], preferred_element_type=jnp.float32)
            + fc_c_b_ref[...])

        # ======================= decoder (whole target loop) =======================
        enc = enc_scr[...]                                     # [S,B,HE2]
        mask = mask_ref[...]                                   # [S,B]

        # Loop-invariant hoists (single batched MXU matmuls).
        e_proj = (jnp.dot(enc.reshape(Ss * Bb, He2), attn_we_ref[...],
                          preferred_element_type=jnp.float32).reshape(Ss, Bb, Hd)
                  + attn_b_ref[...])
        trg_flat = trg_emb_ref[...].reshape(Tt * Bb, E)
        xg_emb_all = jnp.dot(trg_flat, wih_e_ref[...],
                             preferred_element_type=jnp.float32).reshape(Tt, Bb, 4 * Hd)
        fe_emb_all = jnp.dot(trg_flat, fc_e_ref[...],
                             preferred_element_type=jnp.float32).reshape(Tt, Bb, V)
        # Embedding table pre-projected for the greedy (non-teacher-forced) feedback path.
        emb_wih_tbl = jnp.dot(emb_tbl_ref[...], wih_e_ref[...],
                              preferred_element_type=jnp.float32)       # [V, 4*Hd]
        emb_fce_tbl = jnp.dot(emb_tbl_ref[...], fc_e_ref[...],
                              preferred_element_type=jnp.float32)       # [V, V]

        out_ref[...] = jnp.zeros(out_ref.shape, out_ref.dtype)          # outputs[0] stays zero

        # input = trg[0]: only its projected contributions are needed.
        xg_e = xg_emb_all[0]                                            # [B, 4*Hd]
        fe_e = fe_emb_all[0]                                            # [B, V]

        for t in range(1, Tt):
            # --- attention: score = v . tanh(W_h h + W_e enc + b), masked softmax over S ---
            h_proj = jnp.dot(hidden, attn_wh_ref[...], preferred_element_type=jnp.float32)
            energy = jnp.tanh(h_proj[None, :, :] + e_proj)              # [S,B,Hd]
            score = jnp.sum(energy * attn_v_ref[...], axis=-1)          # [S,B]
            score = jnp.where(mask > 0.0, score, jnp.float32(-1e10))
            m = jnp.max(score, axis=0, keepdims=True)
            e = jnp.exp(score - m)
            a = e * pl.reciprocal(jnp.sum(e, axis=0, keepdims=True), approx=True)
            weighted = jnp.sum(a[:, :, None] * enc, axis=0)             # [B,HE2]

            # --- LSTM cell (concat-free: embedded contribution precomputed in xg_e) ---
            gates = (xg_e
                     + jnp.dot(weighted, wih_w_ref[...], preferred_element_type=jnp.float32)
                     + jnp.dot(hidden, whh_ref[...], preferred_element_type=jnp.float32)
                     + b_ref[...])
            i = jax.nn.sigmoid(gates[:, 0 * Hd:1 * Hd])
            f = jax.nn.sigmoid(gates[:, 1 * Hd:2 * Hd])
            g = jnp.tanh(gates[:, 2 * Hd:3 * Hd])
            o = jax.nn.sigmoid(gates[:, 3 * Hd:4 * Hd])
            cell = f * cell + i * g
            hidden = o * jnp.tanh(cell)

            # --- output projection (embedded contribution precomputed in fe_e) ---
            pred = (jnp.dot(hidden, fc_h_ref[...], preferred_element_type=jnp.float32)
                    + jnp.dot(weighted, fc_w_ref[...], preferred_element_type=jnp.float32)
                    + fe_e + fc_b_ref[...])
            out_ref[t] = pred

            # --- next input (teacher forcing decision is trace-time static) ---
            if t + 1 < Tt:
                if tf_flags[t - 1]:
                    xg_e = xg_emb_all[t]
                    fe_e = fe_emb_all[t]
                else:
                    # first-argmax one-hot, then use the pre-projected embedding tables
                    iota = jax.lax.broadcasted_iota(jnp.int32, (Bb, V), 1)
                    mx = jnp.max(pred, axis=-1, keepdims=True)
                    first = jnp.min(jnp.where(pred >= mx, iota, V), axis=-1, keepdims=True)
                    onehot = (iota == first).astype(jnp.float32)        # [B,V]
                    xg_e = jnp.dot(onehot, emb_wih_tbl, preferred_element_type=jnp.float32)
                    fe_e = jnp.dot(onehot, emb_fce_tbl, preferred_element_type=jnp.float32)

    return kernel


def seq2seq_pallas(p, tf_flags, emb_src, valid, mask_sb, trg_emb):
    Ss, Bb, _ = emb_src.shape
    Tt = trg_emb.shape[0]
    wih_fb = jnp.concatenate([p["enc_wih_f"], p["enc_wih_b"]], axis=1)   # [EMB, 8*ENC_HID]
    b_fb = jnp.concatenate([p["enc_b_f"], p["enc_b_b"]], axis=1)         # [1,   8*ENC_HID]
    return pl.pallas_call(
        _make_seq2seq_kernel(tf_flags),
        out_shape=jax.ShapeDtypeStruct((Tt, Bb, TRG_VOCAB), jnp.float32),
        in_specs=_vmem_specs(27),
        out_specs=pl.BlockSpec(memory_space=pltpu.MemorySpace.VMEM),
        scratch_shapes=[pltpu.VMEM((Ss, Bb, HE2), jnp.float32)],
    )(emb_src, valid, mask_sb, trg_emb, p["emb_trg"],
      wih_fb, b_fb, p["enc_whh_f"], p["enc_whh_b"],
      p["fc_h_w"][:ENC_HID], p["fc_h_w"][ENC_HID:], p["fc_h_b"],
      p["fc_c_w"][:ENC_HID], p["fc_c_w"][ENC_HID:], p["fc_c_b"],
      p["attn_wh"], p["attn_we"], p["attn_b"], p["attn_v"],
      p["dec_wih"][:EMB], p["dec_wih"][EMB:], p["dec_whh"], p["dec_b"],
      p["fc_out_w"][:DEC_HID], p["fc_out_w"][DEC_HID:DEC_HID + HE2],
      p["fc_out_w"][DEC_HID + HE2:], p["fc_out_b"])


# ----------------------------- model forward -------------------------------
@partial(jax.jit, static_argnames=("teacher_forcing_ratio",))
def seq2seq_forward(p, src, src_len, trg, teacher_forcing_ratio=0.5):
    Ss, Bb = src.shape
    Tt = trg.shape[0]

    # Deterministic teacher-forcing draws (trace-time static, baked into the compiled graph).
    # TODO(synk): torch draws these per call at runtime; here they are static per compilation.
    random.seed(0)
    tf_flags = tuple(random.random() < teacher_forcing_ratio for _ in range(1, Tt))

    emb_src = p["emb_src"][src]                                               # [S,B,EMB]
    valid = (jnp.arange(Ss, dtype=jnp.int32)[:, None] < src_len[None, :])
    valid = valid.astype(jnp.float32)[:, :, None]                             # [S,B,1]
    mask_sb = (src != PAD_IDX).astype(jnp.float32)                            # create_mask, [S,B]
    trg_emb = p["emb_trg"][trg]                                               # [T,B,EMB]
    return seq2seq_pallas(p, tf_flags, emb_src, valid, mask_sb, trg_emb)      # [T,B,TRG_VOCAB]


# ----------------------------- param init ----------------------------------
def init_params(key):
    names_shapes = {
        "emb_src": (SRC_VOCAB, EMB),
        "enc_wih_f": (EMB, 4 * ENC_HID), "enc_whh_f": (ENC_HID, 4 * ENC_HID), "enc_b_f": (1, 4 * ENC_HID),
        "enc_wih_b": (EMB, 4 * ENC_HID), "enc_whh_b": (ENC_HID, 4 * ENC_HID), "enc_b_b": (1, 4 * ENC_HID),
        "fc_h_w": (HE2, DEC_HID), "fc_h_b": (1, DEC_HID),
        "fc_c_w": (HE2, DEC_HID), "fc_c_b": (1, DEC_HID),
        "attn_wh": (DEC_HID, DEC_HID), "attn_we": (HE2, DEC_HID),
        "attn_b": (1, DEC_HID), "attn_v": (1, DEC_HID),
        "emb_trg": (TRG_VOCAB, EMB),
        "dec_wih": (EMB + HE2, 4 * DEC_HID), "dec_whh": (DEC_HID, 4 * DEC_HID), "dec_b": (1, 4 * DEC_HID),
        "fc_out_w": (DEC_HID + HE2 + EMB, TRG_VOCAB), "fc_out_b": (1, TRG_VOCAB),
    }
    params = {}
    keys = jax.random.split(key, len(names_shapes))
    for (name, shape), k in zip(names_shapes.items(), keys):
        params[name] = (0.1 * jax.random.normal(k, shape)).astype(jnp.float32)
    return params


# ----------------------------- main -----------------------------------------
if __name__ == "__main__":
    key = jax.random.PRNGKey(0)
    kp, ks, kt = jax.random.split(key, 3)

    params = init_params(kp)

    # source tokens [S, B] with right padding determined by src_len
    src_len = jnp.array([8, 5, 7, 3], dtype=jnp.int32)                   # [B]
    raw_src = jax.random.randint(ks, (S, B), 1, SRC_VOCAB, dtype=jnp.int32)
    pos = jnp.arange(S, dtype=jnp.int32)[:, None]                        # [S,1]
    src = jnp.where(pos < src_len[None, :], raw_src, PAD_IDX)            # [S, B]

    # target tokens [T, B]
    trg = jax.random.randint(kt, (T, B), 1, TRG_VOCAB, dtype=jnp.int32)

    outputs = seq2seq_forward(params, src, src_len, trg, teacher_forcing_ratio=0.5)
    outputs = jax.block_until_ready(outputs)

    assert outputs.shape == (T, B, TRG_VOCAB)
    assert outputs.dtype == jnp.float32
    assert bool(jnp.all(outputs[0] == 0.0))
    assert bool(jnp.all(jnp.isfinite(outputs)))
    print("KERNEL_OK")
</pallas_src>

<mosaic_0001>
module attributes {stable_mosaic.version = 11 : i64} {
  func.func @kernel(%arg0: memref<8x4x16xf32, #tpu.memory_space<vmem>>, %arg1: memref<8x4x1xf32, #tpu.memory_space<vmem>>, %arg2: memref<8x4xf32, #tpu.memory_space<vmem>>, %arg3: memref<6x4x16xf32, #tpu.memory_space<vmem>>, %arg4: memref<16x16xf32, #tpu.memory_space<vmem>>, %arg5: memref<16x128xf32, #tpu.memory_space<vmem>>, %arg6: memref<1x128xf32, #tpu.memory_space<vmem>>, %arg7: memref<16x64xf32, #tpu.memory_space<vmem>>, %arg8: memref<16x64xf32, #tpu.memory_space<vmem>>, %arg9: memref<16x32xf32, #tpu.memory_space<vmem>>, %arg10: memref<16x32xf32, #tpu.memory_space<vmem>>, %arg11: memref<1x32xf32, #tpu.memory_space<vmem>>, %arg12: memref<16x32xf32, #tpu.memory_space<vmem>>, %arg13: memref<16x32xf32, #tpu.memory_space<vmem>>, %arg14: memref<1x32xf32, #tpu.memory_space<vmem>>, %arg15: memref<32x32xf32, #tpu.memory_space<vmem>>, %arg16: memref<32x32xf32, #tpu.memory_space<vmem>>, %arg17: memref<1x32xf32, #tpu.memory_space<vmem>>, %arg18: memref<1x32xf32, #tpu.memory_space<vmem>>, %arg19: memref<16x128xf32, #tpu.memory_space<vmem>>, %arg20: memref<32x128xf32, #tpu.memory_space<vmem>>, %arg21: memref<32x128xf32, #tpu.memory_space<vmem>>, %arg22: memref<1x128xf32, #tpu.memory_space<vmem>>, %arg23: memref<32x16xf32, #tpu.memory_space<vmem>>, %arg24: memref<32x16xf32, #tpu.memory_space<vmem>>, %arg25: memref<16x16xf32, #tpu.memory_space<vmem>>, %arg26: memref<1x16xf32, #tpu.memory_space<vmem>>, %arg27: memref<6x4x16xf32, #tpu.memory_space<vmem>>, %arg28: memref<8x4x32xf32, #tpu.memory_space<vmem>>) attributes {dimension_semantics = [], scalar_prefetch = 0 : i64, scratch_operands = 1 : i64, tpu.core_type = #tpu.core_type<tc>} {
    %c0 = arith.constant 0 : index
    %c0_0 = arith.constant 0 : index
    %c0_1 = arith.constant 0 : index
    %0 = vector.load %arg0[%c0, %c0_0, %c0_1] : memref<8x4x16xf32, #tpu.memory_space<vmem>>, vector<8x4x16xf32>
    %1 = vector.shape_cast %0 : vector<8x4x16xf32> to vector<32x16xf32>
    %c0_2 = arith.constant 0 : index
    %c0_3 = arith.constant 0 : index
    %2 = vector.load %arg5[%c0_2, %c0_3] : memref<16x128xf32, #tpu.memory_space<vmem>>, vector<16x128xf32>
    %cst = arith.constant dense<0.000000e+00> : vector<32x128xf32>
    %3 = tpu.matmul %1, %2, %cst {dimension_numbers = #tpu.dot_dimension_numbers<[1], [0], [0], [1], [0, 0, 1, 1], [], []>} : vector<32x16xf32>, vector<16x128xf32>, vector<32x128xf32> -> vector<32x128xf32>
    %c0_4 = arith.constant 0 : index
    %c0_5 = arith.constant 0 : index
    %4 = vector.load %arg6[%c0_4, %c0_5] : memref<1x128xf32, #tpu.memory_space<vmem>>, vector<1x128xf32>
    %5 = vector.broadcast %4 : vector<1x128xf32> to vector<32x128xf32>
    %6 = arith.addf %3, %5 : vector<32x128xf32>
    %7 = vector.shape_cast %6 : vector<32x128xf32> to vector<8x4x128xf32>
    %8 = vector.extract_strided_slice %7 {offsets = [0, 0, 0], sizes = [8, 4, 64], strides = [1, 1, 1]} : vector<8x4x128xf32> to vector<8x4x64xf32>
    %9 = vector.extract_strided_slice %7 {offsets = [0, 0, 64], sizes = [8, 4, 64], strides = [1, 1, 1]} : vector<8x4x128xf32> to vector<8x4x64xf32>
    %cst_6 = arith.constant 0.000000e+00 : f32
    %10 = vector.broadcast %cst_6 : f32 to vector<4x16xf32>
    %c0_7 = arith.constant 0 : index
    %c0_8 = arith.constant 0 : index
    %11 = vector.load %arg7[%c0_7, %c0_8] : memref<16x64xf32, #tpu.memory_space<vmem>>, vector<16x64xf32>
    %c0_9 = arith.constant 0 : index
    %c0_10 = arith.constant 0 : index
    %12 = vector.load %arg8[%c0_9, %c0_10] : memref<16x64xf32, #tpu.memory_space<vmem>>, vector<16x64xf32>
    %13 = vector.extract_strided_slice %8 {offsets = [0, 0, 0], sizes = [1, 4, 64], strides = [1, 1, 1]} : vector<8x4x64xf32> to vector<1x4x64xf32>
    %14 = vector.shape_cast %13 : vector<1x4x64xf32> to vector<4x64xf32>
    %cst_11 = arith.constant dense<0.000000e+00> : vector<4x64xf32>
    %15 = tpu.matmul %10, %11, %cst_11 {dimension_numbers = #tpu.dot_dimension_numbers<[1], [0], [0], [1], [0, 0, 1, 1], [], []>} : vector<4x16xf32>, vector<16x64xf32>, vector<4x64xf32> -> vector<4x64xf32>
    %16 = arith.addf %14, %15 : vector<4x64xf32>
    %17 = vector.extract_strided_slice %16 {offsets = [0, 0], sizes = [4, 16], strides = [1, 1]} : vector<4x64xf32> to vector<4x16xf32>
    %18 = arith.negf %17 : vector<4x16xf32>
    %19 = math.exp %18 : vector<4x16xf32>
    %cst_12 = arith.constant 1.000000e+00 : f32
    %20 = vector.broadcast %cst_12 : f32 to vector<4x16xf32>
    %21 = arith.addf %20, %19 : vector<4x16xf32>
    %22 = arith.divf %20, %21 : vector<4x16xf32>
    %23 = vector.extract_strided_slice %16 {offsets = [0, 16], sizes = [4, 16], strides = [1, 1]} : vector<4x64xf32> to vector<4x16xf32>
    %24 = arith.negf %23 : vector<4x16xf32>
    %25 = math.exp %24 : vector<4x16xf32>
    %cst_13 = arith.constant 1.000000e+00 : f32
    %26 = vector.broadcast %cst_13 : f32 to vector<4x16xf32>
    %27 = arith.addf %26, %25 : vector<4x16xf32>
    %28 = arith.divf %26, %27 : vector<4x16xf32>
    %29 = vector.extract_strided_slice %16 {offsets = [0, 32], sizes = [4, 16], strides = [1, 1]} : vector<4x64xf32> to vector<4x16xf32>
    %30 = math.tanh %29 : vector<4x16xf32>
    %31 = vector.extract_strided_slice %16 {offsets = [0, 48], sizes = [4, 16], strides = [1, 1]} : vector<4x64xf32> to vector<4x16xf32>
    %32 = arith.negf %31 : vector<4x16xf32>
    %33 = math.exp %32 : vector<4x16xf32>
    %cst_14 = arith.constant 1.000000e+00 : f32
    %34 = vector.broadcast %cst_14 : f32 to vector<4x16xf32>
    %35 = arith.addf %34, %33 : vector<4x16xf32>
    %36 = arith.divf %34, %35 : vector<4x16xf32>
    %37 = arith.mulf %28, %10 : vector<4x16xf32>
    %38 = arith.mulf %22, %30 : vector<4x16xf32>
    %39 = arith.addf %37, %38 : vector<4x16xf32>
    %40 = math.tanh %39 : vector<4x16xf32>
    %41 = arith.mulf %36, %40 : vector<4x16xf32>
    %c0_15 = arith.constant 0 : index
    %c0_16 = arith.constant 0 : index
    %c0_17 = arith.constant 0 : index
    %42 = vector.load %arg1[%c0_15, %c0_16, %c0_17] : memref<8x4x1xf32, #tpu.memory_space<vmem>>, vector<1x4x1xf32>
    %43 = vector.shape_cast %42 : vector<1x4x1xf32> to vector<4x1xf32>
    %44 = vector.broadcast %43 : vector<4x1xf32> to vector<4x16xf32>
    %45 = arith.mulf %44, %41 : vector<4x16xf32>
    %cst_18 = arith.constant 1.000000e+00 : f32
    %46 = vector.broadcast %cst_18 : f32 to vector<4x1xf32>
    %47 = arith.subf %46, %43 : vector<4x1xf32>
    %48 = vector.broadcast %47 : vector<4x1xf32> to vector<4x16xf32>
    %49 = arith.mulf %48, %10 : vector<4x16xf32>
    %50 = arith.addf %45, %49 : vector<4x16xf32>
    %51 = vector.broadcast %43 : vector<4x1xf32> to vector<4x16xf32>
    %52 = arith.mulf %51, %39 : vector<4x16xf32>
    %cst_19 = arith.constant 1.000000e+00 : f32
    %53 = vector.broadcast %cst_19 : f32 to vector<4x1xf32>
    %54 = arith.subf %53, %43 : vector<4x1xf32>
    %55 = vector.broadcast %54 : vector<4x1xf32> to vector<4x16xf32>
    %56 = arith.mulf %55, %10 : vector<4x16xf32>
    %57 = arith.addf %52, %56 : vector<4x16xf32>
    %58 = vector.broadcast %43 : vector<4x1xf32> to vector<4x16xf32>
    %59 = arith.mulf %58, %41 : vector<4x16xf32>
    %c0_20 = arith.constant 0 : index
    %c0_21 = arith.constant 0 : index
    %c0_22 = arith.constant 0 : index
    %60 = vector.load %arg28[%c0_20, %c0_21, %c0_22] : memref<8x4x32xf32, #tpu.memory_space<vmem>>, vector<1x4x16xf32>
    %61 = vector.shape_cast %60 : vector<1x4x16xf32> to vector<4x16xf32>
    %62 = vector.shape_cast %59 : vector<4x16xf32> to vector<1x4x16xf32>
    tpu.vector_store %arg28[%c0_20, %c0_21, %c0_22], %62 {strides = array<i32>} : memref<8x4x32xf32, #tpu.memory_space<vmem>>, vector<1x4x16xf32>,
    %63 = vector.extract_strided_slice %8 {offsets = [1, 0, 0], sizes = [1, 4, 64], strides = [1, 1, 1]} : vector<8x4x64xf32> to vector<1x4x64xf32>
    %64 = vector.shape_cast %63 : vector<1x4x64xf32> to vector<4x64xf32>
    %cst_23 = arith.constant dense<0.000000e+00> : vector<4x64xf32>
    %65 = tpu.matmul %50, %11, %cst_23 {dimension_numbers = #tpu.dot_dimension_numbers<[1], [0], [0], [1], [0, 0, 1, 1], [], []>} : vector<4x16xf32>, vector<16x64xf32>, vector<4x64xf32> -> vector<4x64xf32>
    %66 = arith.addf %64, %65 : vector<4x64xf32>
    %67 = vector.extract_strided_slice %66 {offsets = [0, 0], sizes = [4, 16], strides = [1, 1]} : vector<4x64xf32> to vector<4x16xf32>
    %68 = arith.negf %67 : vector<4x16xf32>
    %69 = math.exp %68 : vector<4x16xf32>
    %cst_24 = arith.constant 1.000000e+00 : f32
    %70 = vector.broadcast %cst_24 : f32 to vector<4x16xf32>
    %71 = arith.addf %70, %69 : vector<4x16xf32>
    %72 = arith.divf %70, %71 : vector<4x16xf32>
    %73 = vector.extract_strided_slice %66 {offsets = [0, 16], sizes = [4, 16], strides = [1, 1]} : vector<4x64xf32> to vector<4x16xf32>
    %74 = arith.negf %73 : vector<4x16xf32>
    %75 = math.exp %74 : vector<4x16xf32>
    %cst_25 = arith.constant 1.000000e+00 : f32
    %76 = vector.broadcast %cst_25 : f32 to vector<4x16xf32>
    %77 = arith.addf %76, %75 : vector<4x16xf32>
    %78 = arith.divf %76, %77 : vector<4x16xf32>
    %79 = vector.extract_strided_slice %66 {offsets = [0, 32], sizes = [4, 16], strides = [1, 1]} : vector<4x64xf32> to vector<4x16xf32>
    %80 = math.tanh %79 : vector<4x16xf32>
    %81 = vector.extract_strided_slice %66 {offsets = [0, 48], sizes = [4, 16], strides = [1, 1]} : vector<4x64xf32> to vector<4x16xf32>
    %82 = arith.negf %81 : vector<4x16xf32>
    %83 = math.exp %82 : vector<4x16xf32>
    %cst_26 = arith.constant 1.000000e+00 : f32
    %84 = vector.broadcast %cst_26 : f32 to vector<4x16xf32>
    %85 = arith.addf %84, %83 : vector<4x16xf32>
    %86 = arith.divf %84, %85 : vector<4x16xf32>
    %87 = arith.mulf %78, %57 : vector<4x16xf32>
    %88 = arith.mulf %72, %80 : vector<4x16xf32>
    %89 = arith.addf %87, %88 : vector<4x16xf32>
    %90 = math.tanh %89 : vector<4x16xf32>
    %91 = arith.mulf %86, %90 : vector<4x16xf32>
    %c1 = arith.constant 1 : index
    %c0_27 = arith.constant 0 : index
    %c0_28 = arith.constant 0 : index
    %92 = vector.load %arg1[%c1, %c0_27, %c0_28] : memref<8x4x1xf32, #tpu.memory_space<vmem>>, vector<1x4x1xf32>
    %93 = vector.shape_cast %92 : vector<1x4x1xf32> to vector<4x1xf32>
    %94 = vector.broadcast %93 : vector<4x1xf32> to vector<4x16xf32>
    %95 = arith.mulf %94, %91 : vector<4x16xf32>
    %cst_29 = arith.constant 1.000000e+00 : f32
    %96 = vector.broadcast %cst_29 : f32 to vector<4x1xf32>
    %97 = arith.subf %96, %93 : vector<4x1xf32>
    %98 = vector.broadcast %97 : vector<4x1xf32> to vector<4x16xf32>
    %99 = arith.mulf %98, %50 : vector<4x16xf32>
    %100 = arith.addf %95, %99 : vector<4x16xf32>
    %101 = vector.broadcast %93 : vector<4x1xf32> to vector<4x16xf32>
    %102 = arith.mulf %101, %89 : vector<4x16xf32>
    %cst_30 = arith.constant 1.000000e+00 : f32
    %103 = vector.broadcast %cst_30 : f32 to vector<4x1xf32>
    %104 = arith.subf %103, %93 : vector<4x1xf32>
    %105 = vector.broadcast %104 : vector<4x1xf32> to vector<4x16xf32>
    %106 = arith.mulf %105, %57 : vector<4x16xf32>
    %107 = arith.addf %102, %106 : vector<4x16xf32>
    %108 = vector.broadcast %93 : vector<4x1xf32> to vector<4x16xf32>
    %109 = arith.mulf %108, %91 : vector<4x16xf32>
    %c1_31 = arith.constant 1 : index
    %c0_32 = arith.constant 0 : index
    %c0_33 = arith.constant 0 : index
    %110 = vector.load %arg28[%c1_31, %c0_32, %c0_33] : memref<8x4x32xf32, #tpu.memory_space<vmem>>, vector<1x4x16xf32>
    %111 = vector.shape_cast %110 : vector<1x4x16xf32> to vector<4x16xf32>
    %112 = vector.shape_cast %109 : vector<4x16xf32> to vector<1x4x16xf32>
    tpu.vector_store %arg28[%c1_31, %c0_32, %c0_33], %112 {strides = array<i32>} : memref<8x4x32xf32, #tpu.memory_space<vmem>>, vector<1x4x16xf32>,
    %113 = vector.extract_strided_slice %8 {offsets = [2, 0, 0], sizes = [1, 4, 64], strides = [1, 1, 1]} : vector<8x4x64xf32> to vector<1x4x64xf32>
    %114 = vector.shape_cast %113 : vector<1x4x64xf32> to vector<4x64xf32>
    %cst_34 = arith.constant dense<0.000000e+00> : vector<4x64xf32>
    %115 = tpu.matmul %100, %11, %cst_34 {dimension_numbers = #tpu.dot_dimension_numbers<[1], [0], [0], [1], [0, 0, 1, 1], [], []>} : vector<4x16xf32>, vector<16x64xf32>, vector<4x64xf32> -> vector<4x64xf32>
    %116 = arith.addf %114, %115 : vector<4x64xf32>
    %117 = vector.extract_strided_slice %116 {offsets = [0, 0], sizes = [4, 16], strides = [1, 1]} : vector<4x64xf32> to vector<4x16xf32>
    %118 = arith.negf %117 : vector<4x16xf32>
    %119 = math.exp %118 : vector<4x16xf32>
    %cst_35 = arith.constant 1.000000e+00 : f32
    %120 = vector.broadcast %cst_35 : f32 to vector<4x16xf32>
    %121 = arith.addf %120, %119 : vector<4x16xf32>
    %122 = arith.divf %120, %121 : vector<4x16xf32>
    %123 = vector.extract_strided_slice %116 {offsets = [0, 16], sizes = [4, 16], strides = [1, 1]} : vector<4x64xf32> to vector<4x16xf32>
    %124 = arith.negf %123 : vector<4x16xf32>
    %125 = math.exp %124 : vector<4x16xf32>
    %cst_36 = arith.constant 1.000000e+00 : f32
    %126 = vector.broadcast %cst_36 : f32 to vector<4x16xf32>
    %127 = arith.addf %126, %125 : vector<4x16xf32>
    %128 = arith.divf %126, %127 : vector<4x16xf32>
    %129 = vector.extract_strided_slice %116 {offsets = [0, 32], sizes = [4, 16], strides = [1, 1]} : vector<4x64xf32> to vector<4x16xf32>
    %130 = math.tanh %129 : vector<4x16xf32>
    %131 = vector.extract_strided_slice %116 {offsets = [0, 48], sizes = [4, 16], strides = [1, 1]} : vector<4x64xf32> to vector<4x16xf32>
    %132 = arith.negf %131 : vector<4x16xf32>
    %133 = math.exp %132 : vector<4x16xf32>
    %cst_37 = arith.constant 1.000000e+00 : f32
    %134 = vector.broadcast %cst_37 : f32 to vector<4x16xf32>
    %135 = arith.addf %134, %133 : vector<4x16xf32>
    %136 = arith.divf %134, %135 : vector<4x16xf32>
    %137 = arith.mulf %128, %107 : vector<4x16xf32>
    %138 = arith.mulf %122, %130 : vector<4x16xf32>
    %139 = arith.addf %137, %138 : vector<4x16xf32>
    %140 = math.tanh %139 : vector<4x16xf32>
    %141 = arith.mulf %136, %140 : vector<4x16xf32>
    %c2 = arith.constant 2 : index
    %c0_38 = arith.constant 0 : index
    %c0_39 = arith.constant 0 : index
    %142 = vector.load %arg1[%c2, %c0_38, %c0_39] : memref<8x4x1xf32, #tpu.memory_space<vmem>>, vector<1x4x1xf32>
    %143 = vector.shape_cast %142 : vector<1x4x1xf32> to vector<4x1xf32>
    %144 = vector.broadcast %143 : vector<4x1xf32> to vector<4x16xf32>
    %145 = arith.mulf %144, %141 : vector<4x16xf32>
    %cst_40 = arith.constant 1.000000e+00 : f32
    %146 = vector.broadcast %cst_40 : f32 to vector<4x1xf32>
    %147 = arith.subf %146, %143 : vector<4x1xf32>
    %148 = vector.broadcast %147 : vector<4x1xf32> to vector<4x16xf32>
    %149 = arith.mulf %148, %100 : vector<4x16xf32>
    %150 = arith.addf %145, %149 : vector<4x16xf32>
    %151 = vector.broadcast %143 : vector<4x1xf32> to vector<4x16xf32>
    %152 = arith.mulf %151, %139 : vector<4x16xf32>
    %cst_41 = arith.constant 1.000000e+00 : f32
    %153 = vector.broadcast %cst_41 : f32 to vector<4x1xf32>
    %154 = arith.subf %153, %143 : vector<4x1xf32>
    %155 = vector.broadcast %154 : vector<4x1xf32> to vector<4x16xf32>
    %156 = arith.mulf %155, %107 : vector<4x16xf32>
    %157 = arith.addf %152, %156 : vector<4x16xf32>
    %158 = vector.broadcast %143 : vector<4x1xf32> to vector<4x16xf32>
    %159 = arith.mulf %158, %141 : vector<4x16xf32>
    %c2_42 = arith.constant 2 : index
    %c0_43 = arith.constant 0 : index
    %c0_44 = arith.constant 0 : index
    %160 = vector.load %arg28[%c2_42, %c0_43, %c0_44] : memref<8x4x32xf32, #tpu.memory_space<vmem>>, vector<1x4x16xf32>
    %161 = vector.shape_cast %160 : vector<1x4x16xf32> to vector<4x16xf32>
    %162 = vector.shape_cast %159 : vector<4x16xf32> to vector<1x4x16xf32>
    tpu.vector_store %arg28[%c2_42, %c0_43, %c0_44], %162 {strides = array<i32>} : memref<8x4x32xf32, #tpu.memory_space<vmem>>, vector<1x4x16xf32>,
    %163 = vector.extract_strided_slice %8 {offsets = [3, 0, 0], sizes = [1, 4, 64], strides = [1, 1, 1]} : vector<8x4x64xf32> to vector<1x4x64xf32>
    %164 = vector.shape_cast %163 : vector<1x4x64xf32> to vector<4x64xf32>
    %cst_45 = arith.constant dense<0.000000e+00> : vector<4x64xf32>
    %165 = tpu.matmul %150, %11, %cst_45 {dimension_numbers = #tpu.dot_dimension_numbers<[1], [0], [0], [1], [0, 0, 1, 1], [], []>} : vector<4x16xf32>, vector<16x64xf32>, vector<4x64xf32> -> vector<4x64xf32>
    %166 = arith.addf %164, %165 : vector<4x64xf32>
    %167 = vector.extract_strided_slice %166 {offsets = [0, 0], sizes = [4, 16], strides = [1, 1]} : vector<4x64xf32> to vector<4x16xf32>
    %168 = arith.negf %167 : vector<4x16xf32>
    %169 = math.exp %168 : vector<4x16xf32>
    %cst_46 = arith.constant 1.000000e+00 : f32
    %170 = vector.broadcast %cst_46 : f32 to vector<4x16xf32>
    %171 = arith.addf %170, %169 : vector<4x16xf32>
    %172 = arith.divf %170, %171 : vector<4x16xf32>
    %173 = vector.extract_strided_slice %166 {offsets = [0, 16], sizes = [4, 16], strides = [1, 1]} : vector<4x64xf32> to vector<4x16xf32>
    %174 = arith.negf %173 : vector<4x16xf32>
    %175 = math.exp %174 : vector<4x16xf32>
    %cst_47 = arith.constant 1.000000e+00 : f32
    %176 = vector.broadcast %cst_47 : f32 to vector<4x16xf32>
    %177 = arith.addf %176, %175 : vector<4x16xf32>
    %178 = arith.divf %176, %177 : vector<4x16xf32>
    %179 = vector.extract_strided_slice %166 {offsets = [0, 32], sizes = [4, 16], strides = [1, 1]} : vector<4x64xf32> to vector<4x16xf32>
    %180 = math.tanh %179 : vector<4x16xf32>
    %181 = vector.extract_strided_slice %166 {offsets = [0, 48], sizes = [4, 16], strides = [1, 1]} : vector<4x64xf32> to vector<4x16xf32>
    %182 = arith.negf %181 : vector<4x16xf32>
    %183 = math.exp %182 : vector<4x16xf32>
    %cst_48 = arith.constant 1.000000e+00 : f32
    %184 = vector.broadcast %cst_48 : f32 to vector<4x16xf32>
    %185 = arith.addf %184, %183 : vector<4x16xf32>
    %186 = arith.divf %184, %185 : vector<4x16xf32>
    %187 = arith.mulf %178, %157 : vector<4x16xf32>
    %188 = arith.mulf %172, %180 : vector<4x16xf32>
    %189 = arith.addf %187, %188 : vector<4x16xf32>
    %190 = math.tanh %189 : vector<4x16xf32>
    %191 = arith.mulf %186, %190 : vector<4x16xf32>
    %c3 = arith.constant 3 : index
    %c0_49 = arith.constant 0 : index
    %c0_50 = arith.constant 0 : index
    %192 = vector.load %arg1[%c3, %c0_49, %c0_50] : memref<8x4x1xf32, #tpu.memory_space<vmem>>, vector<1x4x1xf32>
    %193 = vector.shape_cast %192 : vector<1x4x1xf32> to vector<4x1xf32>
    %194 = vector.broadcast %193 : vector<4x1xf32> to vector<4x16xf32>
    %195 = arith.mulf %194, %191 : vector<4x16xf32>
    %cst_51 = arith.constant 1.000000e+00 : f32
    %196 = vector.broadcast %cst_51 : f32 to vector<4x1xf32>
    %197 = arith.subf %196, %193 : vector<4x1xf32>
    %198 = vector.broadcast %197 : vector<4x1xf32> to vector<4x16xf32>
    %199 = arith.mulf %198, %150 : vector<4x16xf32>
    %200 = arith.addf %195, %199 : vector<4x16xf32>
    %201 = vector.broadcast %193 : vector<4x1xf32> to vector<4x16xf32>
    %202 = arith.mulf %201, %189 : vector<4x16xf32>
    %cst_52 = arith.constant 1.000000e+00 : f32
    %203 = vector.broadcast %cst_52 : f32 to vector<4x1xf32>
    %204 = arith.subf %203, %193 : vector<4x1xf32>
    %205 = vector.broadcast %204 : vector<4x1xf32> to vector<4x16xf32>
    %206 = arith.mulf %205, %157 : vector<4x16xf32>
    %207 = arith.addf %202, %206 : vector<4x16xf32>
    %208 = vector.broadcast %193 : vector<4x1xf32> to vector<4x16xf32>
    %209 = arith.mulf %208, %191 : vector<4x16xf32>
    %c3_53 = arith.constant 3 : index
    %c0_54 = arith.constant 0 : index
    %c0_55 = arith.constant 0 : index
    %210 = vector.load %arg28[%c3_53, %c0_54, %c0_55] : memref<8x4x32xf32, #tpu.memory_space<vmem>>, vector<1x4x16xf32>
    %211 = vector.shape_cast %210 : vector<1x4x16xf32> to vector<4x16xf32>
    %212 = vector.shape_cast %209 : vector<4x16xf32> to vector<1x4x16xf32>
    tpu.vector_store %arg28[%c3_53, %c0_54, %c0_55], %212 {strides = array<i32>} : memref<8x4x32xf32, #tpu.memory_space<vmem>>, vector<1x4x16xf32>,
    %213 = vector.extract_strided_slice %8 {offsets = [4, 0, 0], sizes = [1, 4, 64], strides = [1, 1, 1]} : vector<8x4x64xf32> to vector<1x4x64xf32>
    %214 = vector.shape_cast %213 : vector<1x4x64xf32> to vector<4x64xf32>
    %cst_56 = arith.constant dense<0.000000e+00> : vector<4x64xf32>
    %215 = tpu.matmul %200, %11, %cst_56 {dimension_numbers = #tpu.dot_dimension_numbers<[1], [0], [0], [1], [0, 0, 1, 1], [], []>} : vector<4x16xf32>, vector<16x64xf32>, vector<4x64xf32> -> vector<4x64xf32>
    %216 = arith.addf %214, %215 : vector<4x64xf32>
    %217 = vector.extract_strided_slice %216 {offsets = [0, 0], sizes = [4, 16], strides = [1, 1]} : vector<4x64xf32> to vector<4x16xf32>
    %218 = arith.negf %217 : vector<4x16xf32>
    %219 = math.exp %218 : vector<4x16xf32>
    %cst_57 = arith.constant 1.000000e+00 : f32
    %220 = vector.broadcast %cst_57 : f32 to vector<4x16xf32>
    %221 = arith.addf %220, %219 : vector<4x16xf32>
    %222 = arith.divf %220, %221 : vector<4x16xf32>
    %223 = vector.extract_strided_slice %216 {offsets = [0, 16], sizes = [4, 16], strides = [1, 1]} : vector<4x64xf32> to vector<4x16xf32>
    %224 = arith.negf %223 : vector<4x16xf32>
    %225 = math.exp %224 : vector<4x16xf32>
    %cst_58 = arith.constant 1.000000e+00 : f32
    %226 = vector.broadcast %cst_58 : f32 to vector<4x16xf32>
    %227 = arith.addf %226, %225 : vector<4x16xf32>
    %228 = arith.divf %226, %227 : vector<4x16xf32>
    %229 = vector.extract_strided_slice %216 {offsets = [0, 32], sizes = [4, 16], strides = [1, 1]} : vector<4x64xf32> to vector<4x16xf32>
    %230 = math.tanh %229 : vector<4x16xf32>
    %231 = vector.extract_strided_slice %216 {offsets = [0, 48], sizes = [4, 16], strides = [1, 1]} : vector<4x64xf32> to vector<4x16xf32>
    %232 = arith.negf %231 : vector<4x16xf32>
    %233 = math.exp %232 : vector<4x16xf32>
    %cst_59 = arith.constant 1.000000e+00 : f32
    %234 = vector.broadcast %cst_59 : f32 to vector<4x16xf32>
    %235 = arith.addf %234, %233 : vector<4x16xf32>
    %236 = arith.divf %234, %235 : vector<4x16xf32>
    %237 = arith.mulf %228, %207 : vector<4x16xf32>
    %238 = arith.mulf %222, %230 : vector<4x16xf32>
    %239 = arith.addf %237, %238 : vector<4x16xf32>
    %240 = math.tanh %239 : vector<4x16xf32>
    %241 = arith.mulf %236, %240 : vector<4x16xf32>
    %c4 = arith.constant 4 : index
    %c0_60 = arith.constant 0 : index
    %c0_61 = arith.constant 0 : index
    %242 = vector.load %arg1[%c4, %c0_60, %c0_61] : memref<8x4x1xf32, #tpu.memory_space<vmem>>, vector<1x4x1xf32>
    %243 = vector.shape_cast %242 : vector<1x4x1xf32> to vector<4x1xf32>
    %244 = vector.broadcast %243 : vector<4x1xf32> to vector<4x16xf32>
    %245 = arith.mulf %244, %241 : vector<4x16xf32>
    %cst_62 = arith.constant 1.000000e+00 : f32
    %246 = vector.broadcast %cst_62 : f32 to vector<4x1xf32>
    %247 = arith.subf %246, %243 : vector<4x1xf32>
    %248 = vector.broadcast %247 : vector<4x1xf32> to vector<4x16xf32>
    %249 = arith.mulf %248, %200 : vector<4x16xf32>
    %250 = arith.addf %245, %249 : vector<4x16xf32>
    %251 = vector.broadcast %243 : vector<4x1xf32> to vector<4x16xf32>
    %252 = arith.mulf %251, %239 : vector<4x16xf32>
    %cst_63 = arith.constant 1.000000e+00 : f32
    %253 = vector.broadcast %cst_63 : f32 to vector<4x1xf32>
    %254 = arith.subf %253, %243 : vector<4x1xf32>
    %255 = vector.broadcast %254 : vector<4x1xf32> to vector<4x16xf32>
    %256 = arith.mulf %255, %207 : vector<4x16xf32>
    %257 = arith.addf %252, %256 : vector<4x16xf32>
    %258 = vector.broadcast %243 : vector<4x1xf32> to vector<4x16xf32>
    %259 = arith.mulf %258, %241 : vector<4x16xf32>
    %c4_64 = arith.constant 4 : index
    %c0_65 = arith.constant 0 : index
    %c0_66 = arith.constant 0 : index
    %260 = vector.load %arg28[%c4_64, %c0_65, %c0_66] : memref<8x4x32xf32, #tpu.memory_space<vmem>>, vector<1x4x16xf32>
    %261 = vector.shape_cast %260 : vector<1x4x16xf32> to vector<4x16xf32>
    %262 = vector.shape_cast %259 : vector<4x16xf32> to vector<1x4x16xf32>
    tpu.vector_store %arg28[%c4_64, %c0_65, %c0_66], %262 {strides = array<i32>} : memref<8x4x32xf32, #tpu.memory_space<vmem>>, vector<1x4x16xf32>,
    %263 = vector.extract_strided_slice %8 {offsets = [5, 0, 0], sizes = [1, 4, 64], strides = [1, 1, 1]} : vector<8x4x64xf32> to vector<1x4x64xf32>
    %264 = vector.shape_cast %263 : vector<1x4x64xf32> to vector<4x64xf32>
    %cst_67 = arith.constant dense<0.000000e+00> : vector<4x64xf32>
    %265 = tpu.matmul %250, %11, %cst_67 {dimension_numbers = #tpu.dot_dimension_numbers<[1], [0], [0], [1], [0, 0, 1, 1], [], []>} : vector<4x16xf32>, vector<16x64xf32>, vector<4x64xf32> -> vector<4x64xf32>
    %266 = arith.addf %264, %265 : vector<4x64xf32>
    %267 = vector.extract_strided_slice %266 {offsets = [0, 0], sizes = [4, 16], strides = [1, 1]} : vector<4x64xf32> to vector<4x16xf32>
    %268 = arith.negf %267 : vector<4x16xf32>
    %269 = math.exp %268 : vector<4x16xf32>
    %cst_68 = arith.constant 1.000000e+00 : f32
    %270 = vector.broadcast %cst_68 : f32 to vector<4x16xf32>
    %271 = arith.addf %270, %269 : vector<4x16xf32>
    %272 = arith.divf %270, %271 : vector<4x16xf32>
    %273 = vector.extract_strided_slice %266 {offsets = [0, 16], sizes = [4, 16], strides = [1, 1]} : vector<4x64xf32> to vector<4x16xf32>
    %274 = arith.negf %273 : vector<4x16xf32>
    %275 = math.exp %274 : vector<4x16xf32>
    %cst_69 = arith.constant 1.000000e+00 : f32
    %276 = vector.broadcast %cst_69 : f32 to vector<4x16xf32>
    %277 = arith.addf %276, %275 : vector<4x16xf32>
    %278 = arith.divf %276, %277 : vector<4x16xf32>
    %279 = vector.extract_strided_slice %266 {offsets = [0, 32], sizes = [4, 16], strides = [1, 1]} : vector<4x64xf32> to vector<4x16xf32>
    %280 = math.tanh %279 : vector<4x16xf32>
    %281 = vector.extract_strided_slice %266 {offsets = [0, 48], sizes = [4, 16], strides = [1, 1]} : vector<4x64xf32> to vector<4x16xf32>
    %282 = arith.negf %281 : vector<4x16xf32>
    %283 = math.exp %282 : vector<4x16xf32>
    %cst_70 = arith.constant 1.000000e+00 : f32
    %284 = vector.broadcast %cst_70 : f32 to vector<4x16xf32>
    %285 = arith.addf %284, %283 : vector<4x16xf32>
    %286 = arith.divf %284, %285 : vector<4x16xf32>
    %287 = arith.mulf %278, %257 : vector<4x16xf32>
    %288 = arith.mulf %272, %280 : vector<4x16xf32>
    %289 = arith.addf %287, %288 : vector<4x16xf32>
    %290 = math.tanh %289 : vector<4x16xf32>
    %291 = arith.mulf %286, %290 : vector<4x16xf32>
    %c5 = arith.constant 5 : index
    %c0_71 = arith.constant 0 : index
    %c0_72 = arith.constant 0 : index
    %292 = vector.load %arg1[%c5, %c0_71, %c0_72] : memref<8x4x1xf32, #tpu.memory_space<vmem>>, vector<1x4x1xf32>
    %293 = vector.shape_cast %292 : vector<1x4x1xf32> to vector<4x1xf32>
    %294 = vector.broadcast %293 : vector<4x1xf32> to vector<4x16xf32>
    %295 = arith.mulf %294, %291 : vector<4x16xf32>
    %cst_73 = arith.constant 1.000000e+00 : f32
    %296 = vector.broadcast %cst_73 : f32 to vector<4x1xf32>
    %297 = arith.subf %296, %293 : vector<4x1xf32>
    %298 = vector.broadcast %297 : vector<4x1xf32> to vector<4x16xf32>
    %299 = arith.mulf %298, %250 : vector<4x16xf32>
    %300 = arith.addf %295, %299 : vector<4x16xf32>
    %301 = vector.broadcast %293 : vector<4x1xf32> to vector<4x16xf32>
    %302 = arith.mulf %301, %289 : vector<4x16xf32>
    %cst_74 = arith.constant 1.000000e+00 : f32
    %303 = vector.broadcast %cst_74 : f32 to vector<4x1xf32>
    %304 = arith.subf %303, %293 : vector<4x1xf32>
    %305 = vector.broadcast %304 : vector<4x1xf32> to vector<4x16xf32>
    %306 = arith.mulf %305, %257 : vector<4x16xf32>
    %307 = arith.addf %302, %306 : vector<4x16xf32>
    %308 = vector.broadcast %293 : vector<4x1xf32> to vector<4x16xf32>
    %309 = arith.mulf %308, %291 : vector<4x16xf32>
    %c5_75 = arith.constant 5 : index
    %c0_76 = arith.constant 0 : index
    %c0_77 = arith.constant 0 : index
    %310 = vector.load %arg28[%c5_75, %c0_76, %c0_77] : memref<8x4x32xf32, #tpu.memory_space<vmem>>, vector<1x4x16xf32>
    %311 = vector.shape_cast %310 : vector<1x4x16xf32> to vector<4x16xf32>
    %312 = vector.shape_cast %309 : vector<4x16xf32> to vector<1x4x16xf32>
    tpu.vector_store %arg28[%c5_75, %c0_76, %c0_77], %312 {strides = array<i32>} : memref<8x4x32xf32, #tpu.memory_space<vmem>>, vector<1x4x16xf32>,
    %313 = vector.extract_strided_slice %8 {offsets = [6, 0, 0], sizes = [1, 4, 64], strides = [1, 1, 1]} : vector<8x4x64xf32> to vector<1x4x64xf32>
    %314 = vector.shape_cast %313 : vector<1x4x64xf32> to vector<4x64xf32>
    %cst_78 = arith.constant dense<0.000000e+00> : vector<4x64xf32>
    %315 = tpu.matmul %300, %11, %cst_78 {dimension_numbers = #tpu.dot_dimension_numbers<[1], [0], [0], [1], [0, 0, 1, 1], [], []>} : vector<4x16xf32>, vector<16x64xf32>, vector<4x64xf32> -> vector<4x64xf32>
    %316 = arith.addf %314, %315 : vector<4x64xf32>
    %317 = vector.extract_strided_slice %316 {offsets = [0, 0], sizes = [4, 16], strides = [1, 1]} : vector<4x64xf32> to vector<4x16xf32>
    %318 = arith.negf %317 : vector<4x16xf32>
    %319 = math.exp %318 : vector<4x16xf32>
    %cst_79 = arith.constant 1.000000e+00 : f32
    %320 = vector.broadcast %cst_79 : f32 to vector<4x16xf32>
    %321 = arith.addf %320, %319 : vector<4x16xf32>
    %322 = arith.divf %320, %321 : vector<4x16xf32>
    %323 = vector.extract_strided_slice %316 {offsets = [0, 16], sizes = [4, 16], strides = [1, 1]} : vector<4x64xf32> to vector<4x16xf32>
    %324 = arith.negf %323 : vector<4x16xf32>
    %325 = math.exp %324 : vector<4x16xf32>
    %cst_80 = arith.constant 1.000000e+00 : f32
    %326 = vector.broadcast %cst_80 : f32 to vector<4x16xf32>
    %327 = arith.addf %326, %325 : vector<4x16xf32>
    %328 = arith.divf %326, %327 : vector<4x16xf32>
    %329 = vector.extract_strided_slice %316 {offsets = [0, 32], sizes = [4, 16], strides = [1, 1]} : vector<4x64xf32> to vector<4x16xf32>
    %330 = math.tanh %329 : vector<4x16xf32>
    %331 = vector.extract_strided_slice %316 {offsets = [0, 48], sizes = [4, 16], strides = [1, 1]} : vector<4x64xf32> to vector<4x16xf32>
    %332 = arith.negf %331 : vector<4x16xf32>
    %333 = math.exp %332 : vector<4x16xf32>
    %cst_81 = arith.constant 1.000000e+00 : f32
    %334 = vector.broadcast %cst_81 : f32 to vector<4x16xf32>
    %335 = arith.addf %334, %333 : vector<4x16xf32>
    %336 = arith.divf %334, %335 : vector<4x16xf32>
    %337 = arith.mulf %328, %307 : vector<4x16xf32>
    %338 = arith.mulf %322, %330 : vector<4x16xf32>
    %339 = arith.addf %337, %338 : vector<4x16xf32>
    %340 = math.tanh %339 : vector<4x16xf32>
    %341 = arith.mulf %336, %340 : vector<4x16xf32>
    %c6 = arith.constant 6 : index
    %c0_82 = arith.constant 0 : index
    %c0_83 = arith.constant 0 : index
    %342 = vector.load %arg1[%c6, %c0_82, %c0_83] : memref<8x4x1xf32, #tpu.memory_space<vmem>>, vector<1x4x1xf32>
    %343 = vector.shape_cast %342 : vector<1x4x1xf32> to vector<4x1xf32>
    %344 = vector.broadcast %343 : vector<4x1xf32> to vector<4x16xf32>
    %345 = arith.mulf %344, %341 : vector<4x16xf32>
    %cst_84 = arith.constant 1.000000e+00 : f32
    %346 = vector.broadcast %cst_84 : f32 to vector<4x1xf32>
    %347 = arith.subf %346, %343 : vector<4x1xf32>
    %348 = vector.broadcast %347 : vector<4x1xf32> to vector<4x16xf32>
    %349 = arith.mulf %348, %300 : vector<4x16xf32>
    %350 = arith.addf %345, %349 : vector<4x16xf32>
    %351 = vector.broadcast %343 : vector<4x1xf32> to vector<4x16xf32>
    %352 = arith.mulf %351, %339 : vector<4x16xf32>
    %cst_85 = arith.constant 1.000000e+00 : f32
    %353 = vector.broadcast %cst_85 : f32 to vector<4x1xf32>
    %354 = arith.subf %353, %343 : vector<4x1xf32>
    %355 = vector.broadcast %354 : vector<4x1xf32> to vector<4x16xf32>
    %356 = arith.mulf %355, %307 : vector<4x16xf32>
    %357 = arith.addf %352, %356 : vector<4x16xf32>
    %358 = vector.broadcast %343 : vector<4x1xf32> to vector<4x16xf32>
    %359 = arith.mulf %358, %341 : vector<4x16xf32>
    %c6_86 = arith.constant 6 : index
    %c0_87 = arith.constant 0 : index
    %c0_88 = arith.constant 0 : index
    %360 = vector.load %arg28[%c6_86, %c0_87, %c0_88] : memref<8x4x32xf32, #tpu.memory_space<vmem>>, vector<1x4x16xf32>
    %361 = vector.shape_cast %360 : vector<1x4x16xf32> to vector<4x16xf32>
    %362 = vector.shape_cast %359 : vector<4x16xf32> to vector<1x4x16xf32>
    tpu.vector_store %arg28[%c6_86, %c0_87, %c0_88], %362 {strides = array<i32>} : memref<8x4x32xf32, #tpu.memory_space<vmem>>, vector<1x4x16xf32>,
    %363 = vector.extract_strided_slice %8 {offsets = [7, 0, 0], sizes = [1, 4, 64], strides = [1, 1, 1]} : vector<8x4x64xf32> to vector<1x4x64xf32>
    %364 = vector.shape_cast %363 : vector<1x4x64xf32> to vector<4x64xf32>
    %cst_89 = arith.constant dense<0.000000e+00> : vector<4x64xf32>
    %365 = tpu.matmul %350, %11, %cst_89 {dimension_numbers = #tpu.dot_dimension_numbers<[1], [0], [0], [1], [0, 0, 1, 1], [], []>} : vector<4x16xf32>, vector<16x64xf32>, vector<4x64xf32> -> vector<4x64xf32>
    %366 = arith.addf %364, %365 : vector<4x64xf32>
    %367 = vector.extract_strided_slice %366 {offsets = [0, 0], sizes = [4, 16], strides = [1, 1]} : vector<4x64xf32> to vector<4x16xf32>
    %368 = arith.negf %367 : vector<4x16xf32>
    %369 = math.exp %368 : vector<4x16xf32>
    %cst_90 = arith.constant 1.000000e+00 : f32
    %370 = vector.broadcast %cst_90 : f32 to vector<4x16xf32>
    %371 = arith.addf %370, %369 : vector<4x16xf32>
    %372 = arith.divf %370, %371 : vector<4x16xf32>
    %373 = vector.extract_strided_slice %366 {offsets = [0, 16], sizes = [4, 16], strides = [1, 1]} : vector<4x64xf32> to vector<4x16xf32>
    %374 = arith.negf %373 : vector<4x16xf32>
    %375 = math.exp %374 : vector<4x16xf32>
    %cst_91 = arith.constant 1.000000e+00 : f32
    %376 = vector.broadcast %cst_91 : f32 to vector<4x16xf32>
    %377 = arith.addf %376, %375 : vector<4x16xf32>
    %378 = arith.divf %376, %377 : vector<4x16xf32>
    %379 = vector.extract_strided_slice %366 {offsets = [0, 32], sizes = [4, 16], strides = [1, 1]} : vector<4x64xf32> to vector<4x16xf32>
    %380 = math.tanh %379 : vector<4x16xf32>
    %381 = vector.extract_strided_slice %366 {offsets = [0, 48], sizes = [4, 16], strides = [1, 1]} : vector<4x64xf32> to vector<4x16xf32>
    %382 = arith.negf %381 : vector<4x16xf32>
    %383 = math.exp %382 : vector<4x16xf32>
    %cst_92 = arith.constant 1.000000e+00 : f32
    %384 = vector.broadcast %cst_92 : f32 to vector<4x16xf32>
    %385 = arith.addf %384, %383 : vector<4x16xf32>
    %386 = arith.divf %384, %385 : vector<4x16xf32>
    %387 = arith.mulf %378, %357 : vector<4x16xf32>
    %388 = arith.mulf %372, %380 : vector<4x16xf32>
    %389 = arith.addf %387, %388 : vector<4x16xf32>
    %390 = math.tanh %389 : vector<4x16xf32>
    %391 = arith.mulf %386, %390 : vector<4x16xf32>
    %c7 = arith.constant 7 : index
    %c0_93 = arith.constant 0 : index
    %c0_94 = arith.constant 0 : index
    %392 = vector.load %arg1[%c7, %c0_93, %c0_94] : memref<8x4x1xf32, #tpu.memory_space<vmem>>, vector<1x4x1xf32>
    %393 = vector.shape_cast %392 : vector<1x4x1xf32> to vector<4x1xf32>
    %394 = vector.broadcast %393 : vector<4x1xf32> to vector<4x16xf32>
    %395 = arith.mulf %394, %391 : vector<4x16xf32>
    %cst_95 = arith.constant 1.000000e+00 : f32
    %396 = vector.broadcast %cst_95 : f32 to vector<4x1xf32>
    %397 = arith.subf %396, %393 : vector<4x1xf32>
    %398 = vector.broadcast %397 : vector<4x1xf32> to vector<4x16xf32>
    %399 = arith.mulf %398, %350 : vector<4x16xf32>
    %400 = arith.addf %395, %399 : vector<4x16xf32>
    %401 = vector.broadcast %393 : vector<4x1xf32> to vector<4x16xf32>
    %402 = arith.mulf %401, %389 : vector<4x16xf32>
    %cst_96 = arith.constant 1.000000e+00 : f32
    %403 = vector.broadcast %cst_96 : f32 to vector<4x1xf32>
    %404 = arith.subf %403, %393 : vector<4x1xf32>
    %405 = vector.broadcast %404 : vector<4x1xf32> to vector<4x16xf32>
    %406 = arith.mulf %405, %357 : vector<4x16xf32>
    %407 = arith.addf %402, %406 : vector<4x16xf32>
    %408 = vector.broadcast %393 : vector<4x1xf32> to vector<4x16xf32>
    %409 = arith.mulf %408, %391 : vector<4x16xf32>
    %c7_97 = arith.constant 7 : index
    %c0_98 = arith.constant 0 : index
    %c0_99 = arith.constant 0 : index
    %410 = vector.load %arg28[%c7_97, %c0_98, %c0_99] : memref<8x4x32xf32, #tpu.memory_space<vmem>>, vector<1x4x16xf32>
    %411 = vector.shape_cast %410 : vector<1x4x16xf32> to vector<4x16xf32>
    %412 = vector.shape_cast %409 : vector<4x16xf32> to vector<1x4x16xf32>
    tpu.vector_store %arg28[%c7_97, %c0_98, %c0_99], %412 {strides = array<i32>} : memref<8x4x32xf32, #tpu.memory_space<vmem>>, vector<1x4x16xf32>,
    %413 = vector.extract_strided_slice %9 {offsets = [7, 0, 0], sizes = [1, 4, 64], strides = [1, 1, 1]} : vector<8x4x64xf32> to vector<1x4x64xf32>
    %414 = vector.shape_cast %413 : vector<1x4x64xf32> to vector<4x64xf32>
    %cst_100 = arith.constant dense<0.000000e+00> : vector<4x64xf32>
    %415 = tpu.matmul %10, %12, %cst_100 {dimension_numbers = #tpu.dot_dimension_numbers<[1], [0], [0], [1], [0, 0, 1, 1], [], []>} : vector<4x16xf32>, vector<16x64xf32>, vector<4x64xf32> -> vector<4x64xf32>
    %416 = arith.addf %414, %415 : vector<4x64xf32>
    %417 = vector.extract_strided_slice %416 {offsets = [0, 0], sizes = [4, 16], strides = [1, 1]} : vector<4x64xf32> to vector<4x16xf32>
    %418 = arith.negf %417 : vector<4x16xf32>
    %419 = math.exp %418 : vector<4x16xf32>
    %cst_101 = arith.constant 1.000000e+00 : f32
    %420 = vector.broadcast %cst_101 : f32 to vector<4x16xf32>
    %421 = arith.addf %420, %419 : vector<4x16xf32>
    %422 = arith.divf %420, %421 : vector<4x16xf32>
    %423 = vector.extract_strided_slice %416 {offsets = [0, 16], sizes = [4, 16], strides = [1, 1]} : vector<4x64xf32> to vector<4x16xf32>
    %424 = arith.negf %423 : vector<4x16xf32>
    %425 = math.exp %424 : vector<4x16xf32>
    %cst_102 = arith.constant 1.000000e+00 : f32
    %426 = vector.broadcast %cst_102 : f32 to vector<4x16xf32>
    %427 = arith.addf %426, %425 : vector<4x16xf32>
    %428 = arith.divf %426, %427 : vector<4x16xf32>
    %429 = vector.extract_strided_slice %416 {offsets = [0, 32], sizes = [4, 16], strides = [1, 1]} : vector<4x64xf32> to vector<4x16xf32>
    %430 = math.tanh %429 : vector<4x16xf32>
    %431 = vector.extract_strided_slice %416 {offsets = [0, 48], sizes = [4, 16], strides = [1, 1]} : vector<4x64xf32> to vector<4x16xf32>
    %432 = arith.negf %431 : vector<4x16xf32>
    %433 = math.exp %432 : vector<4x16xf32>
    %cst_103 = arith.constant 1.000000e+00 : f32
    %434 = vector.broadcast %cst_103 : f32 to vector<4x16xf32>
    %435 = arith.addf %434, %433 : vector<4x16xf32>
    %436 = arith.divf %434, %435 : vector<4x16xf32>
    %437 = arith.mulf %428, %10 : vector<4x16xf32>
    %438 = arith.mulf %422, %430 : vector<4x16xf32>
    %439 = arith.addf %437, %438 : vector<4x16xf32>
    %440 = math.tanh %439 : vector<4x16xf32>
    %441 = arith.mulf %436, %440 : vector<4x16xf32>
    %c7_104 = arith.constant 7 : index
    %c0_105 = arith.constant 0 : index
    %c0_106 = arith.constant 0 : index
    %442 = vector.load %arg1[%c7_104, %c0_105, %c0_106] : memref<8x4x1xf32, #tpu.memory_space<vmem>>, vector<1x4x1xf32>
    %443 = vector.shape_cast %442 : vector<1x4x1xf32> to vector<4x1xf32>
    %444 = vector.broadcast %443 : vector<4x1xf32> to vector<4x16xf32>
    %445 = arith.mulf %444, %441 : vector<4x16xf32>
    %cst_107 = arith.constant 1.000000e+00 : f32
    %446 = vector.broadcast %cst_107 : f32 to vector<4x1xf32>
    %447 = arith.subf %446, %443 : vector<4x1xf32>
    %448 = vector.broadcast %447 : vector<4x1xf32> to vector<4x16xf32>
    %449 = arith.mulf %448, %10 : vector<4x16xf32>
    %450 = arith.addf %445, %449 : vector<4x16xf32>
    %451 = vector.broadcast %443 : vector<4x1xf32> to vector<4x16xf32>
    %452 = arith.mulf %451, %439 : vector<4x16xf32>
    %cst_108 = arith.constant 1.000000e+00 : f32
    %453 = vector.broadcast %cst_108 : f32 to vector<4x1xf32>
    %454 = arith.subf %453, %443 : vector<4x1xf32>
    %455 = vector.broadcast %454 : vector<4x1xf32> to vector<4x16xf32>
    %456 = arith.mulf %455, %10 : vector<4x16xf32>
    %457 = arith.addf %452, %456 : vector<4x16xf32>
    %458 = vector.broadcast %443 : vector<4x1xf32> to vector<4x16xf32>
    %459 = arith.mulf %458, %441 : vector<4x16xf32>
    %c7_109 = arith.constant 7 : index
    %c0_110 = arith.constant 0 : index
    %c16 = arith.constant 16 : index
    %460 = vector.load %arg28[%c7_109, %c0_110, %c16] : memref<8x4x32xf32, #tpu.memory_space<vmem>>, vector<1x4x16xf32>
    %461 = vector.shape_cast %460 : vector<1x4x16xf32> to vector<4x16xf32>
    %462 = vector.shape_cast %459 : vector<4x16xf32> to vector<1x4x16xf32>
    tpu.vector_store %arg28[%c7_109, %c0_110, %c16], %462 {strides = array<i32>} : memref<8x4x32xf32, #tpu.memory_space<vmem>>, vector<1x4x16xf32>,
    %463 = vector.extract_strided_slice %9 {offsets = [6, 0, 0], sizes = [1, 4, 64], strides = [1, 1, 1]} : vector<8x4x64xf32> to vector<1x4x64xf32>
    %464 = vector.shape_cast %463 : vector<1x4x64xf32> to vector<4x64xf32>
    %cst_111 = arith.constant dense<0.000000e+00> : vector<4x64xf32>
    %465 = tpu.matmul %450, %12, %cst_111 {dimension_numbers = #tpu.dot_dimension_numbers<[1], [0], [0], [1], [0, 0, 1, 1], [], []>} : vector<4x16xf32>, vector<16x64xf32>, vector<4x64xf32> -> vector<4x64xf32>
    %466 = arith.addf %464, %465 : vector<4x64xf32>
    %467 = vector.extract_strided_slice %466 {offsets = [0, 0], sizes = [4, 16], strides = [1, 1]} : vector<4x64xf32> to vector<4x16xf32>
    %468 = arith.negf %467 : vector<4x16xf32>
    %469 = math.exp %468 : vector<4x16xf32>
    %cst_112 = arith.constant 1.000000e+00 : f32
    %470 = vector.broadcast %cst_112 : f32 to vector<4x16xf32>
    %471 = arith.addf %470, %469 : vector<4x16xf32>
    %472 = arith.divf %470, %471 : vector<4x16xf32>
    %473 = vector.extract_strided_slice %466 {offsets = [0, 16], sizes = [4, 16], strides = [1, 1]} : vector<4x64xf32> to vector<4x16xf32>
    %474 = arith.negf %473 : vector<4x16xf32>
    %475 = math.exp %474 : vector<4x16xf32>
    %cst_113 = arith.constant 1.000000e+00 : f32
    %476 = vector.broadcast %cst_113 : f32 to vector<4x16xf32>
    %477 = arith.addf %476, %475 : vector<4x16xf32>
    %478 = arith.divf %476, %477 : vector<4x16xf32>
    %479 = vector.extract_strided_slice %466 {offsets = [0, 32], sizes = [4, 16], strides = [1, 1]} : vector<4x64xf32> to vector<4x16xf32>
    %480 = math.tanh %479 : vector<4x16xf32>
    %481 = vector.extract_strided_slice %466 {offsets = [0, 48], sizes = [4, 16], strides = [1, 1]} : vector<4x64xf32> to vector<4x16xf32>
    %482 = arith.negf %481 : vector<4x16xf32>
    %483 = math.exp %482 : vector<4x16xf32>
    %cst_114 = arith.constant 1.000000e+00 : f32
    %484 = vector.broadcast %cst_114 : f32 to vector<4x16xf32>
    %485 = arith.addf %484, %483 : vector<4x16xf32>
    %486 = arith.divf %484, %485 : vector<4x16xf32>
    %487 = arith.mulf %478, %457 : vector<4x16xf32>
    %488 = arith.mulf %472, %480 : vector<4x16xf32>
    %489 = arith.addf %487, %488 : vector<4x16xf32>
    %490 = math.tanh %489 : vector<4x16xf32>
    %491 = arith.mulf %486, %490 : vector<4x16xf32>
    %c6_115 = arith.constant 6 : index
    %c0_116 = arith.constant 0 : index
    %c0_117 = arith.constant 0 : index
    %492 = vector.load %arg1[%c6_115, %c0_116, %c0_117] : memref<8x4x1xf32, #tpu.memory_space<vmem>>, vector<1x4x1xf32>
    %493 = vector.shape_cast %492 : vector<1x4x1xf32> to vector<4x1xf32>
    %494 = vector.broadcast %493 : vector<4x1xf32> to vector<4x16xf32>
    %495 = arith.mulf %494, %491 : vector<4x16xf32>
    %cst_118 = arith.constant 1.000000e+00 : f32
    %496 = vector.broadcast %cst_118 : f32 to vector<4x1xf32>
    %497 = arith.subf %496, %493 : vector<4x1xf32>
    %498 = vector.broadcast %497 : vector<4x1xf32> to vector<4x16xf32>
    %499 = arith.mulf %498, %450 : vector<4x16xf32>
    %500 = arith.addf %495, %499 : vector<4x16xf32>
    %501 = vector.broadcast %493 : vector<4x1xf32> to vector<4x16xf32>
    %502 = arith.mulf %501, %489 : vector<4x16xf32>
    %cst_119 = arith.constant 1.000000e+00 : f32
    %503 = vector.broadcast %cst_119 : f32 to vector<4x1xf32>
    %504 = arith.subf %503, %493 : vector<4x1xf32>
    %505 = vector.broadcast %504 : vector<4x1xf32> to vector<4x16xf32>
    %506 = arith.mulf %505, %457 : vector<4x16xf32>
    %507 = arith.addf %502, %506 : vector<4x16xf32>
    %508 = vector.broadcast %493 : vector<4x1xf32> to vector<4x16xf32>
    %509 = arith.mulf %508, %491 : vector<4x16xf32>
    %c6_120 = arith.constant 6 : index
    %c0_121 = arith.constant 0 : index
    %c16_122 = arith.constant 16 : index
    %510 = vector.load %arg28[%c6_120, %c0_121, %c16_122] : memref<8x4x32xf32, #tpu.memory_space<vmem>>, vector<1x4x16xf32>
    %511 = vector.shape_cast %510 : vector<1x4x16xf32> to vector<4x16xf32>
    %512 = vector.shape_cast %509 : vector<4x16xf32> to vector<1x4x16xf32>
    tpu.vector_store %arg28[%c6_120, %c0_121, %c16_122], %512 {strides = array<i32>} : memref<8x4x32xf32, #tpu.memory_space<vmem>>, vector<1x4x16xf32>,
    %513 = vector.extract_strided_slice %9 {offsets = [5, 0, 0], sizes = [1, 4, 64], strides = [1, 1, 1]} : vector<8x4x64xf32> to vector<1x4x64xf32>
    %514 = vector.shape_cast %513 : vector<1x4x64xf32> to vector<4x64xf32>
    %cst_123 = arith.constant dense<0.000000e+00> : vector<4x64xf32>
    %515 = tpu.matmul %500, %12, %cst_123 {dimension_numbers = #tpu.dot_dimension_numbers<[1], [0], [0], [1], [0, 0, 1, 1], [], []>} : vector<4x16xf32>, vector<16x64xf32>, vector<4x64xf32> -> vector<4x64xf32>
    %516 = arith.addf %514, %515 : vector<4x64xf32>
    %517 = vector.extract_strided_slice %516 {offsets = [0, 0], sizes = [4, 16], strides = [1, 1]} : vector<4x64xf32> to vector<4x16xf32>
    %518 = arith.negf %517 : vector<4x16xf32>
    %519 = math.exp %518 : vector<4x16xf32>
    %cst_124 = arith.constant 1.000000e+00 : f32
    %520 = vector.broadcast %cst_124 : f32 to vector<4x16xf32>
    %521 = arith.addf %520, %519 : vector<4x16xf32>
    %522 = arith.divf %520, %521 : vector<4x16xf32>
    %523 = vector.extract_strided_slice %516 {offsets = [0, 16], sizes = [4, 16], strides = [1, 1]} : vector<4x64xf32> to vector<4x16xf32>
    %524 = arith.negf %523 : vector<4x16xf32>
    %525 = math.exp %524 : vector<4x16xf32>
    %cst_125 = arith.constant 1.000000e+00 : f32
    %526 = vector.broadcast %cst_125 : f32 to vector<4x16xf32>
    %527 = arith.addf %526, %525 : vector<4x16xf32>
    %528 = arith.divf %526, %527 : vector<4x16xf32>
    %529 = vector.extract_strided_slice %516 {offsets = [0, 32], sizes = [4, 16], strides = [1, 1]} : vector<4x64xf32> to vector<4x16xf32>
    %530 = math.tanh %529 : vector<4x16xf32>
    %531 = vector.extract_strided_slice %516 {offsets = [0, 48], sizes = [4, 16], strides = [1, 1]} : vector<4x64xf32> to vector<4x16xf32>
    %532 = arith.negf %531 : vector<4x16xf32>
    %533 = math.exp %532 : vector<4x16xf32>
    %cst_126 = arith.constant 1.000000e+00 : f32
    %534 = vector.broadcast %cst_126 : f32 to vector<4x16xf32>
    %535 = arith.addf %534, %533 : vector<4x16xf32>
    %536 = arith.divf %534, %535 : vector<4x16xf32>
    %537 = arith.mulf %528, %507 : vector<4x16xf32>
    %538 = arith.mulf %522, %530 : vector<4x16xf32>
    %539 = arith.addf %537, %538 : vector<4x16xf32>
    %540 = math.tanh %539 : vector<4x16xf32>
    %541 = arith.mulf %536, %540 : vector<4x16xf32>
    %c5_127 = arith.constant 5 : index
    %c0_128 = arith.constant 0 : index
    %c0_129 = arith.constant 0 : index
    %542 = vector.load %arg1[%c5_127, %c0_128, %c0_129] : memref<8x4x1xf32, #tpu.memory_space<vmem>>, vector<1x4x1xf32>
    %543 = vector.shape_cast %542 : vector<1x4x1xf32> to vector<4x1xf32>
    %544 = vector.broadcast %543 : vector<4x1xf32> to vector<4x16xf32>
    %545 = arith.mulf %544, %541 : vector<4x16xf32>
    %cst_130 = arith.constant 1.000000e+00 : f32
    %546 = vector.broadcast %cst_130 : f32 to vector<4x1xf32>
    %547 = arith.subf %546, %543 : vector<4x1xf32>
    %548 = vector.broadcast %547 : vector<4x1xf32> to vector<4x16xf32>
    %549 = arith.mulf %548, %500 : vector<4x16xf32>
    %550 = arith.addf %545, %549 : vector<4x16xf32>
    %551 = vector.broadcast %543 : vector<4x1xf32> to vector<4x16xf32>
    %552 = arith.mulf %551, %539 : vector<4x16xf32>
    %cst_131 = arith.constant 1.000000e+00 : f32
    %553 = vector.broadcast %cst_131 : f32 to vector<4x1xf32>
    %554 = arith.subf %553, %543 : vector<4x1xf32>
    %555 = vector.broadcast %554 : vector<4x1xf32> to vector<4x16xf32>
    %556 = arith.mulf %555, %507 : vector<4x16xf32>
    %557 = arith.addf %552, %556 : vector<4x16xf32>
    %558 = vector.broadcast %543 : vector<4x1xf32> to vector<4x16xf32>
    %559 = arith.mulf %558, %541 : vector<4x16xf32>
    %c5_132 = arith.constant 5 : index
    %c0_133 = arith.constant 0 : index
    %c16_134 = arith.constant 16 : index
    %560 = vector.load %arg28[%c5_132, %c0_133, %c16_134] : memref<8x4x32xf32, #tpu.memory_space<vmem>>, vector<1x4x16xf32>
    %561 = vector.shape_cast %560 : vector<1x4x16xf32> to vector<4x16xf32>
    %562 = vector.shape_cast %559 : vector<4x16xf32> to vector<1x4x16xf32>
    tpu.vector_store %arg28[%c5_132, %c0_133, %c16_134], %562 {strides = array<i32>} : memref<8x4x32xf32, #tpu.memory_space<vmem>>, vector<1x4x16xf32>,
    %563 = vector.extract_strided_slice %9 {offsets = [4, 0, 0], sizes = [1, 4, 64], strides = [1, 1, 1]} : vector<8x4x64xf32> to vector<1x4x64xf32>
    %564 = vector.shape_cast %563 : vector<1x4x64xf32> to vector<4x64xf32>
    %cst_135 = arith.constant dense<0.000000e+00> : vector<4x64xf32>
    %565 = tpu.matmul %550, %12, %cst_135 {dimension_numbers = #tpu.dot_dimension_numbers<[1], [0], [0], [1], [0, 0, 1, 1], [], []>} : vector<4x16xf32>, vector<16x64xf32>, vector<4x64xf32> -> vector<4x64xf32>
    %566 = arith.addf %564, %565 : vector<4x64xf32>
    %567 = vector.extract_strided_slice %566 {offsets = [0, 0], sizes = [4, 16], strides = [1, 1]} : vector<4x64xf32> to vector<4x16xf32>
    %568 = arith.negf %567 : vector<4x16xf32>
    %569 = math.exp %568 : vector<4x16xf32>
    %cst_136 = arith.constant 1.000000e+00 : f32
    %570 = vector.broadcast %cst_136 : f32 to vector<4x16xf32>
    %571 = arith.addf %570, %569 : vector<4x16xf32>
    %572 = arith.divf %570, %571 : vector<4x16xf32>
    %573 = vector.extract_strided_slice %566 {offsets = [0, 16], sizes = [4, 16], strides = [1, 1]} : vector<4x64xf32> to vector<4x16xf32>
    %574 = arith.negf %573 : vector<4x16xf32>
    %575 = math.exp %574 : vector<4x16xf32>
    %cst_137 = arith.constant 1.000000e+00 : f32
    %576 = vector.broadcast %cst_137 : f32 to vector<4x16xf32>
    %577 = arith.addf %576, %575 : vector<4x16xf32>
    %578 = arith.divf %576, %577 : vector<4x16xf32>
    %579 = vector.extract_strided_slice %566 {offsets = [0, 32], sizes = [4, 16], strides = [1, 1]} : vector<4x64xf32> to vector<4x16xf32>
    %580 = math.tanh %579 : vector<4x16xf32>
    %581 = vector.extract_strided_slice %566 {offsets = [0, 48], sizes = [4, 16], strides = [1, 1]} : vector<4x64xf32> to vector<4x16xf32>
    %582 = arith.negf %581 : vector<4x16xf32>
    %583 = math.exp %582 : vector<4x16xf32>
    %cst_138 = arith.constant 1.000000e+00 : f32
    %584 = vector.broadcast %cst_138 : f32 to vector<4x16xf32>
    %585 = arith.addf %584, %583 : vector<4x16xf32>
    %586 = arith.divf %584, %585 : vector<4x16xf32>
    %587 = arith.mulf %578, %557 : vector<4x16xf32>
    %588 = arith.mulf %572, %580 : vector<4x16xf32>
    %589 = arith.addf %587, %588 : vector<4x16xf32>
    %590 = math.tanh %589 : vector<4x16xf32>
    %591 = arith.mulf %586, %590 : vector<4x16xf32>
    %c4_139 = arith.constant 4 : index
    %c0_140 = arith.constant 0 : index
    %c0_141 = arith.constant 0 : index
    %592 = vector.load %arg1[%c4_139, %c0_140, %c0_141] : memref<8x4x1xf32, #tpu.memory_space<vmem>>, vector<1x4x1xf32>
    %593 = vector.shape_cast %592 : vector<1x4x1xf32> to vector<4x1xf32>
    %594 = vector.broadcast %593 : vector<4x1xf32> to vector<4x16xf32>
    %595 = arith.mulf %594, %591 : vector<4x16xf32>
    %cst_142 = arith.constant 1.000000e+00 : f32
    %596 = vector.broadcast %cst_142 : f32 to vector<4x1xf32>
    %597 = arith.subf %596, %593 : vector<4x1xf32>
    %598 = vector.broadcast %597 : vector<4x1xf32> to vector<4x16xf32>
    %599 = arith.mulf %598, %550 : vector<4x16xf32>
    %600 = arith.addf %595, %599 : vector<4x16xf32>
    %601 = vector.broadcast %593 : vector<4x1xf32> to vector<4x16xf32>
    %602 = arith.mulf %601, %589 : vector<4x16xf32>
    %cst_143 = arith.constant 1.000000e+00 : f32
    %603 = vector.broadcast %cst_143 : f32 to vector<4x1xf32>
    %604 = arith.subf %603, %593 : vector<4x1xf32>
    %605 = vector.broadcast %604 : vector<4x1xf32> to vector<4x16xf32>
    %606 = arith.mulf %605, %557 : vector<4x16xf32>
    %607 = arith.addf %602, %606 : vector<4x16xf32>
    %608 = vector.broadcast %593 : vector<4x1xf32> to vector<4x16xf32>
    %609 = arith.mulf %608, %591 : vector<4x16xf32>
    %c4_144 = arith.constant 4 : index
    %c0_145 = arith.constant 0 : index
    %c16_146 = arith.constant 16 : index
    %610 = vector.load %arg28[%c4_144, %c0_145, %c16_146] : memref<8x4x32xf32, #tpu.memory_space<vmem>>, vector<1x4x16xf32>
    %611 = vector.shape_cast %610 : vector<1x4x16xf32> to vector<4x16xf32>
    %612 = vector.shape_cast %609 : vector<4x16xf32> to vector<1x4x16xf32>
    tpu.vector_store %arg28[%c4_144, %c0_145, %c16_146], %612 {strides = array<i32>} : memref<8x4x32xf32, #tpu.memory_space<vmem>>, vector<1x4x16xf32>,
    %613 = vector.extract_strided_slice %9 {offsets = [3, 0, 0], sizes = [1, 4, 64], strides = [1, 1, 1]} : vector<8x4x64xf32> to vector<1x4x64xf32>
    %614 = vector.shape_cast %613 : vector<1x4x64xf32> to vector<4x64xf32>
    %cst_147 = arith.constant dense<0.000000e+00> : vector<4x64xf32>
    %615 = tpu.matmul %600, %12, %cst_147 {dimension_numbers = #tpu.dot_dimension_numbers<[1], [0], [0], [1], [0, 0, 1, 1], [], []>} : vector<4x16xf32>, vector<16x64xf32>, vector<4x64xf32> -> vector<4x64xf32>
    %616 = arith.addf %614, %615 : vector<4x64xf32>
    %617 = vector.extract_strided_slice %616 {offsets = [0, 0], sizes = [4, 16], strides = [1, 1]} : vector<4x64xf32> to vector<4x16xf32>
    %618 = arith.negf %617 : vector<4x16xf32>
    %619 = math.exp %618 : vector<4x16xf32>
    %cst_148 = arith.constant 1.000000e+00 : f32
    %620 = vector.broadcast %cst_148 : f32 to vector<4x16xf32>
    %621 = arith.addf %620, %619 : vector<4x16xf32>
    %622 = arith.divf %620, %621 : vector<4x16xf32>
    %623 = vector.extract_strided_slice %616 {offsets = [0, 16], sizes = [4, 16], strides = [1, 1]} : vector<4x64xf32> to vector<4x16xf32>
    %624 = arith.negf %623 : vector<4x16xf32>
    %625 = math.exp %624 : vector<4x16xf32>
    %cst_149 = arith.constant 1.000000e+00 : f32
    %626 = vector.broadcast %cst_149 : f32 to vector<4x16xf32>
    %627 = arith.addf %626, %625 : vector<4x16xf32>
    %628 = arith.divf %626, %627 : vector<4x16xf32>
    %629 = vector.extract_strided_slice %616 {offsets = [0, 32], sizes = [4, 16], strides = [1, 1]} : vector<4x64xf32> to vector<4x16xf32>
    %630 = math.tanh %629 : vector<4x16xf32>
    %631 = vector.extract_strided_slice %616 {offsets = [0, 48], sizes = [4, 16], strides = [1, 1]} : vector<4x64xf32> to vector<4x16xf32>
    %632 = arith.negf %631 : vector<4x16xf32>
    %633 = math.exp %632 : vector<4x16xf32>
    %cst_150 = arith.constant 1.000000e+00 : f32
    %634 = vector.broadcast %cst_150 : f32 to vector<4x16xf32>
    %635 = arith.addf %634, %633 : vector<4x16xf32>
    %636 = arith.divf %634, %635 : vector<4x16xf32>
    %637 = arith.mulf %628, %607 : vector<4x16xf32>
    %638 = arith.mulf %622, %630 : vector<4x16xf32>
    %639 = arith.addf %637, %638 : vector<4x16xf32>
    %640 = math.tanh %639 : vector<4x16xf32>
    %641 = arith.mulf %636, %640 : vector<4x16xf32>
    %c3_151 = arith.constant 3 : index
    %c0_152 = arith.constant 0 : index
    %c0_153 = arith.constant 0 : index
    %642 = vector.load %arg1[%c3_151, %c0_152, %c0_153] : memref<8x4x1xf32, #tpu.memory_space<vmem>>, vector<1x4x1xf32>
    %643 = vector.shape_cast %642 : vector<1x4x1xf32> to vector<4x1xf32>
    %644 = vector.broadcast %643 : vector<4x1xf32> to vector<4x16xf32>
    %645 = arith.mulf %644, %641 : vector<4x16xf32>
    %cst_154 = arith.constant 1.000000e+00 : f32
    %646 = vector.broadcast %cst_154 : f32 to vector<4x1xf32>
    %647 = arith.subf %646, %643 : vector<4x1xf32>
    %648 = vector.broadcast %647 : vector<4x1xf32> to vector<4x16xf32>
    %649 = arith.mulf %648, %600 : vector<4x16xf32>
    %650 = arith.addf %645, %649 : vector<4x16xf32>
    %651 = vector.broadcast %643 : vector<4x1xf32> to vector<4x16xf32>
    %652 = arith.mulf %651, %639 : vector<4x16xf32>
    %cst_155 = arith.constant 1.000000e+00 : f32
    %653 = vector.broadcast %cst_155 : f32 to vector<4x1xf32>
    %654 = arith.subf %653, %643 : vector<4x1xf32>
    %655 = vector.broadcast %654 : vector<4x1xf32> to vector<4x16xf32>
    %656 = arith.mulf %655, %607 : vector<4x16xf32>
    %657 = arith.addf %652, %656 : vector<4x16xf32>
    %658 = vector.broadcast %643 : vector<4x1xf32> to vector<4x16xf32>
    %659 = arith.mulf %658, %641 : vector<4x16xf32>
    %c3_156 = arith.constant 3 : index
    %c0_157 = arith.constant 0 : index
    %c16_158 = arith.constant 16 : index
    %660 = vector.load %arg28[%c3_156, %c0_157, %c16_158] : memref<8x4x32xf32, #tpu.memory_space<vmem>>, vector<1x4x16xf32>
    %661 = vector.shape_cast %660 : vector<1x4x16xf32> to vector<4x16xf32>
    %662 = vector.shape_cast %659 : vector<4x16xf32> to vector<1x4x16xf32>
    tpu.vector_store %arg28[%c3_156, %c0_157, %c16_158], %662 {strides = array<i32>} : memref<8x4x32xf32, #tpu.memory_space<vmem>>, vector<1x4x16xf32>,
    %663 = vector.extract_strided_slice %9 {offsets = [2, 0, 0], sizes = [1, 4, 64], strides = [1, 1, 1]} : vector<8x4x64xf32> to vector<1x4x64xf32>
    %664 = vector.shape_cast %663 : vector<1x4x64xf32> to vector<4x64xf32>
    %cst_159 = arith.constant dense<0.000000e+00> : vector<4x64xf32>
    %665 = tpu.matmul %650, %12, %cst_159 {dimension_numbers = #tpu.dot_dimension_numbers<[1], [0], [0], [1], [0, 0, 1, 1], [], []>} : vector<4x16xf32>, vector<16x64xf32>, vector<4x64xf32> -> vector<4x64xf32>
    %666 = arith.addf %664, %665 : vector<4x64xf32>
    %667 = vector.extract_strided_slice %666 {offsets = [0, 0], sizes = [4, 16], strides = [1, 1]} : vector<4x64xf32> to vector<4x16xf32>
    %668 = arith.negf %667 : vector<4x16xf32>
    %669 = math.exp %668 : vector<4x16xf32>
    %cst_160 = arith.constant 1.000000e+00 : f32
    %670 = vector.broadcast %cst_160 : f32 to vector<4x16xf32>
    %671 = arith.addf %670, %669 : vector<4x16xf32>
    %672 = arith.divf %670, %671 : vector<4x16xf32>
    %673 = vector.extract_strided_slice %666 {offsets = [0, 16], sizes = [4, 16], strides = [1, 1]} : vector<4x64xf32> to vector<4x16xf32>
    %674 = arith.negf %673 : vector<4x16xf32>
    %675 = math.exp %674 : vector<4x16xf32>
    %cst_161 = arith.constant 1.000000e+00 : f32
    %676 = vector.broadcast %cst_161 : f32 to vector<4x16xf32>
    %677 = arith.addf %676, %675 : vector<4x16xf32>
    %678 = arith.divf %676, %677 : vector<4x16xf32>
    %679 = vector.extract_strided_slice %666 {offsets = [0, 32], sizes = [4, 16], strides = [1, 1]} : vector<4x64xf32> to vector<4x16xf32>
    %680 = math.tanh %679 : vector<4x16xf32>
    %681 = vector.extract_strided_slice %666 {offsets = [0, 48], sizes = [4, 16], strides = [1, 1]} : vector<4x64xf32> to vector<4x16xf32>
    %682 = arith.negf %681 : vector<4x16xf32>
    %683 = math.exp %682 : vector<4x16xf32>
    %cst_162 = arith.constant 1.000000e+00 : f32
    %684 = vector.broadcast %cst_162 : f32 to vector<4x16xf32>
    %685 = arith.addf %684, %683 : vector<4x16xf32>
    %686 = arith.divf %684, %685 : vector<4x16xf32>
    %687 = arith.mulf %678, %657 : vector<4x16xf32>
    %688 = arith.mulf %672, %680 : vector<4x16xf32>
    %689 = arith.addf %687, %688 : vector<4x16xf32>
    %690 = math.tanh %689 : vector<4x16xf32>
    %691 = arith.mulf %686, %690 : vector<4x16xf32>
    %c2_163 = arith.constant 2 : index
    %c0_164 = arith.constant 0 : index
    %c0_165 = arith.constant 0 : index
    %692 = vector.load %arg1[%c2_163, %c0_164, %c0_165] : memref<8x4x1xf32, #tpu.memory_space<vmem>>, vector<1x4x1xf32>
    %693 = vector.shape_cast %692 : vector<1x4x1xf32> to vector<4x1xf32>
    %694 = vector.broadcast %693 : vector<4x1xf32> to vector<4x16xf32>
    %695 = arith.mulf %694, %691 : vector<4x16xf32>
    %cst_166 = arith.constant 1.000000e+00 : f32
    %696 = vector.broadcast %cst_166 : f32 to vector<4x1xf32>
    %697 = arith.subf %696, %693 : vector<4x1xf32>
    %698 = vector.broadcast %697 : vector<4x1xf32> to vector<4x16xf32>
    %699 = arith.mulf %698, %650 : vector<4x16xf32>
    %700 = arith.addf %695, %699 : vector<4x16xf32>
    %701 = vector.broadcast %693 : vector<4x1xf32> to vector<4x16xf32>
    %702 = arith.mulf %701, %689 : vector<4x16xf32>
    %cst_167 = arith.constant 1.000000e+00 : f32
    %703 = vector.broadcast %cst_167 : f32 to vector<4x1xf32>
    %704 = arith.subf %703, %693 : vector<4x1xf32>
    %705 = vector.broadcast %704 : vector<4x1xf32> to vector<4x16xf32>
    %706 = arith.mulf %705, %657 : vector<4x16xf32>
    %707 = arith.addf %702, %706 : vector<4x16xf32>
    %708 = vector.broadcast %693 : vector<4x1xf32> to vector<4x16xf32>
    %709 = arith.mulf %708, %691 : vector<4x16xf32>
    %c2_168 = arith.constant 2 : index
    %c0_169 = arith.constant 0 : index
    %c16_170 = arith.constant 16 : index
    %710 = vector.load %arg28[%c2_168, %c0_169, %c16_170] : memref<8x4x32xf32, #tpu.memory_space<vmem>>, vector<1x4x16xf32>
    %711 = vector.shape_cast %710 : vector<1x4x16xf32> to vector<4x16xf32>
    %712 = vector.shape_cast %709 : vector<4x16xf32> to vector<1x4x16xf32>
    tpu.vector_store %arg28[%c2_168, %c0_169, %c16_170], %712 {strides = array<i32>} : memref<8x4x32xf32, #tpu.memory_space<vmem>>, vector<1x4x16xf32>,
    %713 = vector.extract_strided_slice %9 {offsets = [1, 0, 0], sizes = [1, 4, 64], strides = [1, 1, 1]} : vector<8x4x64xf32> to vector<1x4x64xf32>
    %714 = vector.shape_cast %713 : vector<1x4x64xf32> to vector<4x64xf32>
    %cst_171 = arith.constant dense<0.000000e+00> : vector<4x64xf32>
    %715 = tpu.matmul %700, %12, %cst_171 {dimension_numbers = #tpu.dot_dimension_numbers<[1], [0], [0], [1], [0, 0, 1, 1], [], []>} : vector<4x16xf32>, vector<16x64xf32>, vector<4x64xf32> -> vector<4x64xf32>
    %716 = arith.addf %714, %715 : vector<4x64xf32>
    %717 = vector.extract_strided_slice %716 {offsets = [0, 0], sizes = [4, 16], strides = [1, 1]} : vector<4x64xf32> to vector<4x16xf32>
    %718 = arith.negf %717 : vector<4x16xf32>
    %719 = math.exp %718 : vector<4x16xf32>
    %cst_172 = arith.constant 1.000000e+00 : f32
    %720 = vector.broadcast %cst_172 : f32 to vector<4x16xf32>
    %721 = arith.addf %720, %719 : vector<4x16xf32>
    %722 = arith.divf %720, %721 : vector<4x16xf32>
    %723 = vector.extract_strided_slice %716 {offsets = [0, 16], sizes = [4, 16], strides = [1, 1]} : vector<4x64xf32> to vector<4x16xf32>
    %724 = arith.negf %723 : vector<4x16xf32>
    %725 = math.exp %724 : vector<4x16xf32>
    %cst_173 = arith.constant 1.000000e+00 : f32
    %726 = vector.broadcast %cst_173 : f32 to vector<4x16xf32>
    %727 = arith.addf %726, %725 : vector<4x16xf32>
    %728 = arith.divf %726, %727 : vector<4x16xf32>
    %729 = vector.extract_strided_slice %716 {offsets = [0, 32], sizes = [4, 16], strides = [1, 1]} : vector<4x64xf32> to vector<4x16xf32>
    %730 = math.tanh %729 : vector<4x16xf32>
    %731 = vector.extract_strided_slice %716 {offsets = [0, 48], sizes = [4, 16], strides = [1, 1]} : vector<4x64xf32> to vector<4x16xf32>
    %732 = arith.negf %731 : vector<4x16xf32>
    %733 = math.exp %732 : vector<4x16xf32>
    %cst_174 = arith.constant 1.000000e+00 : f32
    %734 = vector.broadcast %cst_174 : f32 to vector<4x16xf32>
    %735 = arith.addf %734, %733 : vector<4x16xf32>
    %736 = arith.divf %734, %735 : vector<4x16xf32>
    %737 = arith.mulf %728, %707 : vector<4x16xf32>
    %738 = arith.mulf %722, %730 : vector<4x16xf32>
    %739 = arith.addf %737, %738 : vector<4x16xf32>
    %740 = math.tanh %739 : vector<4x16xf32>
    %741 = arith.mulf %736, %740 : vector<4x16xf32>
    %c1_175 = arith.constant 1 : index
    %c0_176 = arith.constant 0 : index
    %c0_177 = arith.constant 0 : index
    %742 = vector.load %arg1[%c1_175, %c0_176, %c0_177] : memref<8x4x1xf32, #tpu.memory_space<vmem>>, vector<1x4x1xf32>
    %743 = vector.shape_cast %742 : vector<1x4x1xf32> to vector<4x1xf32>
    %744 = vector.broadcast %743 : vector<4x1xf32> to vector<4x16xf32>
    %745 = arith.mulf %744, %741 : vector<4x16xf32>
    %cst_178 = arith.constant 1.000000e+00 : f32
    %746 = vector.broadcast %cst_178 : f32 to vector<4x1xf32>
    %747 = arith.subf %746, %743 : vector<4x1xf32>
    %748 = vector.broadcast %747 : vector<4x1xf32> to vector<4x16xf32>
    %749 = arith.mulf %748, %700 : vector<4x16xf32>
    %750 = arith.addf %745, %749 : vector<4x16xf32>
    %751 = vector.broadcast %743 : vector<4x1xf32> to vector<4x16xf32>
    %752 = arith.mulf %751, %739 : vector<4x16xf32>
    %cst_179 = arith.constant 1.000000e+00 : f32
    %753 = vector.broadcast %cst_179 : f32 to vector<4x1xf32>
    %754 = arith.subf %753, %743 : vector<4x1xf32>
    %755 = vector.broadcast %754 : vector<4x1xf32> to vector<4x16xf32>
    %756 = arith.mulf %755, %707 : vector<4x16xf32>
    %757 = arith.addf %752, %756 : vector<4x16xf32>
    %758 = vector.broadcast %743 : vector<4x1xf32> to vector<4x16xf32>
    %759 = arith.mulf %758, %741 : vector<4x16xf32>
    %c1_180 = arith.constant 1 : index
    %c0_181 = arith.constant 0 : index
    %c16_182 = arith.constant 16 : index
    %760 = vector.load %arg28[%c1_180, %c0_181, %c16_182] : memref<8x4x32xf32, #tpu.memory_space<vmem>>, vector<1x4x16xf32>
    %761 = vector.shape_cast %760 : vector<1x4x16xf32> to vector<4x16xf32>
    %762 = vector.shape_cast %759 : vector<4x16xf32> to vector<1x4x16xf32>
    tpu.vector_store %arg28[%c1_180, %c0_181, %c16_182], %762 {strides = array<i32>} : memref<8x4x32xf32, #tpu.memory_space<vmem>>, vector<1x4x16xf32>,
    %763 = vector.extract_strided_slice %9 {offsets = [0, 0, 0], sizes = [1, 4, 64], strides = [1, 1, 1]} : vector<8x4x64xf32> to vector<1x4x64xf32>
    %764 = vector.shape_cast %763 : vector<1x4x64xf32> to vector<4x64xf32>
    %cst_183 = arith.constant dense<0.000000e+00> : vector<4x64xf32>
    %765 = tpu.matmul %750, %12, %cst_183 {dimension_numbers = #tpu.dot_dimension_numbers<[1], [0], [0], [1], [0, 0, 1, 1], [], []>} : vector<4x16xf32>, vector<16x64xf32>, vector<4x64xf32> -> vector<4x64xf32>
    %766 = arith.addf %764, %765 : vector<4x64xf32>
    %767 = vector.extract_strided_slice %766 {offsets = [0, 0], sizes = [4, 16], strides = [1, 1]} : vector<4x64xf32> to vector<4x16xf32>
    %768 = arith.negf %767 : vector<4x16xf32>
    %769 = math.exp %768 : vector<4x16xf32>
    %cst_184 = arith.constant 1.000000e+00 : f32
    %770 = vector.broadcast %cst_184 : f32 to vector<4x16xf32>
    %771 = arith.addf %770, %769 : vector<4x16xf32>
    %772 = arith.divf %770, %771 : vector<4x16xf32>
    %773 = vector.extract_strided_slice %766 {offsets = [0, 16], sizes = [4, 16], strides = [1, 1]} : vector<4x64xf32> to vector<4x16xf32>
    %774 = arith.negf %773 : vector<4x16xf32>
    %775 = math.exp %774 : vector<4x16xf32>
    %cst_185 = arith.constant 1.000000e+00 : f32
    %776 = vector.broadcast %cst_185 : f32 to vector<4x16xf32>
    %777 = arith.addf %776, %775 : vector<4x16xf32>
    %778 = arith.divf %776, %777 : vector<4x16xf32>
    %779 = vector.extract_strided_slice %766 {offsets = [0, 32], sizes = [4, 16], strides = [1, 1]} : vector<4x64xf32> to vector<4x16xf32>
    %780 = math.tanh %779 : vector<4x16xf32>
    %781 = vector.extract_strided_slice %766 {offsets = [0, 48], sizes = [4, 16], strides = [1, 1]} : vector<4x64xf32> to vector<4x16xf32>
    %782 = arith.negf %781 : vector<4x16xf32>
    %783 = math.exp %782 : vector<4x16xf32>
    %cst_186 = arith.constant 1.000000e+00 : f32
    %784 = vector.broadcast %cst_186 : f32 to vector<4x16xf32>
    %785 = arith.addf %784, %783 : vector<4x16xf32>
    %786 = arith.divf %784, %785 : vector<4x16xf32>
    %787 = arith.mulf %778, %757 : vector<4x16xf32>
    %788 = arith.mulf %772, %780 : vector<4x16xf32>
    %789 = arith.addf %787, %788 : vector<4x16xf32>
    %790 = math.tanh %789 : vector<4x16xf32>
    %791 = arith.mulf %786, %790 : vector<4x16xf32>
    %c0_187 = arith.constant 0 : index
    %c0_188 = arith.constant 0 : index
    %c0_189 = arith.constant 0 : index
    %792 = vector.load %arg1[%c0_187, %c0_188, %c0_189] : memref<8x4x1xf32, #tpu.memory_space<vmem>>, vector<1x4x1xf32>
    %793 = vector.shape_cast %792 : vector<1x4x1xf32> to vector<4x1xf32>
    %794 = vector.broadcast %793 : vector<4x1xf32> to vector<4x16xf32>
    %795 = arith.mulf %794, %791 : vector<4x16xf32>
    %cst_190 = arith.constant 1.000000e+00 : f32
    %796 = vector.broadcast %cst_190 : f32 to vector<4x1xf32>
    %797 = arith.subf %796, %793 : vector<4x1xf32>
    %798 = vector.broadcast %797 : vector<4x1xf32> to vector<4x16xf32>
    %799 = arith.mulf %798, %750 : vector<4x16xf32>
    %800 = arith.addf %795, %799 : vector<4x16xf32>
    %801 = vector.broadcast %793 : vector<4x1xf32> to vector<4x16xf32>
    %802 = arith.mulf %801, %789 : vector<4x16xf32>
    %cst_191 = arith.constant 1.000000e+00 : f32
    %803 = vector.broadcast %cst_191 : f32 to vector<4x1xf32>
    %804 = arith.subf %803, %793 : vector<4x1xf32>
    %805 = vector.broadcast %804 : vector<4x1xf32> to vector<4x16xf32>
    %806 = arith.mulf %805, %757 : vector<4x16xf32>
    %807 = arith.addf %802, %806 : vector<4x16xf32>
    %808 = vector.broadcast %793 : vector<4x1xf32> to vector<4x16xf32>
    %809 = arith.mulf %808, %791 : vector<4x16xf32>
    %c0_192 = arith.constant 0 : index
    %c0_193 = arith.constant 0 : index
    %c16_194 = arith.constant 16 : index
    %810 = vector.load %arg28[%c0_192, %c0_193, %c16_194] : memref<8x4x32xf32, #tpu.memory_space<vmem>>, vector<1x4x16xf32>
    %811 = vector.shape_cast %810 : vector<1x4x16xf32> to vector<4x16xf32>
    %812 = vector.shape_cast %809 : vector<4x16xf32> to vector<1x4x16xf32>
    tpu.vector_store %arg28[%c0_192, %c0_193, %c16_194], %812 {strides = array<i32>} : memref<8x4x32xf32, #tpu.memory_space<vmem>>, vector<1x4x16xf32>,
    %c0_195 = arith.constant 0 : index
    %c0_196 = arith.constant 0 : index
    %813 = vector.load %arg9[%c0_195, %c0_196] : memref<16x32xf32, #tpu.memory_space<vmem>>, vector<16x32xf32>
    %cst_197 = arith.constant dense<0.000000e+00> : vector<4x32xf32>
    %814 = tpu.matmul %400, %813, %cst_197 {dimension_numbers = #tpu.dot_dimension_numbers<[1], [0], [0], [1], [0, 0, 1, 1], [], []>} : vector<4x16xf32>, vector<16x32xf32>, vector<4x32xf32> -> vector<4x32xf32>
    %c0_198 = arith.constant 0 : index
    %c0_199 = arith.constant 0 : index
    %815 = vector.load %arg10[%c0_198, %c0_199] : memref<16x32xf32, #tpu.memory_space<vmem>>, vector<16x32xf32>
    %cst_200 = arith.constant dense<0.000000e+00> : vector<4x32xf32>
    %816 = tpu.matmul %800, %815, %cst_200 {dimension_numbers = #tpu.dot_dimension_numbers<[1], [0], [0], [1], [0, 0, 1, 1], [], []>} : vector<4x16xf32>, vector<16x32xf32>, vector<4x32xf32> -> vector<4x32xf32>
    %817 = arith.addf %814, %816 : vector<4x32xf32>
    %c0_201 = arith.constant 0 : index
    %c0_202 = arith.constant 0 : index
    %818 = vector.load %arg11[%c0_201, %c0_202] : memref<1x32xf32, #tpu.memory_space<vmem>>, vector<1x32xf32>
    %819 = vector.broadcast %818 : vector<1x32xf32> to vector<4x32xf32>
    %820 = arith.addf %817, %819 : vector<4x32xf32>
    %821 = math.tanh %820 : vector<4x32xf32>
    %c0_203 = arith.constant 0 : index
    %c0_204 = arith.constant 0 : index
    %822 = vector.load %arg12[%c0_203, %c0_204] : memref<16x32xf32, #tpu.memory_space<vmem>>, vector<16x32xf32>
    %cst_205 = arith.constant dense<0.000000e+00> : vector<4x32xf32>
    %823 = tpu.matmul %407, %822, %cst_205 {dimension_numbers = #tpu.dot_dimension_numbers<[1], [0], [0], [1], [0, 0, 1, 1], [], []>} : vector<4x16xf32>, vector<16x32xf32>, vector<4x32xf32> -> vector<4x32xf32>
    %c0_206 = arith.constant 0 : index
    %c0_207 = arith.constant 0 : index
    %824 = vector.load %arg13[%c0_206, %c0_207] : memref<16x32xf32, #tpu.memory_space<vmem>>, vector<16x32xf32>
    %cst_208 = arith.constant dense<0.000000e+00> : vector<4x32xf32>
    %825 = tpu.matmul %807, %824, %cst_208 {dimension_numbers = #tpu.dot_dimension_numbers<[1], [0], [0], [1], [0, 0, 1, 1], [], []>} : vector<4x16xf32>, vector<16x32xf32>, vector<4x32xf32> -> vector<4x32xf32>
    %826 = arith.addf %823, %825 : vector<4x32xf32>
    %c0_209 = arith.constant 0 : index
    %c0_210 = arith.constant 0 : index
    %827 = vector.load %arg14[%c0_209, %c0_210] : memref<1x32xf32, #tpu.memory_space<vmem>>, vector<1x32xf32>
    %828 = vector.broadcast %827 : vector<1x32xf32> to vector<4x32xf32>
    %829 = arith.addf %826, %828 : vector<4x32xf32>
    %830 = math.tanh %829 : vector<4x32xf32>
    %c0_211 = arith.constant 0 : index
    %c0_212 = arith.constant 0 : index
    %c0_213 = arith.constant 0 : index
    %831 = vector.load %arg28[%c0_211, %c0_212, %c0_213] : memref<8x4x32xf32, #tpu.memory_space<vmem>>, vector<8x4x32xf32>
    %c0_214 = arith.constant 0 : index
    %c0_215 = arith.constant 0 : index
    %832 = vector.load %arg2[%c0_214, %c0_215] : memref<8x4xf32, #tpu.memory_space<vmem>>, vector<8x4xf32>
    %833 = vector.shape_cast %831 : vector<8x4x32xf32> to vector<32x32xf32>
    %c0_216 = arith.constant 0 : index
    %c0_217 = arith.constant 0 : index
    %834 = vector.load %arg16[%c0_216, %c0_217] : memref<32x32xf32, #tpu.memory_space<vmem>>, vector<32x32xf32>
    %cst_218 = arith.constant dense<0.000000e+00> : vector<32x32xf32>
    %835 = tpu.matmul %833, %834, %cst_218 {dimension_numbers = #tpu.dot_dimension_numbers<[1], [0], [0], [1], [0, 0, 1, 1], [], []>} : vector<32x32xf32>, vector<32x32xf32>, vector<32x32xf32> -> vector<32x32xf32>
    %836 = vector.shape_cast %835 : vector<32x32xf32> to vector<8x4x32xf32>
    %c0_219 = arith.constant 0 : index
    %c0_220 = arith.constant 0 : index
    %837 = vector.load %arg17[%c0_219, %c0_220] : memref<1x32xf32, #tpu.memory_space<vmem>>, vector<1x32xf32>
    %838 = vector.shape_cast %837 : vector<1x32xf32> to vector<1x1x32xf32>
    %839 = vector.broadcast %838 : vector<1x1x32xf32> to vector<8x4x32xf32>
    %840 = arith.addf %836, %839 : vector<8x4x32xf32>
    %c0_221 = arith.constant 0 : index
    %c0_222 = arith.constant 0 : index
    %c0_223 = arith.constant 0 : index
    %841 = vector.load %arg3[%c0_221, %c0_222, %c0_223] : memref<6x4x16xf32, #tpu.memory_space<vmem>>, vector<6x4x16xf32>
    %842 = vector.shape_cast %841 : vector<6x4x16xf32> to vector<24x16xf32>
    %c0_224 = arith.constant 0 : index
    %c0_225 = arith.constant 0 : index
    %843 = vector.load %arg19[%c0_224, %c0_225] : memref<16x128xf32, #tpu.memory_space<vmem>>, vector<16x128xf32>
    %cst_226 = arith.constant dense<0.000000e+00> : vector<24x128xf32>
    %844 = tpu.matmul %842, %843, %cst_226 {dimension_numbers = #tpu.dot_dimension_numbers<[1], [0], [0], [1], [0, 0, 1, 1], [], []>} : vector<24x16xf32>, vector<16x128xf32>, vector<24x128xf32> -> vector<24x128xf32>
    %845 = vector.shape_cast %844 : vector<24x128xf32> to vector<6x4x128xf32>
    %c0_227 = arith.constant 0 : index
    %c0_228 = arith.constant 0 : index
    %846 = vector.load %arg25[%c0_227, %c0_228] : memref<16x16xf32, #tpu.memory_space<vmem>>, vector<16x16xf32>
    %cst_229 = arith.constant dense<0.000000e+00> : vector<24x16xf32>
    %847 = tpu.matmul %842, %846, %cst_229 {dimension_numbers = #tpu.dot_dimension_numbers<[1], [0], [0], [1], [0, 0, 1, 1], [], []>} : vector<24x16xf32>, vector<16x16xf32>, vector<24x16xf32> -> vector<24x16xf32>
    %848 = vector.shape_cast %847 : vector<24x16xf32> to vector<6x4x16xf32>
    %c0_230 = arith.constant 0 : index
    %c0_231 = arith.constant 0 : index
    %849 = vector.load %arg4[%c0_230, %c0_231] : memref<16x16xf32, #tpu.memory_space<vmem>>, vector<16x16xf32>
    %c0_232 = arith.constant 0 : index
    %c0_233 = arith.constant 0 : index
    %850 = vector.load %arg19[%c0_232, %c0_233] : memref<16x128xf32, #tpu.memory_space<vmem>>, vector<16x128xf32>
    %cst_234 = arith.constant dense<0.000000e+00> : vector<16x128xf32>
    %851 = tpu.matmul %849, %850, %cst_234 {dimension_numbers = #tpu.dot_dimension_numbers<[1], [0], [0], [1], [0, 0, 1, 1], [], []>} : vector<16x16xf32>, vector<16x128xf32>, vector<16x128xf32> -> vector<16x128xf32>
    %c0_235 = arith.constant 0 : index
    %c0_236 = arith.constant 0 : index
    %852 = vector.load %arg4[%c0_235, %c0_236] : memref<16x16xf32, #tpu.memory_space<vmem>>, vector<16x16xf32>
    %c0_237 = arith.constant 0 : index
    %c0_238 = arith.constant 0 : index
    %853 = vector.load %arg25[%c0_237, %c0_238] : memref<16x16xf32, #tpu.memory_space<vmem>>, vector<16x16xf32>
    %cst_239 = arith.constant dense<0.000000e+00> : vector<16x16xf32>
    %854 = tpu.matmul %852, %853, %cst_239 {dimension_numbers = #tpu.dot_dimension_numbers<[1], [0], [0], [1], [0, 0, 1, 1], [], []>} : vector<16x16xf32>, vector<16x16xf32>, vector<16x16xf32> -> vector<16x16xf32>
    %cst_240 = arith.constant 0.000000e+00 : f32
    %855 = vector.broadcast %cst_240 : f32 to vector<6x4x16xf32>
    %c0_241 = arith.constant 0 : index
    %c0_242 = arith.constant 0 : index
    %c0_243 = arith.constant 0 : index
    %856 = vector.load %arg27[%c0_241, %c0_242, %c0_243] : memref<6x4x16xf32, #tpu.memory_space<vmem>>, vector<6x4x16xf32>
    tpu.vector_store %arg27[%c0_241, %c0_242, %c0_243], %855 {strides = array<i32>} : memref<6x4x16xf32, #tpu.memory_space<vmem>>, vector<6x4x16xf32>,
    %857 = vector.extract_strided_slice %845 {offsets = [0, 0, 0], sizes = [1, 4, 128], strides = [1, 1, 1]} : vector<6x4x128xf32> to vector<1x4x128xf32>
    %858 = vector.shape_cast %857 : vector<1x4x128xf32> to vector<4x128xf32>
    %859 = vector.extract_strided_slice %848 {offsets = [0, 0, 0], sizes = [1, 4, 16], strides = [1, 1, 1]} : vector<6x4x16xf32> to vector<1x4x16xf32>
    %860 = vector.shape_cast %859 : vector<1x4x16xf32> to vector<4x16xf32>
    %c0_244 = arith.constant 0 : index
    %c0_245 = arith.constant 0 : index
    %861 = vector.load %arg15[%c0_244, %c0_245] : memref<32x32xf32, #tpu.memory_space<vmem>>, vector<32x32xf32>
    %cst_246 = arith.constant dense<0.000000e+00> : vector<4x32xf32>
    %862 = tpu.matmul %821, %861, %cst_246 {dimension_numbers = #tpu.dot_dimension_numbers<[1], [0], [0], [1], [0, 0, 1, 1], [], []>} : vector<4x32xf32>, vector<32x32xf32>, vector<4x32xf32> -> vector<4x32xf32>
    %863 = vector.shape_cast %862 : vector<4x32xf32> to vector<1x4x32xf32>
    %864 = vector.broadcast %863 : vector<1x4x32xf32> to vector<8x4x32xf32>
    %865 = arith.addf %864, %840 : vector<8x4x32xf32>
    %866 = math.tanh %865 : vector<8x4x32xf32>
    %c0_247 = arith.constant 0 : index
    %c0_248 = arith.constant 0 : index
    %867 = vector.load %arg18[%c0_247, %c0_248] : memref<1x32xf32, #tpu.memory_space<vmem>>, vector<1x32xf32>
    %868 = vector.shape_cast %867 : vector<1x32xf32> to vector<1x1x32xf32>
    %869 = vector.broadcast %868 : vector<1x1x32xf32> to vector<8x4x32xf32>
    %870 = arith.mulf %866, %869 : vector<8x4x32xf32>
    %cst_249 = arith.constant dense<0.000000e+00> : vector<8x4xf32>
    %871 = vector.multi_reduction <add>, %870, %cst_249 [2] : vector<8x4x32xf32> to vector<8x4xf32>
    %cst_250 = arith.constant 0.000000e+00 : f32
    %872 = vector.broadcast %cst_250 : f32 to vector<8x4xf32>
    %873 = arith.cmpf ogt, %832, %872 : vector<8x4xf32>
    %cst_251 = arith.constant -1.000000e+10 : f32
    %874 = vector.broadcast %cst_251 : f32 to vector<8x4xf32>
    %875 = arith.select %873, %871, %874 : vector<8x4xi1>, vector<8x4xf32>
    %cst_252 = arith.constant dense<0xFF800000> : vector<4xf32>
    %876 = vector.multi_reduction <maximumf>, %875, %cst_252 [0] : vector<8x4xf32> to vector<4xf32>
    %877 = vector.shape_cast %876 : vector<4xf32> to vector<1x4xf32>
    %878 = vector.broadcast %877 : vector<1x4xf32> to vector<8x4xf32>
    %879 = arith.subf %875, %878 : vector<8x4xf32>
    %880 = math.exp %879 : vector<8x4xf32>
    %cst_253 = arith.constant dense<0.000000e+00> : vector<4xf32>
    %881 = vector.multi_reduction <add>, %880, %cst_253 [0] : vector<8x4xf32> to vector<4xf32>
    %882 = vector.shape_cast %881 : vector<4xf32> to vector<1x4xf32>
    %883 = tpu.reciprocal %882 {approx = true} : vector<1x4xf32> -> vector<1x4xf32>
    %884 = vector.broadcast %883 : vector<1x4xf32> to vector<8x4xf32>
    %885 = arith.mulf %880, %884 : vector<8x4xf32>
    %886 = vector.shape_cast %885 : vector<8x4xf32> to vector<8x4x1xf32>
    %887 = vector.broadcast %886 : vector<8x4x1xf32> to vector<8x4x32xf32>
    %888 = arith.mulf %887, %831 : vector<8x4x32xf32>
    %cst_254 = arith.constant dense<0.000000e+00> : vector<4x32xf32>
    %889 = vector.multi_reduction <add>, %888, %cst_254 [0] : vector<8x4x32xf32> to vector<4x32xf32>
    %c0_255 = arith.constant 0 : index
    %c0_256 = arith.constant 0 : index
    %890 = vector.load %arg20[%c0_255, %c0_256] : memref<32x128xf32, #tpu.memory_space<vmem>>, vector<32x128xf32>
    %cst_257 = arith.constant dense<0.000000e+00> : vector<4x128xf32>
    %891 = tpu.matmul %889, %890, %cst_257 {dimension_numbers = #tpu.dot_dimension_numbers<[1], [0], [0], [1], [0, 0, 1, 1], [], []>} : vector<4x32xf32>, vector<32x128xf32>, vector<4x128xf32> -> vector<4x128xf32>
    %892 = arith.addf %858, %891 : vector<4x128xf32>
    %c0_258 = arith.constant 0 : index
    %c0_259 = arith.constant 0 : index
    %893 = vector.load %arg21[%c0_258, %c0_259] : memref<32x128xf32, #tpu.memory_space<vmem>>, vector<32x128xf32>
    %cst_260 = arith.constant dense<0.000000e+00> : vector<4x128xf32>
    %894 = tpu.matmul %821, %893, %cst_260 {dimension_numbers = #tpu.dot_dimension_numbers<[1], [0], [0], [1], [0, 0, 1, 1], [], []>} : vector<4x32xf32>, vector<32x128xf32>, vector<4x128xf32> -> vector<4x128xf32>
    %895 = arith.addf %892, %894 : vector<4x128xf32>
    %c0_261 = arith.constant 0 : index
    %c0_262 = arith.constant 0 : index
    %896 = vector.load %arg22[%c0_261, %c0_262] : memref<1x128xf32, #tpu.memory_space<vmem>>, vector<1x128xf32>
    %897 = vector.broadcast %896 : vector<1x128xf32> to vector<4x128xf32>
    %898 = arith.addf %895, %897 : vector<4x128xf32>
    %899 = vector.extract_strided_slice %898 {offsets = [0, 0], sizes = [4, 32], strides = [1, 1]} : vector<4x128xf32> to vector<4x32xf32>
    %900 = arith.negf %899 : vector<4x32xf32>
    %901 = math.exp %900 : vector<4x32xf32>
    %cst_263 = arith.constant 1.000000e+00 : f32
    %902 = vector.broadcast %cst_263 : f32 to vector<4x32xf32>
    %903 = arith.addf %902, %901 : vector<4x32xf32>
    %904 = arith.divf %902, %903 : vector<4x32xf32>
    %905 = vector.extract_strided_slice %898 {offsets = [0, 32], sizes = [4, 32], strides = [1, 1]} : vector<4x128xf32> to vector<4x32xf32>
    %906 = arith.negf %905 : vector<4x32xf32>
    %907 = math.exp %906 : vector<4x32xf32>
    %cst_264 = arith.constant 1.000000e+00 : f32
    %908 = vector.broadcast %cst_264 : f32 to vector<4x32xf32>
    %909 = arith.addf %908, %907 : vector<4x32xf32>
    %910 = arith.divf %908, %909 : vector<4x32xf32>
    %911 = vector.extract_strided_slice %898 {offsets = [0, 64], sizes = [4, 32], strides = [1, 1]} : vector<4x128xf32> to vector<4x32xf32>
    %912 = math.tanh %911 : vector<4x32xf32>
    %913 = vector.extract_strided_slice %898 {offsets = [0, 96], sizes = [4, 32], strides = [1, 1]} : vector<4x128xf32> to vector<4x32xf32>
    %914 = arith.negf %913 : vector<4x32xf32>
    %915 = math.exp %914 : vector<4x32xf32>
    %cst_265 = arith.constant 1.000000e+00 : f32
    %916 = vector.broadcast %cst_265 : f32 to vector<4x32xf32>
    %917 = arith.addf %916, %915 : vector<4x32xf32>
    %918 = arith.divf %916, %917 : vector<4x32xf32>
    %919 = arith.mulf %910, %830 : vector<4x32xf32>
    %920 = arith.mulf %904, %912 : vector<4x32xf32>
    %921 = arith.addf %919, %920 : vector<4x32xf32>
    %922 = math.tanh %921 : vector<4x32xf32>
    %923 = arith.mulf %918, %922 : vector<4x32xf32>
    %c0_266 = arith.constant 0 : index
    %c0_267 = arith.constant 0 : index
    %924 = vector.load %arg23[%c0_266, %c0_267] : memref<32x16xf32, #tpu.memory_space<vmem>>, vector<32x16xf32>
    %cst_268 = arith.constant dense<0.000000e+00> : vector<4x16xf32>
    %925 = tpu.matmul %923, %924, %cst_268 {dimension_numbers = #tpu.dot_dimension_numbers<[1], [0], [0], [1], [0, 0, 1, 1], [], []>} : vector<4x32xf32>, vector<32x16xf32>, vector<4x16xf32> -> vector<4x16xf32>
    %c0_269 = arith.constant 0 : index
    %c0_270 = arith.constant 0 : index
    %926 = vector.load %arg24[%c0_269, %c0_270] : memref<32x16xf32, #tpu.memory_space<vmem>>, vector<32x16xf32>
    %cst_271 = arith.constant dense<0.000000e+00> : vector<4x16xf32>
    %927 = tpu.matmul %889, %926, %cst_271 {dimension_numbers = #tpu.dot_dimension_numbers<[1], [0], [0], [1], [0, 0, 1, 1], [], []>} : vector<4x32xf32>, vector<32x16xf32>, vector<4x16xf32> -> vector<4x16xf32>
    %928 = arith.addf %925, %927 : vector<4x16xf32>
    %929 = arith.addf %928, %860 : vector<4x16xf32>
    %c0_272 = arith.constant 0 : index
    %c0_273 = arith.constant 0 : index
    %930 = vector.load %arg26[%c0_272, %c0_273] : memref<1x16xf32, #tpu.memory_space<vmem>>, vector<1x16xf32>
    %931 = vector.broadcast %930 : vector<1x16xf32> to vector<4x16xf32>
    %932 = arith.addf %929, %931 : vector<4x16xf32>
    %c1_274 = arith.constant 1 : index
    %c0_275 = arith.constant 0 : index
    %c0_276 = arith.constant 0 : index
    %933 = vector.load %arg27[%c1_274, %c0_275, %c0_276] : memref<6x4x16xf32, #tpu.memory_space<vmem>>, vector<1x4x16xf32>
    %934 = vector.shape_cast %933 : vector<1x4x16xf32> to vector<4x16xf32>
    %935 = vector.shape_cast %932 : vector<4x16xf32> to vector<1x4x16xf32>
    tpu.vector_store %arg27[%c1_274, %c0_275, %c0_276], %935 {strides = array<i32>} : memref<6x4x16xf32, #tpu.memory_space<vmem>>, vector<1x4x16xf32>,
    %936 = tpu.iota {dimensions = array<i32: 1>} : vector<4x16xi32>
    %cst_277 = arith.constant dense<0xFF800000> : vector<4xf32>
    %937 = vector.multi_reduction <maximumf>, %932, %cst_277 [1] : vector<4x16xf32> to vector<4xf32>
    %938 = vector.shape_cast %937 : vector<4xf32> to vector<4x1xf32>
    %939 = vector.broadcast %938 : vector<4x1xf32> to vector<4x16xf32>
    %940 = arith.cmpf oge, %932, %939 : vector<4x16xf32>
    %c16_i32 = arith.constant 16 : i32
    %941 = vector.broadcast %c16_i32 : i32 to vector<4x16xi32>
    %942 = arith.select %940, %936, %941 : vector<4x16xi1>, vector<4x16xi32>
    %cst_278 = arith.constant dense<2147483647> : vector<4xi32>
    %943 = vector.multi_reduction <minsi>, %942, %cst_278 [1] : vector<4x16xi32> to vector<4xi32>
    %944 = vector.shape_cast %943 : vector<4xi32> to vector<4x1xi32>
    %945 = vector.broadcast %944 : vector<4x1xi32> to vector<4x16xi32>
    %946 = arith.cmpi eq, %936, %945 : vector<4x16xi32>
    %947 = arith.extui %946 : vector<4x16xi1> to vector<4x16xi32>
    %948 = arith.sitofp %947 : vector<4x16xi32> to vector<4x16xf32>
    %cst_279 = arith.constant dense<0.000000e+00> : vector<4x128xf32>
    %949 = tpu.matmul %948, %851, %cst_279 {dimension_numbers = #tpu.dot_dimension_numbers<[1], [0], [0], [1], [0, 0, 1, 1], [], []>} : vector<4x16xf32>, vector<16x128xf32>, vector<4x128xf32> -> vector<4x128xf32>
    %cst_280 = arith.constant dense<0.000000e+00> : vector<4x16xf32>
    %950 = tpu.matmul %948, %854, %cst_280 {dimension_numbers = #tpu.dot_dimension_numbers<[1], [0], [0], [1], [0, 0, 1, 1], [], []>} : vector<4x16xf32>, vector<16x16xf32>, vector<4x16xf32> -> vector<4x16xf32>
    %c0_281 = arith.constant 0 : index
    %c0_282 = arith.constant 0 : index
    %951 = vector.load %arg15[%c0_281, %c0_282] : memref<32x32xf32, #tpu.memory_space<vmem>>, vector<32x32xf32>
    %cst_283 = arith.constant dense<0.000000e+00> : vector<4x32xf32>
    %952 = tpu.matmul %923, %951, %cst_283 {dimension_numbers = #tpu.dot_dimension_numbers<[1], [0], [0], [1], [0, 0, 1, 1], [], []>} : vector<4x32xf32>, vector<32x32xf32>, vector<4x32xf32> -> vector<4x32xf32>
    %953 = vector.shape_cast %952 : vector<4x32xf32> to vector<1x4x32xf32>
    %954 = vector.broadcast %953 : vector<1x4x32xf32> to vector<8x4x32xf32>
    %955 = arith.addf %954, %840 : vector<8x4x32xf32>
    %956 = math.tanh %955 : vector<8x4x32xf32>
    %c0_284 = arith.constant 0 : index
    %c0_285 = arith.constant 0 : index
    %957 = vector.load %arg18[%c0_284, %c0_285] : memref<1x32xf32, #tpu.memory_space<vmem>>, vector<1x32xf32>
    %958 = vector.shape_cast %957 : vector<1x32xf32> to vector<1x1x32xf32>
    %959 = vector.broadcast %958 : vector<1x1x32xf32> to vector<8x4x32xf32>
    %960 = arith.mulf %956, %959 : vector<8x4x32xf32>
    %cst_286 = arith.constant dense<0.000000e+00> : vector<8x4xf32>
    %961 = vector.multi_reduction <add>, %960, %cst_286 [2] : vector<8x4x32xf32> to vector<8x4xf32>
    %cst_287 = arith.constant 0.000000e+00 : f32
    %962 = vector.broadcast %cst_287 : f32 to vector<8x4xf32>
    %963 = arith.cmpf ogt, %832, %962 : vector<8x4xf32>
    %cst_288 = arith.constant -1.000000e+10 : f32
    %964 = vector.broadcast %cst_288 : f32 to vector<8x4xf32>
    %965 = arith.select %963, %961, %964 : vector<8x4xi1>, vector<8x4xf32>
    %cst_289 = arith.constant dense<0xFF800000> : vector<4xf32>
    %966 = vector.multi_reduction <maximumf>, %965, %cst_289 [0] : vector<8x4xf32> to vector<4xf32>
    %967 = vector.shape_cast %966 : vector<4xf32> to vector<1x4xf32>
    %968 = vector.broadcast %967 : vector<1x4xf32> to vector<8x4xf32>
    %969 = arith.subf %965, %968 : vector<8x4xf32>
    %970 = math.exp %969 : vector<8x4xf32>
    %cst_290 = arith.constant dense<0.000000e+00> : vector<4xf32>
    %971 = vector.multi_reduction <add>, %970, %cst_290 [0] : vector<8x4xf32> to vector<4xf32>
    %972 = vector.shape_cast %971 : vector<4xf32> to vector<1x4xf32>
    %973 = tpu.reciprocal %972 {approx = true} : vector<1x4xf32> -> vector<1x4xf32>
    %974 = vector.broadcast %973 : vector<1x4xf32> to vector<8x4xf32>
    %975 = arith.mulf %970, %974 : vector<8x4xf32>
    %976 = vector.shape_cast %975 : vector<8x4xf32> to vector<8x4x1xf32>
    %977 = vector.broadcast %976 : vector<8x4x1xf32> to vector<8x4x32xf32>
    %978 = arith.mulf %977, %831 : vector<8x4x32xf32>
    %cst_291 = arith.constant dense<0.000000e+00> : vector<4x32xf32>
    %979 = vector.multi_reduction <add>, %978, %cst_291 [0] : vector<8x4x32xf32> to vector<4x32xf32>
    %c0_292 = arith.constant 0 : index
    %c0_293 = arith.constant 0 : index
    %980 = vector.load %arg20[%c0_292, %c0_293] : memref<32x128xf32, #tpu.memory_space<vmem>>, vector<32x128xf32>
    %cst_294 = arith.constant dense<0.000000e+00> : vector<4x128xf32>
    %981 = tpu.matmul %979, %980, %cst_294 {dimension_numbers = #tpu.dot_dimension_numbers<[1], [0], [0], [1], [0, 0, 1, 1], [], []>} : vector<4x32xf32>, vector<32x128xf32>, vector<4x128xf32> -> vector<4x128xf32>
    %982 = arith.addf %949, %981 : vector<4x128xf32>
    %c0_295 = arith.constant 0 : index
    %c0_296 = arith.constant 0 : index
    %983 = vector.load %arg21[%c0_295, %c0_296] : memref<32x128xf32, #tpu.memory_space<vmem>>, vector<32x128xf32>
    %cst_297 = arith.constant dense<0.000000e+00> : vector<4x128xf32>
    %984 = tpu.matmul %923, %983, %cst_297 {dimension_numbers = #tpu.dot_dimension_numbers<[1], [0], [0], [1], [0, 0, 1, 1], [], []>} : vector<4x32xf32>, vector<32x128xf32>, vector<4x128xf32> -> vector<4x128xf32>
    %985 = arith.addf %982, %984 : vector<4x128xf32>
    %c0_298 = arith.constant 0 : index
    %c0_299 = arith.constant 0 : index
    %986 = vector.load %arg22[%c0_298, %c0_299] : memref<1x128xf32, #tpu.memory_space<vmem>>, vector<1x128xf32>
    %987 = vector.broadcast %986 : vector<1x128xf32> to vector<4x128xf32>
    %988 = arith.addf %985, %987 : vector<4x128xf32>
    %989 = vector.extract_strided_slice %988 {offsets = [0, 0], sizes = [4, 32], strides = [1, 1]} : vector<4x128xf32> to vector<4x32xf32>
    %990 = arith.negf %989 : vector<4x32xf32>
    %991 = math.exp %990 : vector<4x32xf32>
    %cst_300 = arith.constant 1.000000e+00 : f32
    %992 = vector.broadcast %cst_300 : f32 to vector<4x32xf32>
    %993 = arith.addf %992, %991 : vector<4x32xf32>
    %994 = arith.divf %992, %993 : vector<4x32xf32>
    %995 = vector.extract_strided_slice %988 {offsets = [0, 32], sizes = [4, 32], strides = [1, 1]} : vector<4x128xf32> to vector<4x32xf32>
    %996 = arith.negf %995 : vector<4x32xf32>
    %997 = math.exp %996 : vector<4x32xf32>
    %cst_301 = arith.constant 1.000000e+00 : f32
    %998 = vector.broadcast %cst_301 : f32 to vector<4x32xf32>
    %999 = arith.addf %998, %997 : vector<4x32xf32>
    %1000 = arith.divf %998, %999 : vector<4x32xf32>
    %1001 = vector.extract_strided_slice %988 {offsets = [0, 64], sizes = [4, 32], strides = [1, 1]} : vector<4x128xf32> to vector<4x32xf32>
    %1002 = math.tanh %1001 : vector<4x32xf32>
    %1003 = vector.extract_strided_slice %988 {offsets = [0, 96], sizes = [4, 32], strides = [1, 1]} : vector<4x128xf32> to vector<4x32xf32>
    %1004 = arith.negf %1003 : vector<4x32xf32>
    %1005 = math.exp %1004 : vector<4x32xf32>
    %cst_302 = arith.constant 1.000000e+00 : f32
    %1006 = vector.broadcast %cst_302 : f32 to vector<4x32xf32>
    %1007 = arith.addf %1006, %1005 : vector<4x32xf32>
    %1008 = arith.divf %1006, %1007 : vector<4x32xf32>
    %1009 = arith.mulf %1000, %921 : vector<4x32xf32>
    %1010 = arith.mulf %994, %1002 : vector<4x32xf32>
    %1011 = arith.addf %1009, %1010 : vector<4x32xf32>
    %1012 = math.tanh %1011 : vector<4x32xf32>
    %1013 = arith.mulf %1008, %1012 : vector<4x32xf32>
    %c0_303 = arith.constant 0 : index
    %c0_304 = arith.constant 0 : index
    %1014 = vector.load %arg23[%c0_303, %c0_304] : memref<32x16xf32, #tpu.memory_space<vmem>>, vector<32x16xf32>
    %cst_305 = arith.constant dense<0.000000e+00> : vector<4x16xf32>
    %1015 = tpu.matmul %1013, %1014, %cst_305 {dimension_numbers = #tpu.dot_dimension_numbers<[1], [0], [0], [1], [0, 0, 1, 1], [], []>} : vector<4x32xf32>, vector<32x16xf32>, vector<4x16xf32> -> vector<4x16xf32>
    %c0_306 = arith.constant 0 : index
    %c0_307 = arith.constant 0 : index
    %1016 = vector.load %arg24[%c0_306, %c0_307] : memref<32x16xf32, #tpu.memory_space<vmem>>, vector<32x16xf32>
    %cst_308 = arith.constant dense<0.000000e+00> : vector<4x16xf32>
    %1017 = tpu.matmul %979, %1016, %cst_308 {dimension_numbers = #tpu.dot_dimension_numbers<[1], [0], [0], [1], [0, 0, 1, 1], [], []>} : vector<4x32xf32>, vector<32x16xf32>, vector<4x16xf32> -> vector<4x16xf32>
    %1018 = arith.addf %1015, %1017 : vector<4x16xf32>
    %1019 = arith.addf %1018, %950 : vector<4x16xf32>
    %c0_309 = arith.constant 0 : index
    %c0_310 = arith.constant 0 : index
    %1020 = vector.load %arg26[%c0_309, %c0_310] : memref<1x16xf32, #tpu.memory_space<vmem>>, vector<1x16xf32>
    %1021 = vector.broadcast %1020 : vector<1x16xf32> to vector<4x16xf32>
    %1022 = arith.addf %1019, %1021 : vector<4x16xf32>
    %c2_311 = arith.constant 2 : index
    %c0_312 = arith.constant 0 : index
    %c0_313 = arith.constant 0 : index
    %1023 = vector.load %arg27[%c2_311, %c0_312, %c0_313] : memref<6x4x16xf32, #tpu.memory_space<vmem>>, vector<1x4x16xf32>
    %1024 = vector.shape_cast %1023 : vector<1x4x16xf32> to vector<4x16xf32>
    %1025 = vector.shape_cast %1022 : vector<4x16xf32> to vector<1x4x16xf32>
    tpu.vector_store %arg27[%c2_311, %c0_312, %c0_313], %1025 {strides = array<i32>} : memref<6x4x16xf32, #tpu.memory_space<vmem>>, vector<1x4x16xf32>,
    %1026 = tpu.iota {dimensions = array<i32: 1>} : vector<4x16xi32>
    %cst_314 = arith.constant dense<0xFF800000> : vector<4xf32>
    %1027 = vector.multi_reduction <maximumf>, %1022, %cst_314 [1] : vector<4x16xf32> to vector<4xf32>
    %1028 = vector.shape_cast %1027 : vector<4xf32> to vector<4x1xf32>
    %1029 = vector.broadcast %1028 : vector<4x1xf32> to vector<4x16xf32>
    %1030 = arith.cmpf oge, %1022, %1029 : vector<4x16xf32>
    %c16_i32_315 = arith.constant 16 : i32
    %1031 = vector.broadcast %c16_i32_315 : i32 to vector<4x16xi32>
    %1032 = arith.select %1030, %1026, %1031 : vector<4x16xi1>, vector<4x16xi32>
    %cst_316 = arith.constant dense<2147483647> : vector<4xi32>
    %1033 = vector.multi_reduction <minsi>, %1032, %cst_316 [1] : vector<4x16xi32> to vector<4xi32>
    %1034 = vector.shape_cast %1033 : vector<4xi32> to vector<4x1xi32>
    %1035 = vector.broadcast %1034 : vector<4x1xi32> to vector<4x16xi32>
    %1036 = arith.cmpi eq, %1026, %1035 : vector<4x16xi32>
    %1037 = arith.extui %1036 : vector<4x16xi1> to vector<4x16xi32>
    %1038 = arith.sitofp %1037 : vector<4x16xi32> to vector<4x16xf32>
    %cst_317 = arith.constant dense<0.000000e+00> : vector<4x128xf32>
    %1039 = tpu.matmul %1038, %851, %cst_317 {dimension_numbers = #tpu.dot_dimension_numbers<[1], [0], [0], [1], [0, 0, 1, 1], [], []>} : vector<4x16xf32>, vector<16x128xf32>, vector<4x128xf32> -> vector<4x128xf32>
    %cst_318 = arith.constant dense<0.000000e+00> : vector<4x16xf32>
    %1040 = tpu.matmul %1038, %854, %cst_318 {dimension_numbers = #tpu.dot_dimension_numbers<[1], [0], [0], [1], [0, 0, 1, 1], [], []>} : vector<4x16xf32>, vector<16x16xf32>, vector<4x16xf32> -> vector<4x16xf32>
    %c0_319 = arith.constant 0 : index
    %c0_320 = arith.constant 0 : index
    %1041 = vector.load %arg15[%c0_319, %c0_320] : memref<32x32xf32, #tpu.memory_space<vmem>>, vector<32x32xf32>
    %cst_321 = arith.constant dense<0.000000e+00> : vector<4x32xf32>
    %1042 = tpu.matmul %1013, %1041, %cst_321 {dimension_numbers = #tpu.dot_dimension_numbers<[1], [0], [0], [1], [0, 0, 1, 1], [], []>} : vector<4x32xf32>, vector<32x32xf32>, vector<4x32xf32> -> vector<4x32xf32>
    %1043 = vector.shape_cast %1042 : vector<4x32xf32> to vector<1x4x32xf32>
    %1044 = vector.broadcast %1043 : vector<1x4x32xf32> to vector<8x4x32xf32>
    %1045 = arith.addf %1044, %840 : vector<8x4x32xf32>
    %1046 = math.tanh %1045 : vector<8x4x32xf32>
    %c0_322 = arith.constant 0 : index
    %c0_323 = arith.constant 0 : index
    %1047 = vector.load %arg18[%c0_322, %c0_323] : memref<1x32xf32, #tpu.memory_space<vmem>>, vector<1x32xf32>
    %1048 = vector.shape_cast %1047 : vector<1x32xf32> to vector<1x1x32xf32>
    %1049 = vector.broadcast %1048 : vector<1x1x32xf32> to vector<8x4x32xf32>
    %1050 = arith.mulf %1046, %1049 : vector<8x4x32xf32>
    %cst_324 = arith.constant dense<0.000000e+00> : vector<8x4xf32>
    %1051 = vector.multi_reduction <add>, %1050, %cst_324 [2] : vector<8x4x32xf32> to vector<8x4xf32>
    %cst_325 = arith.constant 0.000000e+00 : f32
    %1052 = vector.broadcast %cst_325 : f32 to vector<8x4xf32>
    %1053 = arith.cmpf ogt, %832, %1052 : vector<8x4xf32>
    %cst_326 = arith.constant -1.000000e+10 : f32
    %1054 = vector.broadcast %cst_326 : f32 to vector<8x4xf32>
    %1055 = arith.select %1053, %1051, %1054 : vector<8x4xi1>, vector<8x4xf32>
    %cst_327 = arith.constant dense<0xFF800000> : vector<4xf32>
    %1056 = vector.multi_reduction <maximumf>, %1055, %cst_327 [0] : vector<8x4xf32> to vector<4xf32>
    %1057 = vector.shape_cast %1056 : vector<4xf32> to vector<1x4xf32>
    %1058 = vector.broadcast %1057 : vector<1x4xf32> to vector<8x4xf32>
    %1059 = arith.subf %1055, %1058 : vector<8x4xf32>
    %1060 = math.exp %1059 : vector<8x4xf32>
    %cst_328 = arith.constant dense<0.000000e+00> : vector<4xf32>
    %1061 = vector.multi_reduction <add>, %1060, %cst_328 [0] : vector<8x4xf32> to vector<4xf32>
    %1062 = vector.shape_cast %1061 : vector<4xf32> to vector<1x4xf32>
    %1063 = tpu.reciprocal %1062 {approx = true} : vector<1x4xf32> -> vector<1x4xf32>
    %1064 = vector.broadcast %1063 : vector<1x4xf32> to vector<8x4xf32>
    %1065 = arith.mulf %1060, %1064 : vector<8x4xf32>
    %1066 = vector.shape_cast %1065 : vector<8x4xf32> to vector<8x4x1xf32>
    %1067 = vector.broadcast %1066 : vector<8x4x1xf32> to vector<8x4x32xf32>
    %1068 = arith.mulf %1067, %831 : vector<8x4x32xf32>
    %cst_329 = arith.constant dense<0.000000e+00> : vector<4x32xf32>
    %1069 = vector.multi_reduction <add>, %1068, %cst_329 [0] : vector<8x4x32xf32> to vector<4x32xf32>
    %c0_330 = arith.constant 0 : index
    %c0_331 = arith.constant 0 : index
    %1070 = vector.load %arg20[%c0_330, %c0_331] : memref<32x128xf32, #tpu.memory_space<vmem>>, vector<32x128xf32>
    %cst_332 = arith.constant dense<0.000000e+00> : vector<4x128xf32>
    %1071 = tpu.matmul %1069, %1070, %cst_332 {dimension_numbers = #tpu.dot_dimension_numbers<[1], [0], [0], [1], [0, 0, 1, 1], [], []>} : vector<4x32xf32>, vector<32x128xf32>, vector<4x128xf32> -> vector<4x128xf32>
    %1072 = arith.addf %1039, %1071 : vector<4x128xf32>
    %c0_333 = arith.constant 0 : index
    %c0_334 = arith.constant 0 : index
    %1073 = vector.load %arg21[%c0_333, %c0_334] : memref<32x128xf32, #tpu.memory_space<vmem>>, vector<32x128xf32>
    %cst_335 = arith.constant dense<0.000000e+00> : vector<4x128xf32>
    %1074 = tpu.matmul %1013, %1073, %cst_335 {dimension_numbers = #tpu.dot_dimension_numbers<[1], [0], [0], [1], [0, 0, 1, 1], [], []>} : vector<4x32xf32>, vector<32x128xf32>, vector<4x128xf32> -> vector<4x128xf32>
    %1075 = arith.addf %1072, %1074 : vector<4x128xf32>
    %c0_336 = arith.constant 0 : index
    %c0_337 = arith.constant 0 : index
    %1076 = vector.load %arg22[%c0_336, %c0_337] : memref<1x128xf32, #tpu.memory_space<vmem>>, vector<1x128xf32>
    %1077 = vector.broadcast %1076 : vector<1x128xf32> to vector<4x128xf32>
    %1078 = arith.addf %1075, %1077 : vector<4x128xf32>
    %1079 = vector.extract_strided_slice %1078 {offsets = [0, 0], sizes = [4, 32], strides = [1, 1]} : vector<4x128xf32> to vector<4x32xf32>
    %1080 = arith.negf %1079 : vector<4x32xf32>
    %1081 = math.exp %1080 : vector<4x32xf32>
    %cst_338 = arith.constant 1.000000e+00 : f32
    %1082 = vector.broadcast %cst_338 : f32 to vector<4x32xf32>
    %1083 = arith.addf %1082, %1081 : vector<4x32xf32>
    %1084 = arith.divf %1082, %1083 : vector<4x32xf32>
    %1085 = vector.extract_strided_slice %1078 {offsets = [0, 32], sizes = [4, 32], strides = [1, 1]} : vector<4x128xf32> to vector<4x32xf32>
    %1086 = arith.negf %1085 : vector<4x32xf32>
    %1087 = math.exp %1086 : vector<4x32xf32>
    %cst_339 = arith.constant 1.000000e+00 : f32
    %1088 = vector.broadcast %cst_339 : f32 to vector<4x32xf32>
    %1089 = arith.addf %1088, %1087 : vector<4x32xf32>
    %1090 = arith.divf %1088, %1089 : vector<4x32xf32>
    %1091 = vector.extract_strided_slice %1078 {offsets = [0, 64], sizes = [4, 32], strides = [1, 1]} : vector<4x128xf32> to vector<4x32xf32>
    %1092 = math.tanh %1091 : vector<4x32xf32>
    %1093 = vector.extract_strided_slice %1078 {offsets = [0, 96], sizes = [4, 32], strides = [1, 1]} : vector<4x128xf32> to vector<4x32xf32>
    %1094 = arith.negf %1093 : vector<4x32xf32>
    %1095 = math.exp %1094 : vector<4x32xf32>
    %cst_340 = arith.constant 1.000000e+00 : f32
    %1096 = vector.broadcast %cst_340 : f32 to vector<4x32xf32>
    %1097 = arith.addf %1096, %1095 : vector<4x32xf32>
    %1098 = arith.divf %1096, %1097 : vector<4x32xf32>
    %1099 = arith.mulf %1090, %1011 : vector<4x32xf32>
    %1100 = arith.mulf %1084, %1092 : vector<4x32xf32>
    %1101 = arith.addf %1099, %1100 : vector<4x32xf32>
    %1102 = math.tanh %1101 : vector<4x32xf32>
    %1103 = arith.mulf %1098, %1102 : vector<4x32xf32>
    %c0_341 = arith.constant 0 : index
    %c0_342 = arith.constant 0 : index
    %1104 = vector.load %arg23[%c0_341, %c0_342] : memref<32x16xf32, #tpu.memory_space<vmem>>, vector<32x16xf32>
    %cst_343 = arith.constant dense<0.000000e+00> : vector<4x16xf32>
    %1105 = tpu.matmul %1103, %1104, %cst_343 {dimension_numbers = #tpu.dot_dimension_numbers<[1], [0], [0], [1], [0, 0, 1, 1], [], []>} : vector<4x32xf32>, vector<32x16xf32>, vector<4x16xf32> -> vector<4x16xf32>
    %c0_344 = arith.constant 0 : index
    %c0_345 = arith.constant 0 : index
    %1106 = vector.load %arg24[%c0_344, %c0_345] : memref<32x16xf32, #tpu.memory_space<vmem>>, vector<32x16xf32>
    %cst_346 = arith.constant dense<0.000000e+00> : vector<4x16xf32>
    %1107 = tpu.matmul %1069, %1106, %cst_346 {dimension_numbers = #tpu.dot_dimension_numbers<[1], [0], [0], [1], [0, 0, 1, 1], [], []>} : vector<4x32xf32>, vector<32x16xf32>, vector<4x16xf32> -> vector<4x16xf32>
    %1108 = arith.addf %1105, %1107 : vector<4x16xf32>
    %1109 = arith.addf %1108, %1040 : vector<4x16xf32>
    %c0_347 = arith.constant 0 : index
    %c0_348 = arith.constant 0 : index
    %1110 = vector.load %arg26[%c0_347, %c0_348] : memref<1x16xf32, #tpu.memory_space<vmem>>, vector<1x16xf32>
    %1111 = vector.broadcast %1110 : vector<1x16xf32> to vector<4x16xf32>
    %1112 = arith.addf %1109, %1111 : vector<4x16xf32>
    %c3_349 = arith.constant 3 : index
    %c0_350 = arith.constant 0 : index
    %c0_351 = arith.constant 0 : index
    %1113 = vector.load %arg27[%c3_349, %c0_350, %c0_351] : memref<6x4x16xf32, #tpu.memory_space<vmem>>, vector<1x4x16xf32>
    %1114 = vector.shape_cast %1113 : vector<1x4x16xf32> to vector<4x16xf32>
    %1115 = vector.shape_cast %1112 : vector<4x16xf32> to vector<1x4x16xf32>
    tpu.vector_store %arg27[%c3_349, %c0_350, %c0_351], %1115 {strides = array<i32>} : memref<6x4x16xf32, #tpu.memory_space<vmem>>, vector<1x4x16xf32>,
    %1116 = vector.extract_strided_slice %845 {offsets = [3, 0, 0], sizes = [1, 4, 128], strides = [1, 1, 1]} : vector<6x4x128xf32> to vector<1x4x128xf32>
    %1117 = vector.shape_cast %1116 : vector<1x4x128xf32> to vector<4x128xf32>
    %1118 = vector.extract_strided_slice %848 {offsets = [3, 0, 0], sizes = [1, 4, 16], strides = [1, 1, 1]} : vector<6x4x16xf32> to vector<1x4x16xf32>
    %1119 = vector.shape_cast %1118 : vector<1x4x16xf32> to vector<4x16xf32>
    %c0_352 = arith.constant 0 : index
    %c0_353 = arith.constant 0 : index
    %1120 = vector.load %arg15[%c0_352, %c0_353] : memref<32x32xf32, #tpu.memory_space<vmem>>, vector<32x32xf32>
    %cst_354 = arith.constant dense<0.000000e+00> : vector<4x32xf32>
    %1121 = tpu.matmul %1103, %1120, %cst_354 {dimension_numbers = #tpu.dot_dimension_numbers<[1], [0], [0], [1], [0, 0, 1, 1], [], []>} : vector<4x32xf32>, vector<32x32xf32>, vector<4x32xf32> -> vector<4x32xf32>
    %1122 = vector.shape_cast %1121 : vector<4x32xf32> to vector<1x4x32xf32>
    %1123 = vector.broadcast %1122 : vector<1x4x32xf32> to vector<8x4x32xf32>
    %1124 = arith.addf %1123, %840 : vector<8x4x32xf32>
    %1125 = math.tanh %1124 : vector<8x4x32xf32>
    %c0_355 = arith.constant 0 : index
    %c0_356 = arith.constant 0 : index
    %1126 = vector.load %arg18[%c0_355, %c0_356] : memref<1x32xf32, #tpu.memory_space<vmem>>, vector<1x32xf32>
    %1127 = vector.shape_cast %1126 : vector<1x32xf32> to vector<1x1x32xf32>
    %1128 = vector.broadcast %1127 : vector<1x1x32xf32> to vector<8x4x32xf32>
    %1129 = arith.mulf %1125, %1128 : vector<8x4x32xf32>
    %cst_357 = arith.constant dense<0.000000e+00> : vector<8x4xf32>
    %1130 = vector.multi_reduction <add>, %1129, %cst_357 [2] : vector<8x4x32xf32> to vector<8x4xf32>
    %cst_358 = arith.constant 0.000000e+00 : f32
    %1131 = vector.broadcast %cst_358 : f32 to vector<8x4xf32>
    %1132 = arith.cmpf ogt, %832, %1131 : vector<8x4xf32>
    %cst_359 = arith.constant -1.000000e+10 : f32
    %1133 = vector.broadcast %cst_359 : f32 to vector<8x4xf32>
    %1134 = arith.select %1132, %1130, %1133 : vector<8x4xi1>, vector<8x4xf32>
    %cst_360 = arith.constant dense<0xFF800000> : vector<4xf32>
    %1135 = vector.multi_reduction <maximumf>, %1134, %cst_360 [0] : vector<8x4xf32> to vector<4xf32>
    %1136 = vector.shape_cast %1135 : vector<4xf32> to vector<1x4xf32>
    %1137 = vector.broadcast %1136 : vector<1x4xf32> to vector<8x4xf32>
    %1138 = arith.subf %1134, %1137 : vector<8x4xf32>
    %1139 = math.exp %1138 : vector<8x4xf32>
    %cst_361 = arith.constant dense<0.000000e+00> : vector<4xf32>
    %1140 = vector.multi_reduction <add>, %1139, %cst_361 [0] : vector<8x4xf32> to vector<4xf32>
    %1141 = vector.shape_cast %1140 : vector<4xf32> to vector<1x4xf32>
    %1142 = tpu.reciprocal %1141 {approx = true} : vector<1x4xf32> -> vector<1x4xf32>
    %1143 = vector.broadcast %1142 : vector<1x4xf32> to vector<8x4xf32>
    %1144 = arith.mulf %1139, %1143 : vector<8x4xf32>
    %1145 = vector.shape_cast %1144 : vector<8x4xf32> to vector<8x4x1xf32>
    %1146 = vector.broadcast %1145 : vector<8x4x1xf32> to vector<8x4x32xf32>
    %1147 = arith.mulf %1146, %831 : vector<8x4x32xf32>
    %cst_362 = arith.constant dense<0.000000e+00> : vector<4x32xf32>
    %1148 = vector.multi_reduction <add>, %1147, %cst_362 [0] : vector<8x4x32xf32> to vector<4x32xf32>
    %c0_363 = arith.constant 0 : index
    %c0_364 = arith.constant 0 : index
    %1149 = vector.load %arg20[%c0_363, %c0_364] : memref<32x128xf32, #tpu.memory_space<vmem>>, vector<32x128xf32>
    %cst_365 = arith.constant dense<0.000000e+00> : vector<4x128xf32>
    %1150 = tpu.matmul %1148, %1149, %cst_365 {dimension_numbers = #tpu.dot_dimension_numbers<[1], [0], [0], [1], [0, 0, 1, 1], [], []>} : vector<4x32xf32>, vector<32x128xf32>, vector<4x128xf32> -> vector<4x128xf32>
    %1151 = arith.addf %1117, %1150 : vector<4x128xf32>
    %c0_366 = arith.constant 0 : index
    %c0_367 = arith.constant 0 : index
    %1152 = vector.load %arg21[%c0_366, %c0_367] : memref<32x128xf32, #tpu.memory_space<vmem>>, vector<32x128xf32>
    %cst_368 = arith.constant dense<0.000000e+00> : vector<4x128xf32>
    %1153 = tpu.matmul %1103, %1152, %cst_368 {dimension_numbers = #tpu.dot_dimension_numbers<[1], [0], [0], [1], [0, 0, 1, 1], [], []>} : vector<4x32xf32>, vector<32x128xf32>, vector<4x128xf32> -> vector<4x128xf32>
    %1154 = arith.addf %1151, %1153 : vector<4x128xf32>
    %c0_369 = arith.constant 0 : index
    %c0_370 = arith.constant 0 : index
    %1155 = vector.load %arg22[%c0_369, %c0_370] : memref<1x128xf32, #tpu.memory_space<vmem>>, vector<1x128xf32>
    %1156 = vector.broadcast %1155 : vector<1x128xf32> to vector<4x128xf32>
    %1157 = arith.addf %1154, %1156 : vector<4x128xf32>
    %1158 = vector.extract_strided_slice %1157 {offsets = [0, 0], sizes = [4, 32], strides = [1, 1]} : vector<4x128xf32> to vector<4x32xf32>
    %1159 = arith.negf %1158 : vector<4x32xf32>
    %1160 = math.exp %1159 : vector<4x32xf32>
    %cst_371 = arith.constant 1.000000e+00 : f32
    %1161 = vector.broadcast %cst_371 : f32 to vector<4x32xf32>
    %1162 = arith.addf %1161, %1160 : vector<4x32xf32>
    %1163 = arith.divf %1161, %1162 : vector<4x32xf32>
    %1164 = vector.extract_strided_slice %1157 {offsets = [0, 32], sizes = [4, 32], strides = [1, 1]} : vector<4x128xf32> to vector<4x32xf32>
    %1165 = arith.negf %1164 : vector<4x32xf32>
    %1166 = math.exp %1165 : vector<4x32xf32>
    %cst_372 = arith.constant 1.000000e+00 : f32
    %1167 = vector.broadcast %cst_372 : f32 to vector<4x32xf32>
    %1168 = arith.addf %1167, %1166 : vector<4x32xf32>
    %1169 = arith.divf %1167, %1168 : vector<4x32xf32>
    %1170 = vector.extract_strided_slice %1157 {offsets = [0, 64], sizes = [4, 32], strides = [1, 1]} : vector<4x128xf32> to vector<4x32xf32>
    %1171 = math.tanh %1170 : vector<4x32xf32>
    %1172 = vector.extract_strided_slice %1157 {offsets = [0, 96], sizes = [4, 32], strides = [1, 1]} : vector<4x128xf32> to vector<4x32xf32>
    %1173 = arith.negf %1172 : vector<4x32xf32>
    %1174 = math.exp %1173 : vector<4x32xf32>
    %cst_373 = arith.constant 1.000000e+00 : f32
    %1175 = vector.broadcast %cst_373 : f32 to vector<4x32xf32>
    %1176 = arith.addf %1175, %1174 : vector<4x32xf32>
    %1177 = arith.divf %1175, %1176 : vector<4x32xf32>
    %1178 = arith.mulf %1169, %1101 : vector<4x32xf32>
    %1179 = arith.mulf %1163, %1171 : vector<4x32xf32>
    %1180 = arith.addf %1178, %1179 : vector<4x32xf32>
    %1181 = math.tanh %1180 : vector<4x32xf32>
    %1182 = arith.mulf %1177, %1181 : vector<4x32xf32>
    %c0_374 = arith.constant 0 : index
    %c0_375 = arith.constant 0 : index
    %1183 = vector.load %arg23[%c0_374, %c0_375] : memref<32x16xf32, #tpu.memory_space<vmem>>, vector<32x16xf32>
    %cst_376 = arith.constant dense<0.000000e+00> : vector<4x16xf32>
    %1184 = tpu.matmul %1182, %1183, %cst_376 {dimension_numbers = #tpu.dot_dimension_numbers<[1], [0], [0], [1], [0, 0, 1, 1], [], []>} : vector<4x32xf32>, vector<32x16xf32>, vector<4x16xf32> -> vector<4x16xf32>
    %c0_377 = arith.constant 0 : index
    %c0_378 = arith.constant 0 : index
    %1185 = vector.load %arg24[%c0_377, %c0_378] : memref<32x16xf32, #tpu.memory_space<vmem>>, vector<32x16xf32>
    %cst_379 = arith.constant dense<0.000000e+00> : vector<4x16xf32>
    %1186 = tpu.matmul %1148, %1185, %cst_379 {dimension_numbers = #tpu.dot_dimension_numbers<[1], [0], [0], [1], [0, 0, 1, 1], [], []>} : vector<4x32xf32>, vector<32x16xf32>, vector<4x16xf32> -> vector<4x16xf32>
    %1187 = arith.addf %1184, %1186 : vector<4x16xf32>
    %1188 = arith.addf %1187, %1119 : vector<4x16xf32>
    %c0_380 = arith.constant 0 : index
    %c0_381 = arith.constant 0 : index
    %1189 = vector.load %arg26[%c0_380, %c0_381] : memref<1x16xf32, #tpu.memory_space<vmem>>, vector<1x16xf32>
    %1190 = vector.broadcast %1189 : vector<1x16xf32> to vector<4x16xf32>
    %1191 = arith.addf %1188, %1190 : vector<4x16xf32>
    %c4_382 = arith.constant 4 : index
    %c0_383 = arith.constant 0 : index
    %c0_384 = arith.constant 0 : index
    %1192 = vector.load %arg27[%c4_382, %c0_383, %c0_384] : memref<6x4x16xf32, #tpu.memory_space<vmem>>, vector<1x4x16xf32>
    %1193 = vector.shape_cast %1192 : vector<1x4x16xf32> to vector<4x16xf32>
    %1194 = vector.shape_cast %1191 : vector<4x16xf32> to vector<1x4x16xf32>
    tpu.vector_store %arg27[%c4_382, %c0_383, %c0_384], %1194 {strides = array<i32>} : memref<6x4x16xf32, #tpu.memory_space<vmem>>, vector<1x4x16xf32>,
    %1195 = vector.extract_strided_slice %845 {offsets = [4, 0, 0], sizes = [1, 4, 128], strides = [1, 1, 1]} : vector<6x4x128xf32> to vector<1x4x128xf32>
    %1196 = vector.shape_cast %1195 : vector<1x4x128xf32> to vector<4x128xf32>
    %1197 = vector.extract_strided_slice %848 {offsets = [4, 0, 0], sizes = [1, 4, 16], strides = [1, 1, 1]} : vector<6x4x16xf32> to vector<1x4x16xf32>
    %1198 = vector.shape_cast %1197 : vector<1x4x16xf32> to vector<4x16xf32>
    %c0_385 = arith.constant 0 : index
    %c0_386 = arith.constant 0 : index
    %1199 = vector.load %arg15[%c0_385, %c0_386] : memref<32x32xf32, #tpu.memory_space<vmem>>, vector<32x32xf32>
    %cst_387 = arith.constant dense<0.000000e+00> : vector<4x32xf32>
    %1200 = tpu.matmul %1182, %1199, %cst_387 {dimension_numbers = #tpu.dot_dimension_numbers<[1], [0], [0], [1], [0, 0, 1, 1], [], []>} : vector<4x32xf32>, vector<32x32xf32>, vector<4x32xf32> -> vector<4x32xf32>
    %1201 = vector.shape_cast %1200 : vector<4x32xf32> to vector<1x4x32xf32>
    %1202 = vector.broadcast %1201 : vector<1x4x32xf32> to vector<8x4x32xf32>
    %1203 = arith.addf %1202, %840 : vector<8x4x32xf32>
    %1204 = math.tanh %1203 : vector<8x4x32xf32>
    %c0_388 = arith.constant 0 : index
    %c0_389 = arith.constant 0 : index
    %1205 = vector.load %arg18[%c0_388, %c0_389] : memref<1x32xf32, #tpu.memory_space<vmem>>, vector<1x32xf32>
    %1206 = vector.shape_cast %1205 : vector<1x32xf32> to vector<1x1x32xf32>
    %1207 = vector.broadcast %1206 : vector<1x1x32xf32> to vector<8x4x32xf32>
    %1208 = arith.mulf %1204, %1207 : vector<8x4x32xf32>
    %cst_390 = arith.constant dense<0.000000e+00> : vector<8x4xf32>
    %1209 = vector.multi_reduction <add>, %1208, %cst_390 [2] : vector<8x4x32xf32> to vector<8x4xf32>
    %cst_391 = arith.constant 0.000000e+00 : f32
    %1210 = vector.broadcast %cst_391 : f32 to vector<8x4xf32>
    %1211 = arith.cmpf ogt, %832, %1210 : vector<8x4xf32>
    %cst_392 = arith.constant -1.000000e+10 : f32
    %1212 = vector.broadcast %cst_392 : f32 to vector<8x4xf32>
    %1213 = arith.select %1211, %1209, %1212 : vector<8x4xi1>, vector<8x4xf32>
    %cst_393 = arith.constant dense<0xFF800000> : vector<4xf32>
    %1214 = vector.multi_reduction <maximumf>, %1213, %cst_393 [0] : vector<8x4xf32> to vector<4xf32>
    %1215 = vector.shape_cast %1214 : vector<4xf32> to vector<1x4xf32>
    %1216 = vector.broadcast %1215 : vector<1x4xf32> to vector<8x4xf32>
    %1217 = arith.subf %1213, %1216 : vector<8x4xf32>
    %1218 = math.exp %1217 : vector<8x4xf32>
    %cst_394 = arith.constant dense<0.000000e+00> : vector<4xf32>
    %1219 = vector.multi_reduction <add>, %1218, %cst_394 [0] : vector<8x4xf32> to vector<4xf32>
    %1220 = vector.shape_cast %1219 : vector<4xf32> to vector<1x4xf32>
    %1221 = tpu.reciprocal %1220 {approx = true} : vector<1x4xf32> -> vector<1x4xf32>
    %1222 = vector.broadcast %1221 : vector<1x4xf32> to vector<8x4xf32>
    %1223 = arith.mulf %1218, %1222 : vector<8x4xf32>
    %1224 = vector.shape_cast %1223 : vector<8x4xf32> to vector<8x4x1xf32>
    %1225 = vector.broadcast %1224 : vector<8x4x1xf32> to vector<8x4x32xf32>
    %1226 = arith.mulf %1225, %831 : vector<8x4x32xf32>
    %cst_395 = arith.constant dense<0.000000e+00> : vector<4x32xf32>
    %1227 = vector.multi_reduction <add>, %1226, %cst_395 [0] : vector<8x4x32xf32> to vector<4x32xf32>
    %c0_396 = arith.constant 0 : index
    %c0_397 = arith.constant 0 : index
    %1228 = vector.load %arg20[%c0_396, %c0_397] : memref<32x128xf32, #tpu.memory_space<vmem>>, vector<32x128xf32>
    %cst_398 = arith.constant dense<0.000000e+00> : vector<4x128xf32>
    %1229 = tpu.matmul %1227, %1228, %cst_398 {dimension_numbers = #tpu.dot_dimension_numbers<[1], [0], [0], [1], [0, 0, 1, 1], [], []>} : vector<4x32xf32>, vector<32x128xf32>, vector<4x128xf32> -> vector<4x128xf32>
    %1230 = arith.addf %1196, %1229 : vector<4x128xf32>
    %c0_399 = arith.constant 0 : index
    %c0_400 = arith.constant 0 : index
    %1231 = vector.load %arg21[%c0_399, %c0_400] : memref<32x128xf32, #tpu.memory_space<vmem>>, vector<32x128xf32>
    %cst_401 = arith.constant dense<0.000000e+00> : vector<4x128xf32>
    %1232 = tpu.matmul %1182, %1231, %cst_401 {dimension_numbers = #tpu.dot_dimension_numbers<[1], [0], [0], [1], [0, 0, 1, 1], [], []>} : vector<4x32xf32>, vector<32x128xf32>, vector<4x128xf32> -> vector<4x128xf32>
    %1233 = arith.addf %1230, %1232 : vector<4x128xf32>
    %c0_402 = arith.constant 0 : index
    %c0_403 = arith.constant 0 : index
    %1234 = vector.load %arg22[%c0_402, %c0_403] : memref<1x128xf32, #tpu.memory_space<vmem>>, vector<1x128xf32>
    %1235 = vector.broadcast %1234 : vector<1x128xf32> to vector<4x128xf32>
    %1236 = arith.addf %1233, %1235 : vector<4x128xf32>
    %1237 = vector.extract_strided_slice %1236 {offsets = [0, 0], sizes = [4, 32], strides = [1, 1]} : vector<4x128xf32> to vector<4x32xf32>
    %1238 = arith.negf %1237 : vector<4x32xf32>
    %1239 = math.exp %1238 : vector<4x32xf32>
    %cst_404 = arith.constant 1.000000e+00 : f32
    %1240 = vector.broadcast %cst_404 : f32 to vector<4x32xf32>
    %1241 = arith.addf %1240, %1239 : vector<4x32xf32>
    %1242 = arith.divf %1240, %1241 : vector<4x32xf32>
    %1243 = vector.extract_strided_slice %1236 {offsets = [0, 32], sizes = [4, 32], strides = [1, 1]} : vector<4x128xf32> to vector<4x32xf32>
    %1244 = arith.negf %1243 : vector<4x32xf32>
    %1245 = math.exp %1244 : vector<4x32xf32>
    %cst_405 = arith.constant 1.000000e+00 : f32
    %1246 = vector.broadcast %cst_405 : f32 to vector<4x32xf32>
    %1247 = arith.addf %1246, %1245 : vector<4x32xf32>
    %1248 = arith.divf %1246, %1247 : vector<4x32xf32>
    %1249 = vector.extract_strided_slice %1236 {offsets = [0, 64], sizes = [4, 32], strides = [1, 1]} : vector<4x128xf32> to vector<4x32xf32>
    %1250 = math.tanh %1249 : vector<4x32xf32>
    %1251 = vector.extract_strided_slice %1236 {offsets = [0, 96], sizes = [4, 32], strides = [1, 1]} : vector<4x128xf32> to vector<4x32xf32>
    %1252 = arith.negf %1251 : vector<4x32xf32>
    %1253 = math.exp %1252 : vector<4x32xf32>
    %cst_406 = arith.constant 1.000000e+00 : f32
    %1254 = vector.broadcast %cst_406 : f32 to vector<4x32xf32>
    %1255 = arith.addf %1254, %1253 : vector<4x32xf32>
    %1256 = arith.divf %1254, %1255 : vector<4x32xf32>
    %1257 = arith.mulf %1248, %1180 : vector<4x32xf32>
    %1258 = arith.mulf %1242, %1250 : vector<4x32xf32>
    %1259 = arith.addf %1257, %1258 : vector<4x32xf32>
    %1260 = math.tanh %1259 : vector<4x32xf32>
    %1261 = arith.mulf %1256, %1260 : vector<4x32xf32>
    %c0_407 = arith.constant 0 : index
    %c0_408 = arith.constant 0 : index
    %1262 = vector.load %arg23[%c0_407, %c0_408] : memref<32x16xf32, #tpu.memory_space<vmem>>, vector<32x16xf32>
    %cst_409 = arith.constant dense<0.000000e+00> : vector<4x16xf32>
    %1263 = tpu.matmul %1261, %1262, %cst_409 {dimension_numbers = #tpu.dot_dimension_numbers<[1], [0], [0], [1], [0, 0, 1, 1], [], []>} : vector<4x32xf32>, vector<32x16xf32>, vector<4x16xf32> -> vector<4x16xf32>
    %c0_410 = arith.constant 0 : index
    %c0_411 = arith.constant 0 : index
    %1264 = vector.load %arg24[%c0_410, %c0_411] : memref<32x16xf32, #tpu.memory_space<vmem>>, vector<32x16xf32>
    %cst_412 = arith.constant dense<0.000000e+00> : vector<4x16xf32>
    %1265 = tpu.matmul %1227, %1264, %cst_412 {dimension_numbers = #tpu.dot_dimension_numbers<[1], [0], [0], [1], [0, 0, 1, 1], [], []>} : vector<4x32xf32>, vector<32x16xf32>, vector<4x16xf32> -> vector<4x16xf32>
    %1266 = arith.addf %1263, %1265 : vector<4x16xf32>
    %1267 = arith.addf %1266, %1198 : vector<4x16xf32>
    %c0_413 = arith.constant 0 : index
    %c0_414 = arith.constant 0 : index
    %1268 = vector.load %arg26[%c0_413, %c0_414] : memref<1x16xf32, #tpu.memory_space<vmem>>, vector<1x16xf32>
    %1269 = vector.broadcast %1268 : vector<1x16xf32> to vector<4x16xf32>
    %1270 = arith.addf %1267, %1269 : vector<4x16xf32>
    %c5_415 = arith.constant 5 : index
    %c0_416 = arith.constant 0 : index
    %c0_417 = arith.constant 0 : index
    %1271 = vector.load %arg27[%c5_415, %c0_416, %c0_417] : memref<6x4x16xf32, #tpu.memory_space<vmem>>, vector<1x4x16xf32>
    %1272 = vector.shape_cast %1271 : vector<1x4x16xf32> to vector<4x16xf32>
    %1273 = vector.shape_cast %1270 : vector<4x16xf32> to vector<1x4x16xf32>
    tpu.vector_store %arg27[%c5_415, %c0_416, %c0_417], %1273 {strides = array<i32>} : memref<6x4x16xf32, #tpu.memory_space<vmem>>, vector<1x4x16xf32>,
    return
  }
}

</mosaic_0001>

<bundles_post_ra>
// kernel: seq2seq_forward.1
= control target key start
LH: loop header
LB: loop body
LE: loop exit
PB: predicated region body
PF: predicated region fallthrough
CT: control target
= control target key end

     0   :  { %s9772_s0 = inlined_call_operand.vmem [shape: f32[8,4,16], index: 0, kind: input, shape index: {}]   ;;  %s9773_s1 = inlined_call_operand.vmem [shape: f32[8,4,1], index: 1, kind: input, shape index: {}]   ;;  %s9774_s2 = inlined_call_operand.vmem [shape: f32[8,4], index: 2, kind: input, shape index: {}]   ;;  %s9775_s3 = inlined_call_operand.vmem [shape: f32[6,4,16], index: 3, kind: input, shape index: {}]   ;;  %s9776_s4 = inlined_call_operand.vmem [shape: f32[16,16], index: 4, kind: input, shape index: {}]   ;;  %s9777_s5 = inlined_call_operand.vmem [shape: f32[16,128], index: 5, kind: input, shape index: {}]   ;;  %s9778_s6 = inlined_call_operand.vmem [shape: f32[1,128], index: 6, kind: input, shape index: {}]   ;;  %s9779_s7 = inlined_call_operand.vmem [shape: f32[16,64], index: 7, kind: input, shape index: {}]   ;;  %s9780_s8 = inlined_call_operand.vmem [shape: f32[16,64], index: 8, kind: input, shape index: {}]   ;;  %s9781_s9 = inlined_call_operand.vmem [shape: f32[16,32], index: 9, kind: input, shape index: {}]   ;;  %s9782_s10 = inlined_call_operand.vmem [shape: f32[16,32], index: 10, kind: input, shape index: {}]   ;;  %s9783_s11 = inlined_call_operand.vmem [shape: f32[1,32], index: 11, kind: input, shape index: {}]   ;;  %s9784_s12 = inlined_call_operand.vmem [shape: f32[16,32], index: 12, kind: input, shape index: {}]   ;;  %s9785_s13 = inlined_call_operand.vmem [shape: f32[16,32], index: 13, kind: input, shape index: {}]   ;;  %s9786_s14 = inlined_call_operand.vmem [shape: f32[1,32], index: 14, kind: input, shape index: {}]   ;;  %s9787_s15 = inlined_call_operand.vmem [shape: f32[32,32], index: 15, kind: input, shape index: {}]   ;;  %s9788_s16 = inlined_call_operand.vmem [shape: f32[32,32], index: 16, kind: input, shape index: {}]   ;;  %s9789_s17 = inlined_call_operand.vmem [shape: f32[1,32], index: 17, kind: input, shape index: {}]   ;;  %s9790_s18 = inlined_call_operand.vmem [shape: f32[1,32], index: 18, kind: input, shape index: {}]   ;;  %s9791_s19 = inlined_call_operand.vmem [shape: f32[16,128], index: 19, kind: input, shape index: {}]   ;;  %s9792_s20 = inlined_call_operand.vmem [shape: f32[32,128], index: 20, kind: input, shape index: {}]   ;;  %s9793_s21 = inlined_call_operand.vmem [shape: f32[32,128], index: 21, kind: input, shape index: {}]   ;;  %s9794_s22 = inlined_call_operand.vmem [shape: f32[1,128], index: 22, kind: input, shape index: {}]   ;;  %s9795_s23 = inlined_call_operand.vmem [shape: f32[32,16], index: 23, kind: input, shape index: {}]   ;;  %s9796_s24 = inlined_call_operand.vmem [shape: f32[32,16], index: 24, kind: input, shape index: {}]   ;;  %s9797_s25 = inlined_call_operand.vmem [shape: f32[16,16], index: 25, kind: input, shape index: {}]   ;;  %s9798_s26 = inlined_call_operand.vmem [shape: f32[1,16], index: 26, kind: input, shape index: {}]   ;;  %s9799_s27 = inlined_call_operand.hbm [shape: f32[6,4,16], index: 27, kind: output, shape index: {}]  }
   0x1   :  { %9812 = sst [smem:[#allocation6_spill]] %s9772_s0 }
   0x2   :  { %9813 = sst [smem:[#allocation7_spill]] %s9773_s1 }
   0x3   :  { %9814 = sst [smem:[#allocation8_spill]] %s9774_s2 }
   0x4   :  { %9815 = sst [smem:[#allocation9_spill]] %s9775_s3 }
   0x5   :  { %9816 = sst [smem:[#allocation10_spill]] %s9776_s4 }
   0x6   :  { %9817 = sst [smem:[#allocation11_spill]] %s9777_s5 }
   0x7   :  { %9818 = sst [smem:[#allocation12_spill]] %s9778_s6 }
   0x8   :  { %9819 = sst [smem:[#allocation13_spill]] %s9779_s7 }
   0x9   :  { %9820 = sst [smem:[#allocation14_spill]] %s9780_s8 }
   0xa   :  { %9821 = sst [smem:[#allocation15_spill]] %s9781_s9 }
   0xb   :  { %9822 = sst [smem:[#allocation16_spill]] %s9782_s10 }
   0xc   :  { %9823 = sst [smem:[#allocation17_spill]] %s9783_s11 }
   0xd   :  { %s9824_s8 = sld [smem:[#allocation11_spill]]  ;;  %s9825_s0 = sld [smem:[#allocation6_spill]]  ;;  %vm116_vm0 = vcmask 130048   ;;  %v9810_v9 = vmov 0.0|0.0  }
   0xe   :  { %s9826_s4 = sld [smem:[#allocation13_spill]] }
  0x13   :  { %v95_v0 = vld [vmem:[%s9824_s8] sm:$0xff]  ;;  %v96_v1 = vld [vmem:[%s9824_s8 + $0x8] sm:$0xff]  ;;  %v7788_v3 = vld [vmem:[%s9825_s0 + $0x10] sm:$0xff]  }
  0x14   :  { %v7523_v2 = vpack.c.bf16 %v96_v1, %v95_v0  ;;  %v7789_v4 = vld [vmem:[%s9825_s0] sm:$0xff]   ;;  %v7790_v5 = vld [vmem:[%s9825_s0 + $0x18] sm:$0xff]   ;;  %v7791_v6 = vld [vmem:[%s9825_s0 + $0x8] sm:$0xff]   ;;  %7023 = vmatprep.mubr.msk.f32.mxu1 %vm116_vm0, %v7788_v3 }
  0x15   :  { %v222_v7 = vld [vmem:[%s9826_s4] sm:$0xff]  ;;  %7020 = vmatprep.mubr.msk.f32.mxu0 %vm116_vm0, %v7789_v4  ;;  %v223_v8 = vld [vmem:[%s9826_s4 + $0x8] sm:$0xff] }
  0x16   :  { %7771 = vmatprep.subr.bf16.mxu1 %v7523_v2  ;;  %7524 = vmatprep.subr.bf16.mxu0 %v7523_v2  ;;  %v8291_v10 = vpack.c.bf16 %v223_v8, %v222_v7 }
  0x17   :  { %7772 = vmatpush3.bf16.msra.mxu1 %v7523_v2  ;;  %7526 = vmatpush3.bf16.msra.mxu0 %v7523_v2 }
  0x18   :  { %7527 = vmatprep.subr.bf16.mxu1 %v9810_v9  ;;  %7533 = vmatprep.subr.bf16.mxu0 %v9810_v9 }
  0x1a   :  { %7024 = vmatmul.mubr.msk.f32.vlgmr.msra.gmra.mrb[0].mxu1 %vm116_vm0, %v7790_v5  ;;  %7021 = vmatmul.mubr.msk.f32.vlgmr.msra.gmra.mrb[0].mxu0 %vm116_vm0, %v7791_v6 }
  0x1b   :  { %32 = vsyncpa [#allocation4], 0  ;;  %7529 = vmatpush3.bf16.msra.mxu1 %v8291_v10  ;;  %vm8112_vm1 = vmmov 0   ;;  %v8113_v11 = vmov 0.0   ;;  %7535 = vmatpush3.bf16.msra.mxu0 %v8291_v10  ;;  %s9827_s28 = sld [smem:[#allocation12_spill]]  ;;  %s8114_s0 = smov 96  }
  0x1c   :  { %7030 = vmatprep.mubr.msk.f32.mxu1 %vm8112_vm1, %v8113_v11  ;;  %7530 = vmatprep.subr.bf16.mxu1 %v9810_v9  ;;  %s8115_s10 = smov 16   ;;  %s9828_s6 = sld [smem:[#allocation7_spill]]  ;;  %v8116_v32 = vmov 0   ;;  %vm349_vm2 = vcmask 125952   ;;  %vm1396_vm3 = vcmask 257152   ;;  %vm2700_vm4 = vcmask 261120  }
  0x1d   :  { %7044 = vmatprep.mubr.msk.f32.mxu0 %vm8112_vm1, %v8113_v11  ;;  %7539 = vmatprep.subr.bf16.mxu0 %v9810_v9  ;;  %s8117_s11 = smov 32   ;;  %3170 = vst.msk [vmem:[#allocation3] sm:$0xf] %vm349_vm2, %v8113_v11  ;;  %3171 = vst.msk [vmem:[#allocation3 + $0x4] sm:$0xf] %vm349_vm2, %v8113_v11  ;;  %s8118_s2 = smov 80  }
  0x1e   :  { %7031 = vmatmul.mubr.f32.vlgmr.msra.gmra.mrb[2].mxu1 %v8113_v11  ;;  %7786 = vset.pattern.permute.xlu1 %v8116_v32  ;;  %3172 = vst.msk [vmem:[#allocation3 + $0x8] sm:$0xf] %vm349_vm2, %v8113_v11  ;;  %3173 = vst.msk [vmem:[#allocation3 + $0xc] sm:$0xf] %vm349_vm2, %v8113_v11  ;;  %s8119_s3 = smov 112   ;;  %s9829_s30 = sld [smem:[#allocation14_spill]] }
  0x1f   :  { %7532 = vmatpush3.bf16.msra.mxu1 %v8291_v10  ;;  %7037 = vmatprep.mubr.msk.f32.mxu1 %vm8112_vm1, %v8113_v11  ;;  %3174 = vst.msk [vmem:[#allocation3 + $0x10] sm:$0xf] %vm349_vm2, %v8113_v11  ;;  %3175 = vst.msk [vmem:[#allocation3 + $0x14] sm:$0xf] %vm349_vm2, %v8113_v11  ;;  %s8121_s8 = smov 48   ;;  %s9831_s4 = sld [smem:[#allocation16_spill]] }
  0x20   :  { %7536 = vmatprep.subr.bf16.mxu1 %v9810_v9  ;;  %7787 = vset.pattern.permute.xlu0 %v8116_v32  ;;  %s9832_s7 = sld [smem:[#allocation9_spill]]  ;;  %vm3284_vm5 = vcmask 257024   ;;  %vm3352_vm6 = vcmask 1041409   ;;  %vm3354_vm7 = vcmask 1042434   ;;  %vm3356_vm8 = vcmask 1043459  }
  0x21   :  { %v6666_v12 = vld [vmem:[%s9827_s28] ss:$0 sm:$0xff]  ;;  %s8120_s28 = smov 64   ;;  %vm3358_vm9 = vcmask 1044484   ;;  %vm3360_vm10 = vcmask 1045509   ;;  %vm3362_vm11 = vcmask 1046534  }
  0x22   :  { %v324_v31 = vld [vmem:[%s9828_s6] sm:$0xf]  ;;  %v6674_v60 = vld [vmem:[%s9828_s6 + $0x4] sm:$0xf]  ;;  %v6677_v32 = vld [vmem:[%s9828_s6 + $0x8] sm:$0xf] }
  0x23   :  { %v335_v33 = vsub.f32 1.0, %v324_v31  ;;  %v465_v2 = vsub.f32 1.0, %v6674_v60  ;;  %vm3364_vm12 = vcmask 1047559   ;;  %vm9809_vm14 = vcmask 31744  }
  0xed   :  { %v7025_v13 = vpop.f32.mrb[0].mxu1  ;;  %v7022_v14 = vpop.f32.mrb[0].mxu0 }
  0xee   :  { %v8312_v15 = vadd.f32 %v7025_v13, %v6666_v12  ;;  %v8314_v16 = vadd.f32 %v7022_v14, %v6666_v12  ;;  %v201_v17 = vpop.f32.mrb[1].mxu1  ;;  %v191_v18 = vpop.f32.mrb[1].mxu0 }
  0xef   :  { %v8316_v19 = vadd.f32 %v6666_v12, %v201_v17  ;;  %v8318_v20 = vadd.f32 %v6666_v12, %v191_v18 }
  0xf1   :  { %v295_v21 = vpop.f32.mrb[2].mxu1  ;;  %v8350_v49 = vcombine.high %v8318_v20, %v8318_v20 }
  0xf2   :  { %v299_v22 = vadd.f32 %v295_v21, %v8318_v20  ;;  %v7032_v23 = vpop.f32.mrb[3].mxu1 }
  0xf4   :  { %7799 = vtanh.f32 %v299_v22  ;;  %v6671_v25 = vmul.f32 -1.442695, %v299_v22 }
  0xf6   :  { %7801 = vpow2.f32 %v6671_v25 }
  0xfe   :  { %v7800_v24 = vpop.eup %7799 }
  0xff   :  { %309 = vrot.lane.b32.xlu0 %v7800_v24, %s8114_s0 }
 0x100   :  { %v7802_v26 = vpop.eup %7801 }
 0x101   :  { %v303_v27 = vadd.f32 1.0, %v7802_v26 }
 0x103   :  { %7803 = vrcp.f32 %v303_v27 }
 0x10d   :  { %v7804_v28 = vpop.eup %7803 }
 0x10e   :  { %v307_v34 = vmul.f32 0.0, %v7804_v28 }
 0x171   :  { %v310_v29 = vpop.permute.xlu0 %309 }
 0x172   :  { %v312_v30 = vmul.f32 %v7804_v28, %v310_v29 }
 0x174   :  { %314 = vrot.lane.b32.xlu0 %v312_v30, %s8115_s10 }
 0x178   :  { %338 = vperm.xlu0 %7787, %v335_v33  }
 0x1e6   :  { %v315_v35 = vpop.permute.xlu0 %314 }
 0x1e7   :  { %v317_v36 = vadd.f32 %v315_v35, %v307_v34 }
 0x1e9   :  { %7805 = vtanh.f32 %v317_v36 }
 0x1f3   :  { %v7806_v37 = vpop.eup %7805 }
 0x1f4   :  { %320 = vrot.lane.b32.xlu1 %v7806_v37, %s8117_s11 }
 0x1f7   :  { %v339_v41 = vpop.permute.xlu0 %338 }
 0x1f8   :  { %327 = vperm.xlu1 %7786, %v324_v31   ;;  %v341_v42 = vmul.f32 0.0, %v339_v41 }
 0x266   :  { %v321_v38 = vpop.permute.xlu1 %320 }
 0x267   :  { %v323_v39 = vmul.f32 %v7804_v28, %v321_v38  ;;  %v596_v38 = vsub.f32 1.0, %v6677_v32 }
 0x269   :  { %331 = vrot.lane.b32.xlu1 %v323_v39, %s8118_s2 }
 0x26d   :  { %344 = vrot.lane.b32.xlu1 %v317_v36, %s8119_s3 }
 0x277   :  { %v328_v40 = vpop.permute.xlu1 %327 }
 0x2db   :  { %v332_v43 = vpop.permute.xlu1 %331 }
 0x2dc   :  { %v334_v44 = vmul.f32 %v332_v43, %v328_v40 }
 0x2de   :  { %v342_v45 = vadd.f32 %v341_v42, %v334_v44  ;;  %350 = vst.msk [vmem:[#allocation2] sm:$0xf] %vm349_vm2, %v334_v44 }
 0x2df   :  { %v345_v46 = vpop.permute.xlu1 %344 }
 0x2e0   :  { %v347_v47 = vmul.f32 %v345_v46, %v328_v40  ;;  %7038 = vmatmul.mubr.msk.f32.vlgmr.msra.gmra.mrb[4].mxu1 %vm116_vm0, %v342_v45 }
 0x2e1   :  { %7538 = vmatpush3.bf16.msra.mxu1 %v8291_v10  ;;  %7051 = vmatprep.mubr.msk.f32.mxu1 %vm8112_vm1, %v8113_v11 }
 0x2e2   :  { %v348_v48 = vadd.f32 %v347_v47, %v341_v42  ;;  %7542 = vmatprep.subr.bf16.mxu1 %v9810_v9 }
 0x2e4   :  { %433 = vrot.lane.b32.xlu1 %v348_v48, %s8115_s10 }
 0x356   :  { %v434_v61 = vpop.permute.xlu1 %433 }
 0x3b3   :  { %v420_v50 = vpop.f32.mrb[4].mxu1 }
 0x3b4   :  { %v424_v51 = vadd.f32 %v420_v50, %v8350_v49  ;;  %v7039_v52 = vpop.f32.mrb[5].mxu1 }
 0x3b5   :  { %v8386_v52 = vcombine.high %v8314_v16, %v8314_v16 }
 0x3b6   :  { %7807 = vtanh.f32 %v424_v51  ;;  %v6673_v54 = vmul.f32 -1.442695, %v424_v51 }
 0x3b8   :  { %7809 = vpow2.f32 %v6673_v54 }
 0x3c0   :  { %v7808_v53 = vpop.eup %7807 }
 0x3c1   :  { %438 = vrot.lane.b32.xlu0 %v7808_v53, %s8114_s0 }
 0x3c2   :  { %v7810_v55 = vpop.eup %7809 }
 0x3c3   :  { %v428_v56 = vadd.f32 1.0, %v7810_v55 }
 0x3c5   :  { %7811 = vrcp.f32 %v428_v56 }
 0x3cf   :  { %v7812_v57 = vpop.eup %7811 }
 0x3d0   :  { %v436_v62 = vmul.f32 %v7812_v57, %v434_v61 }
 0x433   :  { %v439_v58 = vpop.permute.xlu0 %438 }
 0x434   :  { %v441_v59 = vmul.f32 %v7812_v57, %v439_v58 }
 0x436   :  { %443 = vrot.lane.b32.xlu0 %v441_v59, %s8115_s10 }
 0x43a   :  { %457 = vperm.xlu0 %7787, %v6674_v60  }
 0x4a8   :  { %v444_v63 = vpop.permute.xlu0 %443 }
 0x4a9   :  { %v446_v0 = vadd.f32 %v444_v63, %v436_v62  ;;  %v6680_v63 = vld [vmem:[%s9828_s6 + $0xc] sm:$0xf] }
 0x4ab   :  { %7813 = vtanh.f32 %v446_v0 }
 0x4b5   :  { %v7814_v1 = vpop.eup %7813 }
 0x4b6   :  { %449 = vrot.lane.b32.xlu1 %v7814_v1, %s8117_s11 }
 0x4b9   :  { %v458_v6 = vpop.permute.xlu0 %457 }
 0x4ba   :  { %468 = vperm.xlu1 %7786, %v465_v2  }
 0x4be   :  { %474 = vrot.lane.b32.xlu1 %v446_v0, %s8119_s3 }
 0x528   :  { %v450_v3 = vpop.permute.xlu1 %449 }
 0x529   :  { %v452_v4 = vmul.f32 %v7812_v57, %v450_v3 }
 0x52b   :  { %461 = vrot.lane.b32.xlu0 %v452_v4, %s8118_s2 }
 0x539   :  { %v469_v5 = vpop.permute.xlu1 %468 }
 0x53a   :  { %v478_v8 = vmul.f32 %v469_v5, %v348_v48  ;;  %v471_v17 = vmul.f32 %v469_v5, %v342_v45  ;;  %v727_v5 = vsub.f32 1.0, %v6680_v63 }
 0x53d   :  { %v475_v7 = vpop.permute.xlu1 %474 }
 0x53e   :  { %v477_v12 = vmul.f32 %v475_v7, %v458_v6 }
 0x540   :  { %v479_v13 = vadd.f32 %v478_v8, %v477_v12 }
 0x542   :  { %564 = vrot.lane.b32.xlu1 %v479_v13, %s8115_s10 }
 0x59d   :  { %v462_v14 = vpop.permute.xlu0 %461 }
 0x59e   :  { %v464_v18 = vmul.f32 %v462_v14, %v458_v6 }
 0x5a0   :  { %v472_v21 = vadd.f32 %v471_v17, %v464_v18  ;;  %481 = vst.msk [vmem:[#allocation2 + $0x4] sm:$0xf] %vm349_vm2, %v464_v18 }
 0x5a2   :  { %7045 = vmatmul.mubr.msk.f32.vlgmr.msra.gmra.mrb[2].mxu0 %vm116_vm0, %v472_v21 }
 0x5a3   :  { %7541 = vmatpush3.bf16.msra.mxu0 %v8291_v10  ;;  %7058 = vmatprep.mubr.msk.f32.mxu0 %vm8112_vm1, %v8113_v11 }
 0x5a4   :  { %7545 = vmatprep.subr.bf16.mxu0 %v9810_v9 }
 0x5b4   :  { %v565_v33 = vpop.permute.xlu1 %564 }
 0x675   :  { %v551_v22 = vpop.f32.mrb[2].mxu0 }
 0x676   :  { %v555_v23 = vadd.f32 %v551_v22, %v8314_v16  ;;  %v7046_v24 = vpop.f32.mrb[3].mxu0 }
 0x678   :  { %7815 = vtanh.f32 %v555_v23  ;;  %v6676_v26 = vmul.f32 -1.442695, %v555_v23 }
 0x67a   :  { %7817 = vpow2.f32 %v6676_v26 }
 0x682   :  { %v7816_v25 = vpop.eup %7815 }
 0x683   :  { %569 = vrot.lane.b32.xlu0 %v7816_v25, %s8114_s0 }
 0x684   :  { %v7818_v27 = vpop.eup %7817 }
 0x685   :  { %v559_v28 = vadd.f32 1.0, %v7818_v27 }
 0x687   :  { %7819 = vrcp.f32 %v559_v28 }
 0x691   :  { %v7820_v29 = vpop.eup %7819 }
 0x692   :  { %v567_v34 = vmul.f32 %v7820_v29, %v565_v33 }
 0x6f5   :  { %v570_v30 = vpop.permute.xlu0 %569 }
 0x6f6   :  { %v572_v31 = vmul.f32 %v7820_v29, %v570_v30 }
 0x6f8   :  { %574 = vrot.lane.b32.xlu0 %v572_v31, %s8115_s10 }
 0x6fc   :  { %588 = vperm.xlu0 %7787, %v6677_v32  }
 0x76a   :  { %v575_v35 = vpop.permute.xlu0 %574 }
 0x76b   :  { %v577_v36 = vadd.f32 %v575_v35, %v567_v34  ;;  %v6683_v35 = vld [vmem:[%s9828_s6 + $0x10] sm:$0xf] }
 0x76d   :  { %7821 = vtanh.f32 %v577_v36 }
 0x777   :  { %v7822_v37 = vpop.eup %7821 }
 0x778   :  { %580 = vrot.lane.b32.xlu1 %v7822_v37, %s8117_s11 }
 0x77b   :  { %v589_v42 = vpop.permute.xlu0 %588 }
 0x77c   :  { %599 = vperm.xlu1 %7786, %v596_v38  }
 0x780   :  { %605 = vrot.lane.b32.xlu1 %v577_v36, %s8119_s3 }
 0x7ea   :  { %v581_v39 = vpop.permute.xlu1 %580 }
 0x7eb   :  { %v583_v40 = vmul.f32 %v7820_v29, %v581_v39 }
 0x7ed   :  { %592 = vrot.lane.b32.xlu0 %v583_v40, %s8118_s2 }
 0x7fb   :  { %v600_v41 = vpop.permute.xlu1 %599 }
 0x7fc   :  { %v609_v44 = vmul.f32 %v600_v41, %v479_v13  ;;  %v602_v48 = vmul.f32 %v600_v41, %v472_v21  ;;  %v858_v41 = vsub.f32 1.0, %v6683_v35 }
 0x7ff   :  { %v606_v43 = vpop.permute.xlu1 %605 }
 0x800   :  { %v608_v45 = vmul.f32 %v606_v43, %v589_v42 }
 0x802   :  { %v610_v46 = vadd.f32 %v609_v44, %v608_v45 }
 0x804   :  { %695 = vrot.lane.b32.xlu1 %v610_v46, %s8115_s10 }
 0x85f   :  { %v593_v47 = vpop.permute.xlu0 %592 }
 0x860   :  { %v595_v50 = vmul.f32 %v593_v47, %v589_v42 }
 0x862   :  { %v603_v51 = vadd.f32 %v602_v48, %v595_v50  ;;  %612 = vst.msk [vmem:[#allocation2 + $0x8] sm:$0xf] %vm349_vm2, %v595_v50 }
 0x864   :  { %7052 = vmatmul.mubr.msk.f32.vlgmr.msra.gmra.mrb[6].mxu1 %vm116_vm0, %v603_v51 }
 0x865   :  { %7544 = vmatpush3.bf16.msra.mxu1 %v8291_v10  ;;  %7065 = vmatprep.mubr.msk.f32.mxu1 %vm8112_vm1, %v8113_v11 }
 0x866   :  { %7548 = vmatprep.subr.bf16.mxu1 %v9810_v9 }
 0x876   :  { %v696_v0 = vpop.permute.xlu1 %695 }
 0x937   :  { %v682_v53 = vpop.f32.mrb[6].mxu1 }
 0x938   :  { %v686_v54 = vadd.f32 %v682_v53, %v8386_v52  ;;  %v7053_v55 = vpop.f32.mrb[7].mxu1 }
 0x93a   :  { %7823 = vtanh.f32 %v686_v54  ;;  %v6679_v57 = vmul.f32 -1.442695, %v686_v54 }
 0x93c   :  { %7825 = vpow2.f32 %v6679_v57 }
 0x944   :  { %v7824_v56 = vpop.eup %7823 }
 0x945   :  { %700 = vrot.lane.b32.xlu0 %v7824_v56, %s8114_s0  ;;  %v8425_v56 = vcombine.high %v8316_v19, %v8316_v19 }
 0x946   :  { %v7826_v58 = vpop.eup %7825 }
 0x947   :  { %v690_v59 = vadd.f32 1.0, %v7826_v58 }
 0x949   :  { %7827 = vrcp.f32 %v690_v59 }
 0x953   :  { %v7828_v60 = vpop.eup %7827 }
 0x954   :  { %v698_v1 = vmul.f32 %v7828_v60, %v696_v0 }
 0x9b7   :  { %v701_v61 = vpop.permute.xlu0 %700 }
 0x9b8   :  { %v703_v62 = vmul.f32 %v7828_v60, %v701_v61 }
 0x9ba   :  { %705 = vrot.lane.b32.xlu0 %v703_v62, %s8115_s10 }
 0x9be   :  { %719 = vperm.xlu0 %7787, %v6680_v63  }
 0xa2c   :  { %v706_v2 = vpop.permute.xlu0 %705 }
 0xa2d   :  { %v708_v3 = vadd.f32 %v706_v2, %v698_v1  ;;  %v6686_v2 = vld [vmem:[%s9828_s6 + $0x14] sm:$0xf] }
 0xa2f   :  { %7829 = vtanh.f32 %v708_v3 }
 0xa39   :  { %v7830_v4 = vpop.eup %7829 }
 0xa3a   :  { %711 = vrot.lane.b32.xlu1 %v7830_v4, %s8117_s11 }
 0xa3d   :  { %v720_v12 = vpop.permute.xlu0 %719 }
 0xa3e   :  { %730 = vperm.xlu1 %7786, %v727_v5  }
 0xa42   :  { %736 = vrot.lane.b32.xlu1 %v708_v3, %s8119_s3 }
 0xaac   :  { %v712_v6 = vpop.permute.xlu1 %711 }
 0xaad   :  { %v714_v7 = vmul.f32 %v7828_v60, %v712_v6 }
 0xaaf   :  { %723 = vrot.lane.b32.xlu0 %v714_v7, %s8118_s2 }
 0xabd   :  { %v731_v8 = vpop.permute.xlu1 %730 }
 0xabe   :  { %v740_v14 = vmul.f32 %v731_v8, %v610_v46  ;;  %v733_v22 = vmul.f32 %v731_v8, %v603_v51  ;;  %v989_v8 = vsub.f32 1.0, %v6686_v2 }
 0xac1   :  { %v737_v13 = vpop.permute.xlu1 %736 }
 0xac2   :  { %v739_v17 = vmul.f32 %v737_v13, %v720_v12 }
 0xac4   :  { %v741_v18 = vadd.f32 %v740_v14, %v739_v17 }
 0xac6   :  { %826 = vrot.lane.b32.xlu1 %v741_v18, %s8115_s10 }
 0xb21   :  { %v724_v21 = vpop.permute.xlu0 %723 }
 0xb22   :  { %v726_v23 = vmul.f32 %v724_v21, %v720_v12  ;;  %v225_v21 = vld [vmem:[%s9829_s30 + $0x8] sm:$0xff] }
 0xb24   :  { %v734_v24 = vadd.f32 %v733_v22, %v726_v23  ;;  %743 = vst.msk [vmem:[#allocation2 + $0xc] sm:$0xf] %vm349_vm2, %v726_v23 }
 0xb26   :  { %7059 = vmatmul.mubr.msk.f32.vlgmr.msra.gmra.mrb[4].mxu0 %vm116_vm0, %v734_v24 }
 0xb27   :  { %7547 = vmatpush3.bf16.msra.mxu0 %v8291_v10  ;;  %7072 = vmatprep.mubr.msk.f32.mxu0 %vm8112_vm1, %v8113_v11 }
 0xb28   :  { %7551 = vmatprep.subr.bf16.mxu0 %v9810_v9 }
 0xb38   :  { %v827_v36 = vpop.permute.xlu1 %826 }
 0xbf9   :  { %v813_v25 = vpop.f32.mrb[4].mxu0 }
 0xbfa   :  { %v817_v26 = vadd.f32 %v813_v25, %v8316_v19  ;;  %v7060_v27 = vpop.f32.mrb[5].mxu0 }
 0xbfc   :  { %7831 = vtanh.f32 %v817_v26  ;;  %v6682_v29 = vmul.f32 -1.442695, %v817_v26 }
 0xbfe   :  { %7833 = vpow2.f32 %v6682_v29 }
 0xc06   :  { %v7832_v28 = vpop.eup %7831 }
 0xc07   :  { %831 = vrot.lane.b32.xlu0 %v7832_v28, %s8114_s0 }
 0xc08   :  { %v7834_v30 = vpop.eup %7833 }
 0xc09   :  { %v821_v31 = vadd.f32 1.0, %v7834_v30 }
 0xc0b   :  { %7835 = vrcp.f32 %v821_v31 }
 0xc15   :  { %v7836_v32 = vpop.eup %7835 }
 0xc16   :  { %v829_v37 = vmul.f32 %v7836_v32, %v827_v36 }
 0xc79   :  { %v832_v33 = vpop.permute.xlu0 %831 }
 0xc7a   :  { %v834_v34 = vmul.f32 %v7836_v32, %v832_v33 }
 0xc7c   :  { %836 = vrot.lane.b32.xlu0 %v834_v34, %s8115_s10 }
 0xc80   :  { %850 = vperm.xlu0 %7787, %v6683_v35  }
 0xcee   :  { %v837_v38 = vpop.permute.xlu0 %836 }
 0xcef   :  { %v839_v39 = vadd.f32 %v837_v38, %v829_v37 }
 0xcf1   :  { %7837 = vtanh.f32 %v839_v39 }
 0xcfb   :  { %v7838_v40 = vpop.eup %7837 }
 0xcfc   :  { %842 = vrot.lane.b32.xlu1 %v7838_v40, %s8117_s11 }
 0xcff   :  { %v851_v45 = vpop.permute.xlu0 %850 }
 0xd00   :  { %861 = vperm.xlu1 %7786, %v858_v41  }
 0xd04   :  { %867 = vrot.lane.b32.xlu1 %v839_v39, %s8119_s3  ;;  %v8468_v39 = vcombine.high %v8312_v15, %v8312_v15 }
 0xd6e   :  { %v843_v42 = vpop.permute.xlu1 %842 }
 0xd6f   :  { %v845_v43 = vmul.f32 %v7836_v32, %v843_v42 }
 0xd71   :  { %854 = vrot.lane.b32.xlu0 %v845_v43, %s8118_s2 }
 0xd7f   :  { %v862_v44 = vpop.permute.xlu1 %861 }
 0xd80   :  { %v871_v47 = vmul.f32 %v862_v44, %v741_v18  ;;  %v864_v53 = vmul.f32 %v862_v44, %v734_v24  ;;  %v224_v18 = vld [vmem:[%s9829_s30] sm:$0xff]  ;;  %s9835_s30 = sld [smem:[#allocation10_spill]] }
 0xd81   :  { %v8442_v25 = vpack.c.bf16 %v225_v21, %v224_v18 }
 0xd83   :  { %v868_v46 = vpop.permute.xlu1 %867 }
 0xd84   :  { %v870_v48 = vmul.f32 %v868_v46, %v851_v45 }
 0xd86   :  { %v8413_v50 = vadd.f32 %v871_v47, %v870_v48 }
 0xd88   :  { %957 = vrot.lane.b32.xlu1 %v8413_v50, %s8115_s10 }
 0xde3   :  { %v855_v51 = vpop.permute.xlu0 %854 }
 0xde4   :  { %v857_v54 = vmul.f32 %v855_v51, %v851_v45 }
 0xde6   :  { %v865_v55 = vadd.f32 %v864_v53, %v857_v54  ;;  %874 = vst.msk [vmem:[#allocation2 + $0x10] sm:$0xf] %vm349_vm2, %v857_v54 }
 0xde8   :  { %7066 = vmatmul.mubr.msk.f32.vlgmr.msra.gmra.mrb[8].mxu1 %vm116_vm0, %v865_v55 }
 0xde9   :  { %7550 = vmatpush3.bf16.msra.mxu1 %v8291_v10  ;;  %7079 = vmatprep.mubr.msk.f32.mxu1 %vm8112_vm1, %v8113_v11 }
 0xdea   :  { %7554 = vmatprep.subr.bf16.mxu1 %v9810_v9 }
 0xdfa   :  { %v958_v3 = vpop.permute.xlu1 %957 }
 0xebb   :  { %v944_v57 = vpop.f32.mrb[8].mxu1 }
 0xebc   :  { %v948_v58 = vadd.f32 %v944_v57, %v8425_v56  ;;  %v7067_v59 = vpop.f32.mrb[9].mxu1 }
 0xebe   :  { %7839 = vtanh.f32 %v948_v58  ;;  %v6685_v61 = vmul.f32 -1.442695, %v948_v58 }
 0xec0   :  { %7841 = vpow2.f32 %v6685_v61  ;;  %v6689_v61 = vld [vmem:[%s9828_s6 + $0x18] sm:$0xf] }
 0xec8   :  { %v7840_v60 = vpop.eup %7839 }
 0xec9   :  { %962 = vrot.lane.b32.xlu0 %v7840_v60, %s8114_s0 }
 0xeca   :  { %v7842_v10 = vpop.eup %7841 }
 0xecb   :  { %v952_v62 = vadd.f32 1.0, %v7842_v10  ;;  %v6694_v10 = vld [vmem:[%s9828_s6 + $0x1c] sm:$0xf] }
 0xecd   :  { %7843 = vrcp.f32 %v952_v62 }
 0xed7   :  { %v7844_v63 = vpop.eup %7843 }
 0xed8   :  { %v960_v4 = vmul.f32 %v7844_v63, %v958_v3 }
 0xf3b   :  { %v963_v0 = vpop.permute.xlu0 %962 }
 0xf3c   :  { %v965_v1 = vmul.f32 %v7844_v63, %v963_v0 }
 0xf3e   :  { %967 = vrot.lane.b32.xlu0 %v965_v1, %s8115_s10 }
 0xf42   :  { %981 = vperm.xlu0 %7787, %v6686_v2   ;;  %v1120_v2 = vsub.f32 1.0, %v6689_v61 }
 0xfb0   :  { %v968_v5 = vpop.permute.xlu0 %967 }
 0xfb1   :  { %v970_v6 = vadd.f32 %v968_v5, %v960_v4  ;;  %v1378_v5 = vsub.f32 1.0, %v6694_v10 }
 0xfb3   :  { %7845 = vtanh.f32 %v970_v6 }
 0xfbd   :  { %v7846_v7 = vpop.eup %7845 }
 0xfbe   :  { %973 = vrot.lane.b32.xlu1 %v7846_v7, %s8117_s11 }
 0xfc1   :  { %v982_v14 = vpop.permute.xlu0 %981 }
 0xfc2   :  { %992 = vperm.xlu1 %7786, %v989_v8  }
0x1030   :  { %v974_v12 = vpop.permute.xlu1 %973 }
0x1031   :  { %v976_v13 = vmul.f32 %v7844_v63, %v974_v12 }
0x1033   :  { %985 = vrot.lane.b32.xlu0 %v976_v13, %s8118_s2 }
0x1037   :  { %998 = vrot.lane.b32.xlu0 %v970_v6, %s8119_s3 }
0x1041   :  { %v993_v17 = vpop.permute.xlu1 %992 }
0x1042   :  { %v995_v23 = vmul.f32 %v993_v17, %v865_v55  ;;  %v1002_v35 = vmul.f32 %v993_v17, %v8413_v50 }
0x10a5   :  { %v986_v22 = vpop.permute.xlu0 %985 }
0x10a6   :  { %v988_v24 = vmul.f32 %v986_v22, %v982_v14 }
0x10a8   :  { %v8444_v26 = vadd.f32 %v995_v23, %v988_v24  ;;  %1005 = vst.msk [vmem:[#allocation2 + $0x14] sm:$0xf] %vm349_vm2, %v988_v24 }
0x10a9   :  { %v999_v32 = vpop.permute.xlu0 %998 }
0x10aa   :  { %7073 = vmatmul.mubr.msk.f32.vlgmr.msra.gmra.mrb[6].mxu0 %vm116_vm0, %v8444_v26  ;;  %v1001_v33 = vmul.f32 %v999_v32, %v982_v14 }
0x10ab   :  { %7553 = vmatpush3.bf16.msra.mxu0 %v8442_v25  ;;  %7086 = vmatprep.mubr.msk.f32.mxu0 %vm8112_vm1, %v8113_v11 }
0x10ac   :  { %7557 = vmatprep.subr.bf16.mxu0 %v9810_v9  ;;  %v8462_v36 = vadd.f32 %v1002_v35, %v1001_v33 }
0x10ae   :  { %7087 = vmatmul.mubr.f32.vlgmr.msra.gmra.mrb[8].mxu0 %v8113_v11 }
0x10af   :  { %7559 = vmatpush3.bf16.msra.mxu0 %v8442_v25  ;;  %7100 = vmatprep.mubr.msk.f32.mxu0 %vm8112_vm1, %v8113_v11 }
0x10b0   :  { %7563 = vmatprep.subr.bf16.mxu0 %v9810_v9 }
0x117d   :  { %v1075_v27 = vpop.f32.mrb[6].mxu0 }
0x117e   :  { %v1079_v28 = vadd.f32 %v1075_v27, %v8312_v15  ;;  %v7074_v29 = vpop.f32.mrb[7].mxu0 }
0x1180   :  { %7847 = vtanh.f32 %v1079_v28  ;;  %v6688_v37 = vmul.f32 -1.442695, %v1079_v28 }
0x1181   :  { %v1334_v30 = vpop.f32.mrb[8].mxu0 }
0x1182   :  { %1339 = vrot.lane.b32.xlu1 %v1334_v30, %s8120_s28  ;;  %v7088_v31 = vpop.f32.mrb[9].mxu0  ;;  %7849 = vpow2.f32 %v6688_v37 }
0x118a   :  { %v7848_v34 = vpop.eup %7847 }
0x118b   :  { %1093 = vrot.lane.b32.xlu1 %v7848_v34, %s8114_s0 }
0x118c   :  { %v7850_v38 = vpop.eup %7849 }
0x118d   :  { %v1083_v41 = vadd.f32 1.0, %v7850_v38 }
0x118f   :  { %1088 = vrot.lane.b32.xlu1 %v8462_v36, %s8115_s10 }
0x11f4   :  { %v1340_v40 = vpop.permute.xlu1 %1339 }
0x11f5   :  { %v1342_v42 = vadd.f32 %v1340_v40, %v8468_v39 }
0x11f7   :  { %7851 = vtanh.f32 %v1342_v42  ;;  %v6693_v47 = vmul.f32 -1.442695, %v1342_v42 }
0x11f8   :  { %7853 = vrcp.f32 %v1083_v41 }
0x11f9   :  { %7855 = vpow2.f32 %v6693_v47 }
0x11fd   :  { %v1094_v44 = vpop.permute.xlu1 %1093 }
0x1201   :  { %v7852_v43 = vpop.eup %7851  ;;  %v1089_v53 = vpop.permute.xlu1 %1088 }
0x1202   :  { %1352 = vrot.lane.b32.xlu0 %v7852_v43, %s8114_s0  ;;  %v7854_v45 = vpop.eup %7853 }
0x1203   :  { %v1096_v46 = vmul.f32 %v7854_v45, %v1094_v44  ;;  %v7856_v48 = vpop.eup %7855  ;;  %v1091_v57 = vmul.f32 %v7854_v45, %v1089_v53 }
0x1204   :  { %v1346_v50 = vadd.f32 1.0, %v7856_v48 }
0x1206   :  { %1098 = vrot.lane.b32.xlu0 %v1096_v46, %s8115_s10  ;;  %7857 = vrcp.f32 %v1346_v50  ;;  %v6697_v46 = vld [vmem:[%s9828_s6 + $0x18] sm:$0xf] }
0x1207   :  { %v1515_v53 = vsub.f32 1.0, %v6697_v46 }
0x1210   :  { %v7858_v51 = vpop.eup %7857 }
0x1211   :  { %v1350_v62 = vmul.f32 0.0, %v7858_v51 }
0x1274   :  { %v1353_v54 = vpop.permute.xlu0 %1352 }
0x1275   :  { %v1355_v55 = vmul.f32 %v7858_v51, %v1353_v54 }
0x1277   :  { %1357 = vrot.lane.b32.xlu1 %v1355_v55, %s8115_s10 }
0x1278   :  { %v1099_v58 = vpop.permute.xlu0 %1098 }
0x1279   :  { %v8474_v59 = vadd.f32 %v1099_v58, %v1091_v57 }
0x127b   :  { %7859 = vtanh.f32 %v8474_v59 }
0x1285   :  { %v7860_v60 = vpop.eup %7859 }
0x1286   :  { %1104 = vrot.lane.b32.xlu0 %v7860_v60, %s8117_s11 }
0x128a   :  { %1112 = vperm.xlu0 %7787, %v6689_v61  }
0x128e   :  { %1370 = vperm.xlu0 %7787, %v6694_v10  }
0x12e9   :  { %v1358_v63 = vpop.permute.xlu1 %1357 }
0x12ea   :  { %v1360_v0 = vadd.f32 %v1358_v63, %v1350_v62 }
0x12ec   :  { %7861 = vtanh.f32 %v1360_v0 }
0x12f6   :  { %v7862_v1 = vpop.eup %7861 }
0x12f7   :  { %1363 = vrot.lane.b32.xlu1 %v7862_v1, %s8117_s11 }
0x12f8   :  { %v1105_v3 = vpop.permute.xlu0 %1104 }
0x12f9   :  { %v1107_v4 = vmul.f32 %v7854_v45, %v1105_v3 }
0x12fb   :  { %1116 = vrot.lane.b32.xlu0 %v1107_v4, %s8118_s2  ;;  %1123 = vperm.xlu1 %7786, %v1120_v2  }
0x12ff   :  { %1381 = vperm.xlu1 %7786, %v1378_v5  }
0x1309   :  { %v8486_v6 = vpop.permute.xlu0 %1112 }
0x130d   :  { %v1371_v7 = vpop.permute.xlu0 %1370 }
0x1369   :  { %v1364_v8 = vpop.permute.xlu1 %1363 }
0x136a   :  { %v1366_v12 = vmul.f32 %v7858_v51, %v1364_v8 }
0x136c   :  { %1374 = vrot.lane.b32.xlu1 %v1366_v12, %s8115_s10 }
0x136d   :  { %v1117_v13 = vpop.permute.xlu0 %1116 }
0x136e   :  { %v1119_v14 = vmul.f32 %v1117_v13, %v8486_v6 }
0x1370   :  { %1136 = vst.msk [vmem:[#allocation2 + $0x18] sm:$0xf] %vm349_vm2, %v1119_v14  ;;  %1387 = vrot.lane.b32.xlu1 %v1360_v0, %s8121_s8 }
0x137a   :  { %v8492_v17 = vpop.permute.xlu1 %1123 }
0x137b   :  { %v1126_v18 = vmul.f32 %v8492_v17, %v8444_v26 }
0x137d   :  { %v8496_v21 = vadd.f32 %v1126_v18, %v1119_v14 }
0x137e   :  { %v1382_v22 = vpop.permute.xlu1 %1381 }
0x137f   :  { %7080 = vmatmul.mubr.msk.f32.vlgmr.msra.gmra.mrb[10].mxu1 %vm116_vm0, %v8496_v21  ;;  %v1384_v24 = vmul.f32 0.0, %v1382_v22 }
0x1380   :  { %7556 = vmatpush3.bf16.msra.mxu1 %v8442_v25  ;;  %7093 = vmatprep.mubr.msk.f32.mxu1 %vm8112_vm1, %v8113_v11 }
0x1381   :  { %7560 = vmatprep.subr.bf16.mxu1 %v9810_v9 }
0x13de   :  { %v1375_v23 = vpop.permute.xlu1 %1374 }
0x13df   :  { %v8504_v27 = vmul.f32 %v1375_v23, %v1371_v7 }
0x13e1   :  { %v1385_v28 = vadd.f32 %v1384_v24, %v8504_v27 }
0x13e2   :  { %v1388_v26 = vpop.permute.xlu1 %1387 }
0x13e3   :  { %v1390_v29 = vmul.f32 %v1388_v26, %v1371_v7  ;;  %7094 = vmatmul.mubr.msk.f32.vlgmr.msra.gmra.mrb[12].mxu1 %vm116_vm0, %v1385_v28 }
0x13e4   :  { %7562 = vmatpush3.bf16.msra.mxu1 %v8442_v25  ;;  %7107 = vmatprep.mubr.msk.f32.mxu1 %vm8112_vm1, %v8113_v11 }
0x13e5   :  { %v1391_v30 = vadd.f32 %v1390_v29, %v1384_v24  ;;  %7566 = vmatprep.subr.bf16.mxu1 %v9810_v9  ;;  %v6700_v24 = vld [vmem:[%s9828_s6 + $0x14] sm:$0xf] }
0x13e7   :  { %1484 = vrot.lane.b32.xlu1 %v1391_v30, %s8118_s2 }
0x1452   :  { %v8513_v31 = vpop.f32.mrb[10].mxu1 }
0x1453   :  { %v7081_v32 = vpop.f32.mrb[11].mxu1 }
0x1454   :  { %v1652_v32 = vsub.f32 1.0, %v6700_v24 }
0x14b6   :  { %v1467_v33 = vpop.f32.mrb[12].mxu1 }
0x14b7   :  { %1472 = vrot.lane.b32.xlu0 %v1467_v33, %s8120_s28  ;;  %v7095_v34 = vpop.f32.mrb[13].mxu1 }
0x1529   :  { %v1473_v35 = vpop.permute.xlu0 %1472 }
0x152a   :  { %v1475_v37 = vadd.f32 %v1473_v35, %v8312_v15  ;;  %v1485_v15 = vpop.permute.xlu1 %1484 }
0x152c   :  { %7863 = vtanh.f32 %v1475_v37  ;;  %v6696_v40 = vmul.f32 -1.442695, %v1475_v37 }
0x152e   :  { %7865 = vpow2.f32 %v6696_v40 }
0x1536   :  { %v7864_v38 = vpop.eup %7863 }
0x1537   :  { %1489 = vrot.lane.b32.xlu0 %v7864_v38, %s8114_s0 }
0x1538   :  { %v7866_v41 = vpop.eup %7865 }
0x1539   :  { %v1479_v42 = vadd.f32 1.0, %v7866_v41 }
0x153b   :  { %7867 = vrcp.f32 %v1479_v42 }
0x1545   :  { %v7868_v43 = vpop.eup %7867 }
0x1546   :  { %v1487_v47 = vmul.f32 %v7868_v43, %v1485_v15 }
0x15a9   :  { %v1490_v44 = vpop.permute.xlu0 %1489 }
0x15aa   :  { %v1492_v45 = vmul.f32 %v7868_v43, %v1490_v44 }
0x15ac   :  { %1494 = vrot.lane.b32.xlu0 %v1492_v45, %s8115_s10 }
0x15b0   :  { %1507 = vperm.xlu0 %7787, %v6697_v46  }
0x161e   :  { %v1495_v48 = vpop.permute.xlu0 %1494 }
0x161f   :  { %v1497_v50 = vadd.f32 %v1495_v48, %v1487_v47 }
0x1621   :  { %7869 = vtanh.f32 %v1497_v50 }
0x162b   :  { %v7870_v51 = vpop.eup %7869 }
0x162c   :  { %1500 = vrot.lane.b32.xlu1 %v7870_v51, %s8117_s11 }
0x162f   :  { %v1508_v57 = vpop.permute.xlu0 %1507 }
0x1630   :  { %1518 = vperm.xlu1 %7786, %v1515_v53  }
0x169e   :  { %v1501_v54 = vpop.permute.xlu1 %1500 }
0x169f   :  { %v1503_v55 = vmul.f32 %v7868_v43, %v1501_v54 }
0x16a1   :  { %1511 = vrot.lane.b32.xlu0 %v1503_v55, %s8115_s10 }
0x16a5   :  { %1524 = vrot.lane.b32.xlu0 %v1497_v50, %s8121_s8 }
0x16af   :  { %v1519_v58 = vpop.permute.xlu1 %1518 }
0x16b0   :  { %v1521_v61 = vmul.f32 %v1519_v58, %v1385_v28  ;;  %v1528_v0 = vmul.f32 %v1519_v58, %v1391_v30 }
0x1713   :  { %v1512_v60 = vpop.permute.xlu0 %1511 }
0x1714   :  { %v8525_v10 = vmul.f32 %v1512_v60, %v1508_v57 }
0x1716   :  { %v1522_v62 = vadd.f32 %v1521_v61, %v8525_v10  ;;  %v6703_v61 = vld [vmem:[%s9828_s6 + $0x10] sm:$0xf] }
0x1717   :  { %v1525_v63 = vpop.permute.xlu0 %1524 }
0x1718   :  { %v1527_v1 = vmul.f32 %v1525_v63, %v1508_v57  ;;  %7101 = vmatmul.mubr.msk.f32.vlgmr.msra.gmra.mrb[10].mxu0 %vm116_vm0, %v1522_v62 }
0x1719   :  { %7565 = vmatpush3.bf16.msra.mxu0 %v8442_v25  ;;  %7114 = vmatprep.mubr.msk.f32.mxu0 %vm8112_vm1, %v8113_v11 }
0x171a   :  { %v1529_v2 = vadd.f32 %v1528_v0, %v1527_v1  ;;  %7569 = vmatprep.subr.bf16.mxu0 %v9810_v9 }
0x171c   :  { %1621 = vrot.lane.b32.xlu0 %v1529_v2, %s8118_s2 }
0x17eb   :  { %v1604_v3 = vpop.f32.mrb[10].mxu0 }
0x17ec   :  { %1609 = vrot.lane.b32.xlu1 %v1604_v3, %s8120_s28  ;;  %v7102_v4 = vpop.f32.mrb[11].mxu0 }
0x185e   :  { %v1610_v5 = vpop.permute.xlu1 %1609 }
0x185f   :  { %v1612_v7 = vadd.f32 %v1610_v5, %v8425_v56  ;;  %v1622_v56 = vpop.permute.xlu0 %1621 }
0x1861   :  { %7871 = vtanh.f32 %v1612_v7  ;;  %v6699_v12 = vmul.f32 -1.442695, %v1612_v7 }
0x1863   :  { %7873 = vpow2.f32 %v6699_v12 }
0x186b   :  { %v7872_v8 = vpop.eup %7871 }
0x186c   :  { %1626 = vrot.lane.b32.xlu1 %v7872_v8, %s8114_s0 }
0x186d   :  { %v7874_v13 = vpop.eup %7873 }
0x186e   :  { %v1616_v14 = vadd.f32 1.0, %v7874_v13 }
0x1870   :  { %7875 = vrcp.f32 %v1616_v14 }
0x187a   :  { %v7876_v18 = vpop.eup %7875 }
0x187b   :  { %v1624_v28 = vmul.f32 %v7876_v18, %v1622_v56 }
0x18de   :  { %v1627_v22 = vpop.permute.xlu1 %1626 }
0x18df   :  { %v1629_v23 = vmul.f32 %v7876_v18, %v1627_v22 }
0x18e1   :  { %1631 = vrot.lane.b32.xlu1 %v1629_v23, %s8115_s10 }
0x18e5   :  { %1644 = vperm.xlu1 %7786, %v6700_v24  }
0x1953   :  { %v1632_v26 = vpop.permute.xlu1 %1631 }
0x1954   :  { %v1634_v29 = vadd.f32 %v1632_v26, %v1624_v28 }
0x1956   :  { %7877 = vtanh.f32 %v1634_v29 }
0x1960   :  { %v7878_v30 = vpop.eup %7877 }
0x1961   :  { %1637 = vrot.lane.b32.xlu0 %v7878_v30, %s8117_s11 }
0x1964   :  { %v1645_v35 = vpop.permute.xlu1 %1644 }
0x1965   :  { %1655 = vperm.xlu0 %7787, %v1652_v32  }
0x19d3   :  { %v1638_v33 = vpop.permute.xlu0 %1637 }
0x19d4   :  { %v1640_v34 = vmul.f32 %v7876_v18, %v1638_v33 }
0x19d6   :  { %1648 = vrot.lane.b32.xlu1 %v1640_v34, %s8115_s10 }
0x19da   :  { %1661 = vrot.lane.b32.xlu1 %v1634_v29, %s8121_s8 }
0x19e4   :  { %v1656_v37 = vpop.permute.xlu0 %1655 }
0x19e5   :  { %v1658_v40 = vmul.f32 %v1656_v37, %v1522_v62  ;;  %v1665_v44 = vmul.f32 %v1656_v37, %v1529_v2  ;;  %v1789_v2 = vsub.f32 1.0, %v6703_v61 }
0x1a48   :  { %v1649_v38 = vpop.permute.xlu1 %1648 }
0x1a49   :  { %v8544_v41 = vmul.f32 %v1649_v38, %v1645_v35 }
0x1a4b   :  { %v1659_v42 = vadd.f32 %v1658_v40, %v8544_v41  ;;  %v6706_v40 = vld [vmem:[%s9828_s6 + $0xc] sm:$0xf] }
0x1a4c   :  { %v1662_v43 = vpop.permute.xlu1 %1661 }
0x1a4d   :  { %v1664_v45 = vmul.f32 %v1662_v43, %v1645_v35  ;;  %7108 = vmatmul.mubr.msk.f32.vlgmr.msra.gmra.mrb[14].mxu1 %vm116_vm0, %v1659_v42 }
0x1a4e   :  { %7568 = vmatpush3.bf16.msra.mxu1 %v8442_v25  ;;  %7121 = vmatprep.mubr.msk.f32.mxu1 %vm8112_vm1, %v8113_v11 }
0x1a4f   :  { %v1666_v46 = vadd.f32 %v1665_v44, %v1664_v45  ;;  %7572 = vmatprep.subr.bf16.mxu1 %v9810_v9 }
0x1a51   :  { %1758 = vrot.lane.b32.xlu1 %v1666_v46, %s8118_s2 }
0x1b20   :  { %v1741_v15 = vpop.f32.mrb[14].mxu1 }
0x1b21   :  { %1746 = vrot.lane.b32.xlu0 %v1741_v15, %s8120_s28  ;;  %v7109_v47 = vpop.f32.mrb[15].mxu1 }
0x1b93   :  { %v1747_v48 = vpop.permute.xlu0 %1746 }
0x1b94   :  { %v1749_v50 = vadd.f32 %v1747_v48, %v8316_v19  ;;  %v1759_v19 = vpop.permute.xlu1 %1758 }
0x1b96   :  { %7879 = vtanh.f32 %v1749_v50  ;;  %v6702_v53 = vmul.f32 -1.442695, %v1749_v50 }
0x1b98   :  { %7881 = vpow2.f32 %v6702_v53 }
0x1ba0   :  { %v7880_v51 = vpop.eup %7879 }
0x1ba1   :  { %1763 = vrot.lane.b32.xlu0 %v7880_v51, %s8114_s0 }
0x1ba2   :  { %v7882_v54 = vpop.eup %7881 }
0x1ba3   :  { %v1753_v55 = vadd.f32 1.0, %v7882_v54 }
0x1ba5   :  { %7883 = vrcp.f32 %v1753_v55 }
0x1baf   :  { %v7884_v57 = vpop.eup %7883 }
0x1bb0   :  { %v1761_v62 = vmul.f32 %v7884_v57, %v1759_v19 }
0x1c13   :  { %v1764_v58 = vpop.permute.xlu0 %1763 }
0x1c14   :  { %v1766_v60 = vmul.f32 %v7884_v57, %v1764_v58 }
0x1c16   :  { %1768 = vrot.lane.b32.xlu0 %v1766_v60, %s8115_s10 }
0x1c1a   :  { %1781 = vperm.xlu0 %7787, %v6703_v61  }
0x1c88   :  { %v1769_v63 = vpop.permute.xlu0 %1768 }
0x1c89   :  { %v1771_v0 = vadd.f32 %v1769_v63, %v1761_v62 }
0x1c8b   :  { %7885 = vtanh.f32 %v1771_v0 }
0x1c95   :  { %v7886_v1 = vpop.eup %7885 }
0x1c96   :  { %1774 = vrot.lane.b32.xlu1 %v7886_v1, %s8117_s11 }
0x1c99   :  { %v1782_v5 = vpop.permute.xlu0 %1781 }
0x1c9a   :  { %1792 = vperm.xlu1 %7786, %v1789_v2  }
0x1d08   :  { %v1775_v3 = vpop.permute.xlu1 %1774 }
0x1d09   :  { %v1777_v4 = vmul.f32 %v7884_v57, %v1775_v3 }
0x1d0b   :  { %1785 = vrot.lane.b32.xlu0 %v1777_v4, %s8115_s10 }
0x1d0f   :  { %1798 = vrot.lane.b32.xlu0 %v1771_v0, %s8121_s8 }
0x1d19   :  { %v1793_v7 = vpop.permute.xlu1 %1792 }
0x1d1a   :  { %v1795_v12 = vmul.f32 %v1793_v7, %v1659_v42  ;;  %v1802_v22 = vmul.f32 %v1793_v7, %v1666_v46  ;;  %v1926_v46 = vsub.f32 1.0, %v6706_v40 }
0x1d7d   :  { %v1786_v8 = vpop.permute.xlu0 %1785 }
0x1d7e   :  { %v8563_v13 = vmul.f32 %v1786_v8, %v1782_v5  ;;  %v6709_v8 = vld [vmem:[%s9828_s6 + $0x8] sm:$0xf] }
0x1d80   :  { %v1796_v14 = vadd.f32 %v1795_v12, %v8563_v13 }
0x1d81   :  { %v1799_v18 = vpop.permute.xlu0 %1798 }
0x1d82   :  { %v1801_v23 = vmul.f32 %v1799_v18, %v1782_v5  ;;  %7115 = vmatmul.mubr.msk.f32.vlgmr.msra.gmra.mrb[12].mxu0 %vm116_vm0, %v1796_v14 }
0x1d83   :  { %7571 = vmatpush3.bf16.msra.mxu0 %v8442_v25  ;;  %7128 = vmatprep.mubr.msk.f32.mxu0 %vm8112_vm1, %v8113_v11 }
0x1d84   :  { %v1803_v24 = vadd.f32 %v1802_v22, %v1801_v23  ;;  %7575 = vmatprep.subr.bf16.mxu0 %v9810_v9  ;;  %v2063_v23 = vsub.f32 1.0, %v6709_v8 }
0x1d86   :  { %1895 = vrot.lane.b32.xlu0 %v1803_v24, %s8118_s2 }
0x1e55   :  { %v1878_v56 = vpop.f32.mrb[12].mxu0 }
0x1e56   :  { %1883 = vrot.lane.b32.xlu1 %v1878_v56, %s8120_s28  ;;  %v7116_v28 = vpop.f32.mrb[13].mxu0 }
0x1ec8   :  { %v1884_v26 = vpop.permute.xlu1 %1883 }
0x1ec9   :  { %v1886_v29 = vadd.f32 %v1884_v26, %v8386_v52  ;;  %v1896_v52 = vpop.permute.xlu0 %1895 }
0x1ecb   :  { %7887 = vtanh.f32 %v1886_v29  ;;  %v6705_v32 = vmul.f32 -1.442695, %v1886_v29 }
0x1ecd   :  { %7889 = vpow2.f32 %v6705_v32 }
0x1ed5   :  { %v7888_v30 = vpop.eup %7887 }
0x1ed6   :  { %1900 = vrot.lane.b32.xlu1 %v7888_v30, %s8114_s0 }
0x1ed7   :  { %v7890_v33 = vpop.eup %7889 }
0x1ed8   :  { %v1890_v34 = vadd.f32 1.0, %v7890_v33 }
0x1eda   :  { %7891 = vrcp.f32 %v1890_v34 }
0x1ee4   :  { %v7892_v35 = vpop.eup %7891 }
0x1ee5   :  { %v1898_v42 = vmul.f32 %v7892_v35, %v1896_v52 }
0x1f48   :  { %v1901_v37 = vpop.permute.xlu1 %1900 }
0x1f49   :  { %v1903_v38 = vmul.f32 %v7892_v35, %v1901_v37 }
0x1f4b   :  { %1905 = vrot.lane.b32.xlu1 %v1903_v38, %s8115_s10 }
0x1f4f   :  { %1918 = vperm.xlu1 %7786, %v6706_v40  }
0x1fbd   :  { %v1906_v43 = vpop.permute.xlu1 %1905 }
0x1fbe   :  { %v1908_v44 = vadd.f32 %v1906_v43, %v1898_v42 }
0x1fc0   :  { %7893 = vtanh.f32 %v1908_v44 }
0x1fca   :  { %v7894_v45 = vpop.eup %7893 }
0x1fcb   :  { %1911 = vrot.lane.b32.xlu0 %v7894_v45, %s8117_s11 }
0x1fce   :  { %v1919_v48 = vpop.permute.xlu1 %1918 }
0x1fcf   :  { %1929 = vperm.xlu0 %7787, %v1926_v46  }
0x203d   :  { %v1912_v15 = vpop.permute.xlu0 %1911 }
0x203e   :  { %v1914_v47 = vmul.f32 %v7892_v35, %v1912_v15 }
0x2040   :  { %1922 = vrot.lane.b32.xlu1 %v1914_v47, %s8115_s10 }
0x2044   :  { %1935 = vrot.lane.b32.xlu1 %v1908_v44, %s8121_s8 }
0x204e   :  { %v1930_v50 = vpop.permute.xlu0 %1929 }
0x204f   :  { %v1932_v53 = vmul.f32 %v1930_v50, %v1796_v14  ;;  %v1939_v58 = vmul.f32 %v1930_v50, %v1803_v24 }
0x20b2   :  { %v1923_v51 = vpop.permute.xlu1 %1922 }
0x20b3   :  { %v8582_v54 = vmul.f32 %v1923_v51, %v1919_v48  ;;  %v6712_v51 = vld [vmem:[%s9828_s6 + $0x4] sm:$0xf] }
0x20b5   :  { %v1933_v55 = vadd.f32 %v1932_v53, %v8582_v54 }
0x20b6   :  { %v1936_v57 = vpop.permute.xlu1 %1935 }
0x20b7   :  { %v1938_v60 = vmul.f32 %v1936_v57, %v1919_v48  ;;  %7122 = vmatmul.mubr.msk.f32.vlgmr.msra.gmra.mrb[16].mxu1 %vm116_vm0, %v1933_v55 }
0x20b8   :  { %7574 = vmatpush3.bf16.msra.mxu1 %v8442_v25  ;;  %7135 = vmatprep.mubr.msk.f32.mxu1 %vm8112_vm1, %v8113_v11 }
0x20b9   :  { %v1940_v61 = vadd.f32 %v1939_v58, %v1938_v60  ;;  %7578 = vmatprep.subr.bf16.mxu1 %v9810_v9  ;;  %v2200_v60 = vsub.f32 1.0, %v6712_v51 }
0x20bb   :  { %2032 = vrot.lane.b32.xlu1 %v1940_v61, %s8118_s2 }
0x218a   :  { %v2015_v19 = vpop.f32.mrb[16].mxu1 }
0x218b   :  { %2020 = vrot.lane.b32.xlu0 %v2015_v19, %s8120_s28  ;;  %v7123_v62 = vpop.f32.mrb[17].mxu1 }
0x21fd   :  { %v2021_v63 = vpop.permute.xlu0 %2020 }
0x21fe   :  { %v2023_v0 = vadd.f32 %v2021_v63, %v8314_v16  ;;  %v2033_v16 = vpop.permute.xlu1 %2032 }
0x2200   :  { %7895 = vtanh.f32 %v2023_v0  ;;  %v6708_v25 = vmul.f32 -1.442695, %v2023_v0 }
0x2202   :  { %7897 = vpow2.f32 %v6708_v25 }
0x220a   :  { %v7896_v1 = vpop.eup %7895 }
0x220b   :  { %2037 = vrot.lane.b32.xlu0 %v7896_v1, %s8114_s0 }
0x220c   :  { %v7898_v2 = vpop.eup %7897 }
0x220d   :  { %v2027_v3 = vadd.f32 1.0, %v7898_v2 }
0x220f   :  { %7899 = vrcp.f32 %v2027_v3 }
0x2219   :  { %v7900_v4 = vpop.eup %7899 }
0x221a   :  { %v2035_v12 = vmul.f32 %v7900_v4, %v2033_v16 }
0x227d   :  { %v2038_v5 = vpop.permute.xlu0 %2037 }
0x227e   :  { %v2040_v7 = vmul.f32 %v7900_v4, %v2038_v5 }
0x2280   :  { %2042 = vrot.lane.b32.xlu0 %v2040_v7, %s8115_s10 }
0x2284   :  { %2055 = vperm.xlu0 %7787, %v6709_v8   ;;  %v1133_v8 = vmul.f32 %v8492_v17, %v8462_v36 }
0x22f2   :  { %v2043_v14 = vpop.permute.xlu0 %2042 }
0x22f3   :  { %v2045_v18 = vadd.f32 %v2043_v14, %v2035_v12 }
0x22f5   :  { %7901 = vtanh.f32 %v2045_v18 }
0x22ff   :  { %v7902_v22 = vpop.eup %7901 }
0x2300   :  { %2048 = vrot.lane.b32.xlu1 %v7902_v22, %s8117_s11 }
0x2303   :  { %v2056_v28 = vpop.permute.xlu0 %2055 }
0x2304   :  { %2066 = vperm.xlu1 %7786, %v2063_v23  }
0x2372   :  { %v2049_v24 = vpop.permute.xlu1 %2048 }
0x2373   :  { %v2051_v56 = vmul.f32 %v7900_v4, %v2049_v24  ;;  %v6692_v24 = vld [vmem:[%s9828_s6 + $0x1c] sm:$0xf] }
0x2375   :  { %2059 = vrot.lane.b32.xlu0 %v2051_v56, %s8115_s10  ;;  %v2326_v56 = vld [vmem:[%s9828_s6] sm:$0xf] }
0x2379   :  { %2072 = vrot.lane.b32.xlu0 %v2045_v18, %s8121_s8 }
0x2383   :  { %v2067_v26 = vpop.permute.xlu1 %2066 }
0x2384   :  { %v2069_v30 = vmul.f32 %v2067_v26, %v1933_v55  ;;  %v2076_v35 = vmul.f32 %v2067_v26, %v1940_v61  ;;  %v1210_v61 = vadd.f32 %v8513_v31, %v8468_v39 }
0x2386   :  { %v6691_v0 = vmul.f32 -1.442695, %v1210_v61 }
0x23e7   :  { %v2060_v29 = vpop.permute.xlu0 %2059 }
0x23e8   :  { %v8601_v32 = vmul.f32 %v2060_v29, %v2056_v28 }
0x23ea   :  { %v2070_v33 = vadd.f32 %v2069_v30, %v8601_v32 }
0x23eb   :  { %v2073_v34 = vpop.permute.xlu0 %2072 }
0x23ec   :  { %v2075_v37 = vmul.f32 %v2073_v34, %v2056_v28  ;;  %7129 = vmatmul.mubr.msk.f32.vlgmr.msra.gmra.mrb[14].mxu0 %vm116_vm0, %v2070_v33 }
0x23ed   :  { %7142 = vmatprep.mubr.msk.f32.mxu0 %vm8112_vm1, %v8113_v11 }
0x23ee   :  { %v8607_v38 = vadd.f32 %v2076_v35, %v2075_v37 }
0x23f0   :  { %2169 = vrot.lane.b32.xlu0 %v8607_v38, %s8118_s2 }
0x24bf   :  { %v2152_v40 = vpop.f32.mrb[14].mxu0 }
0x24c0   :  { %2157 = vrot.lane.b32.xlu1 %v2152_v40, %s8120_s28  ;;  %v7130_v52 = vpop.f32.mrb[15].mxu0 }
0x2532   :  { %v2158_v42 = vpop.permute.xlu1 %2157 }
0x2533   :  { %v2160_v43 = vadd.f32 %v2158_v42, %v8350_v49  ;;  %v2170_v49 = vpop.permute.xlu0 %2169 }
0x2535   :  { %7903 = vtanh.f32 %v2160_v43  ;;  %v6711_v45 = vmul.f32 -1.442695, %v2160_v43 }
0x2537   :  { %7905 = vpow2.f32 %v6711_v45 }
0x253f   :  { %v7904_v44 = vpop.eup %7903 }
0x2540   :  { %2174 = vrot.lane.b32.xlu1 %v7904_v44, %s8114_s0 }
0x2541   :  { %v7906_v46 = vpop.eup %7905 }
0x2542   :  { %v2164_v15 = vadd.f32 1.0, %v7906_v46 }
0x2544   :  { %7907 = vrcp.f32 %v2164_v15 }
0x254e   :  { %v7908_v47 = vpop.eup %7907 }
0x254f   :  { %v2172_v53 = vmul.f32 %v7908_v47, %v2170_v49 }
0x25b2   :  { %v2175_v48 = vpop.permute.xlu1 %2174 }
0x25b3   :  { %v2177_v50 = vmul.f32 %v7908_v47, %v2175_v48 }
0x25b5   :  { %2179 = vrot.lane.b32.xlu1 %v2177_v50, %s8115_s10 }
0x25b9   :  { %2192 = vperm.xlu1 %7786, %v6712_v51  }
0x2627   :  { %v2180_v55 = vpop.permute.xlu1 %2179 }
0x2628   :  { %v2182_v57 = vadd.f32 %v2180_v55, %v2172_v53 }
0x262a   :  { %7909 = vtanh.f32 %v2182_v57 }
0x262b   :  { %7911 = vtanh.f32 %v1210_v61 }
0x262c   :  { %7913 = vpow2.f32 %v6691_v0  ;;  %v2359_v0 = vld [vmem:[%s9831_s4] sm:$0xff] }
0x2634   :  { %v7910_v58 = vpop.eup %7909 }
0x2635   :  { %2185 = vrot.lane.b32.xlu0 %v7910_v58, %s8117_s11  ;;  %v7912_v63 = vpop.eup %7911 }
0x2636   :  { %v7914_v1 = vpop.eup %7913 }
0x2637   :  { %v1214_v25 = vadd.f32 1.0, %v7914_v1  ;;  %v2360_v1 = vld [vmem:[%s9831_s4 + $0x8] sm:$0xff] }
0x2638   :  { %v2193_v2 = vpop.permute.xlu1 %2192 }
0x2639   :  { %2203 = vperm.xlu0 %7787, %v2200_v60   ;;  %7915 = vrcp.f32 %v1214_v25  ;;  %v1251_v60 = vsub.f32 1.0, %v6692_v24  ;;  %v7576_v25 = vpack.c.bf16 %v2360_v1, %v2359_v0 }
0x263b   :  { %7577 = vmatpush3.bf16.msra.mxu0 %v7576_v25 }
0x263c   :  { %7581 = vmatprep.subr.bf16.mxu0 %v9810_v9 }
0x2643   :  { %v7916_v14 = vpop.eup %7915 }
0x26a7   :  { %v2186_v19 = vpop.permute.xlu0 %2185 }
0x26a8   :  { %v2188_v62 = vmul.f32 %v7908_v47, %v2186_v19 }
0x26aa   :  { %2196 = vrot.lane.b32.xlu1 %v2188_v62, %s8115_s10 }
0x26ae   :  { %1129 = vrot.lane.b32.xlu1 %v8474_v59, %s8119_s3 }
0x26b2   :  { %1224 = vrot.lane.b32.xlu1 %v7912_v63, %s8114_s0  ;;  %v2337_v63 = vsub.f32 1.0, %v2326_v56 }
0x26b8   :  { %v2204_v3 = vpop.permute.xlu0 %2203 }
0x26b9   :  { %v2206_v39 = vmul.f32 %v2204_v3, %v2070_v33  ;;  %v2213_v52 = vmul.f32 %v2204_v3, %v8607_v38 }
0x271c   :  { %v2197_v4 = vpop.permute.xlu1 %2196 }
0x271d   :  { %v2199_v31 = vmul.f32 %v2197_v4, %v2193_v2 }
0x271f   :  { %v8625_v5 = vadd.f32 %v2206_v39, %v2199_v31 }
0x2720   :  { %v1130_v7 = vpop.permute.xlu1 %1129 }
0x2721   :  { %v1132_v59 = vmul.f32 %v1130_v7, %v8486_v6  ;;  %7136 = vmatmul.mubr.msk.f32.vlgmr.msra.gmra.mrb[18].mxu1 %vm116_vm0, %v8625_v5 }
0x2722   :  { %7149 = vmatprep.mubr.msk.f32.mxu1 %vm8112_vm1, %v8113_v11 }
0x2723   :  { %v8634_v16 = vadd.f32 %v1133_v8, %v1132_v59 }
0x2724   :  { %v1225_v12 = vpop.permute.xlu1 %1224 }
0x2725   :  { %1219 = vrot.lane.b32.xlu1 %v8634_v16, %s8115_s10  ;;  %v1227_v18 = vmul.f32 %v7916_v14, %v1225_v12 }
0x2729   :  { %1229 = vrot.lane.b32.xlu1 %v1227_v18, %s8115_s10 }
0x2797   :  { %v1220_v22 = vpop.permute.xlu1 %1219 }
0x2798   :  { %v1222_v36 = vmul.f32 %v7916_v14, %v1220_v22 }
0x279b   :  { %v1230_v17 = vpop.permute.xlu1 %1229 }
0x279c   :  { %v8639_v6 = vadd.f32 %v1230_v17, %v1222_v36  ;;  %v2686_v17 = vld [vmem:[%s9788_s16 + $0x10] sm:$0xff] }
0x279e   :  { %7917 = vtanh.f32 %v8639_v6 }
0x27a8   :  { %v7918_v23 = vpop.eup %7917 }
0x27a9   :  { %1235 = vrot.lane.b32.xlu1 %v7918_v23, %s8117_s11  ;;  %v2687_v23 = vld [vmem:[%s9788_s16 + $0x18] sm:$0xff] }
0x27ad   :  { %1243 = vperm.xlu1 %7786, %v6692_v24  }
0x27b1   :  { %2329 = vperm.xlu1 %7786, %v2326_v56  }
0x27f4   :  { %v2289_v28 = vpop.f32.mrb[18].mxu1 }
0x27f5   :  { %2294 = vrot.lane.b32.xlu0 %v2289_v28, %s8120_s28  ;;  %v7137_v26 = vpop.f32.mrb[19].mxu1  ;;  %v7591_v28 = vpack.c.bf16 %v2687_v23, %v2686_v17 }
0x27f9   :  { %2209 = vrot.lane.b32.xlu0 %v2182_v57, %s8121_s8 }
0x281b   :  { %v1236_v29 = vpop.permute.xlu1 %1235 }
0x281c   :  { %v1238_v30 = vmul.f32 %v7916_v14, %v1236_v29 }
0x281e   :  { %1247 = vrot.lane.b32.xlu1 %v1238_v30, %s8118_s2 }
0x2822   :  { %2216 = vrot.lane.b32.xlu1 %v2199_v31, %s8115_s10 }
0x2826   :  { %2079 = vrot.lane.b32.xlu1 %v8601_v32, %s8115_s10 }
0x282c   :  { %v8662_v43 = vpop.permute.xlu1 %1243 }
0x2830   :  { %v8664_v44 = vpop.permute.xlu1 %2329 }
0x2867   :  { %v2295_v33 = vpop.permute.xlu0 %2294 }
0x2868   :  { %v2297_v34 = vadd.f32 %v2295_v33, %v8318_v20 }
0x286a   :  { %7919 = vtanh.f32 %v2297_v34  ;;  %v6714_v46 = vmul.f32 -1.442695, %v2297_v34 }
0x286b   :  { %v2210_v35 = vpop.permute.xlu0 %2209 }
0x286c   :  { %v2212_v37 = vmul.f32 %v2210_v35, %v2193_v2  ;;  %7921 = vpow2.f32 %v6714_v46 }
0x286e   :  { %v8658_v42 = vadd.f32 %v2213_v52, %v2212_v37  ;;  %v2928_v37 = vld [vmem:[%s9797_s25 + $0x8] sm:$0xff] }
0x2874   :  { %v7920_v40 = vpop.eup %7919 }
0x2875   :  { %2311 = vrot.lane.b32.xlu0 %v7920_v40, %s8114_s0 }
0x2876   :  { %v7922_v15 = vpop.eup %7921 }
0x2877   :  { %v2301_v47 = vadd.f32 1.0, %v7922_v15 }
0x2879   :  { %2306 = vrot.lane.b32.xlu0 %v8658_v42, %s8118_s2  ;;  %7923 = vrcp.f32 %v2301_v47  ;;  %s9830_s2 = sld [smem:[#allocation15_spill]] }
0x287f   :  { %v2357_v61 = vld [vmem:[%s9830_s2] sm:$0xff]  ;;  %v2358_v19 = vld [vmem:[%s9830_s2 + $0x8] sm:$0xff]  ;;  %s9833_s2 = sld [smem:[#allocation17_spill]] }
0x2880   :  { %v7579_v62 = vpack.c.bf16 %v2358_v19, %v2357_v61  ;;  %v8803_v61 = vld [vmem:[%s9832_s7 + $0x8] sm:$0xff]  }
0x2882   :  { %7580 = vmatpush3.bf16.msra.mxu1 %v7579_v62  ;;  %v8816_v62 = vld [vmem:[%s9832_s7 + $0x10] sm:$0xff]  }
0x2883   :  { %v7924_v48 = vpop.eup %7923  ;;  %7584 = vmatprep.subr.bf16.mxu1 %v9810_v9 }
0x2885   :  { %v6717_v0 = vld [vmem:[%s9833_s2] ss:$0 sm:$0xff] }
0x2890   :  { %v1248_v32 = vpop.permute.xlu1 %1247 }
0x2891   :  { %v1250_v20 = vmul.f32 %v1248_v32, %v8662_v43 }
0x2893   :  { %1267 = vst.msk [vmem:[#allocation2 + $0x1c] sm:$0xf] %vm349_vm2, %v1250_v20 }
0x2894   :  { %v2217_v45 = vpop.permute.xlu1 %2216 }
0x2895   :  { %2219 = vst.msk [vmem:[#allocation2 + $0x4] sm:$0xf] %vm1396_vm3, %v2217_v45 }
0x2898   :  { %v2080_v38 = vpop.permute.xlu1 %2079 }
0x2899   :  { %2082 = vst.msk [vmem:[#allocation2 + $0x8] sm:$0xf] %vm1396_vm3, %v2080_v38 }
0x28e7   :  { %v2312_v50 = vpop.permute.xlu0 %2311 }
0x28e8   :  { %v2314_v51 = vmul.f32 %v7924_v48, %v2312_v50 }
0x28ea   :  { %2316 = vrot.lane.b32.xlu0 %v2314_v51, %s8115_s10 }
0x28eb   :  { %v2307_v49 = vpop.permute.xlu0 %2306 }
0x28ec   :  { %v2309_v53 = vmul.f32 %v7924_v48, %v2307_v49  ;;  %v3176_v49 = vld [vmem:[%s9787_s15] sm:$0xff] }
0x295c   :  { %v2317_v55 = vpop.permute.xlu0 %2316 }
0x295d   :  { %v2319_v57 = vadd.f32 %v2317_v55, %v2309_v53  ;;  %v3177_v53 = vld [vmem:[%s9787_s15 + $0x8] sm:$0xff]  ;;  %v8786_v55 = vld [vmem:[%s9832_s7] sm:$0xff]   ;;  %s9834_s7 = sld [smem:[#allocation8_spill]] }
0x295f   :  { %7925 = vtanh.f32 %v2319_v57 }
0x2969   :  { %v7926_v58 = vpop.eup %7925 }
0x296a   :  { %2322 = vrot.lane.b32.xlu0 %v7926_v58, %s8117_s11  ;;  %v3178_v58 = vld [vmem:[%s9787_s15 + $0x10] sm:$0xff] }
0x296e   :  { %1254 = vperm.xlu0 %7787, %v1251_v60   ;;  %v3179_v60 = vld [vmem:[%s9787_s15 + $0x18] sm:$0xff] }
0x296f   :  { %v8808_v19 = vpack.c.bf16 %v3179_v60, %v3178_v58 }
0x2972   :  { %2340 = vperm.xlu0 %7787, %v2337_v63  }
0x29dc   :  { %v2323_v2 = vpop.permute.xlu0 %2322 }
0x29dd   :  { %v2325_v3 = vmul.f32 %v7924_v48, %v2323_v2 }
0x29df   :  { %2333 = vrot.lane.b32.xlu0 %v2325_v3, %s8115_s10 }
0x29e3   :  { %2346 = vrot.lane.b32.xlu0 %v2319_v57, %s8121_s8  ;;  %v8790_v57 = vpack.c.bf16 %v3177_v53, %v3176_v49 }
0x29e7   :  { %1942 = vrot.lane.b32.xlu0 %v8582_v54, %s8115_s10  ;;  %v2518_v54 = vld [vmem:[%s9785_s13] sm:$0xff] }
0x29eb   :  { %1668 = vrot.lane.b32.xlu0 %v8544_v41, %s8115_s10  ;;  %v2519_v41 = vld [vmem:[%s9785_s13 + $0x8] sm:$0xff] }
0x29ec   :  { %v7582_v14 = vpack.c.bf16 %v2519_v41, %v2518_v54  ;;  %v3547_v41 = vld [vmem:[%s9793_s21 + $0x10] sm:$0xff] }
0x29ed   :  { %v8692_v4 = vpop.permute.xlu0 %1254 }
0x29ee   :  { %v1257_v39 = vmul.f32 %v8692_v4, %v8496_v21  ;;  %v2684_v21 = vld [vmem:[%s9788_s16] sm:$0xff] }
0x29ef   :  { %1393 = vrot.lane.b32.xlu0 %v8504_v27, %s8115_s10  ;;  %v2685_v27 = vld [vmem:[%s9788_s16 + $0x8] sm:$0xff] }
0x29f0   :  { %v1258_v31 = vadd.f32 %v1257_v39, %v1250_v20  ;;  %v7587_v22 = vpack.c.bf16 %v2685_v27, %v2684_v21  ;;  %v8753_v20 = vld [vmem:[#allocation2 + $0x8] sm:$0xf] }
0x29f1   :  { %v2341_v7 = vpop.permute.xlu0 %2340 }
0x29f2   :  { %7150 = vmatmul.mubr.msk.f32.vlgmr.msra.gmra.mrb[20].mxu1 %vm116_vm0, %v1258_v31  ;;  %v2343_v59 = vmul.f32 %v2341_v7, %v8625_v5  ;;  %v2350_v24 = vmul.f32 %v2341_v7, %v8658_v42  ;;  %v3545_v31 = vld [vmem:[%s9793_s21] sm:$0xff]  ;;  %v3546_v7 = vld [vmem:[%s9793_s21 + $0x8] sm:$0xff] }
0x29f3   :  { %7163 = vmatprep.mubr.msk.f32.mxu1 %vm8112_vm1, %v8113_v11  ;;  %v7622_v54 = vpack.c.bf16 %v3546_v7, %v3545_v31 }
0x2a51   :  { %v2334_v8 = vpop.permute.xlu0 %2333 }
0x2a52   :  { %v2336_v12 = vmul.f32 %v2334_v8, %v8664_v44  ;;  %v3548_v8 = vld [vmem:[%s9793_s21 + $0x18] sm:$0xff] }
0x2a53   :  { %v7625_v27 = vpack.c.bf16 %v3548_v8, %v3547_v41 }
0x2a54   :  { %v2344_v18 = vadd.f32 %v2343_v59, %v2336_v12  ;;  %2353 = vrot.lane.b32.xlu1 %v2336_v12, %s8115_s10 }
0x2a55   :  { %v2347_v36 = vpop.permute.xlu0 %2346 }
0x2a56   :  { %v2349_v5 = vmul.f32 %v2347_v36, %v8664_v44  ;;  %7143 = vmatmul.mubr.msk.f32.vlgmr.msra.gmra.mrb[16].mxu0 %vm116_vm0, %v2344_v18  ;;  %v8748_v44 = vld [vmem:[#allocation2 + $0x4] sm:$0xf] }
0x2a57   :  { %7583 = vmatpush3.bf16.msra.mxu0 %v7582_v14  ;;  %7156 = vmatprep.mubr.msk.f32.mxu0 %vm8112_vm1, %v8113_v11 }
0x2a58   :  { %v2351_v56 = vadd.f32 %v2350_v24, %v2349_v5  ;;  %1805 = vrot.lane.b32.xlu1 %v8563_v13, %s8115_s10  ;;  %7588 = vmatprep.subr.bf16.mxu0 %v7587_v22 }
0x2a59   :  { %v1943_v26 = vpop.permute.xlu0 %1942 }
0x2a5a   :  { %1945 = vst.msk [vmem:[#allocation2 + $0xc] sm:$0xf] %vm1396_vm3, %v1943_v26  ;;  %7157 = vmatmul.mubr.msk.f32.vlgmr.msra.gmra.mrb[18].mxu0 %vm116_vm0, %v2351_v56 }
0x2a5b   :  { %7590 = vmatpush3.bf16.msra.mxu0 %v7587_v22 }
0x2a5c   :  { %1531 = vrot.lane.b32.xlu1 %v8525_v10, %s8115_s10  ;;  %7592 = vmatprep.subr.bf16.mxu0 %v7591_v28  ;;  %v2927_v10 = vld [vmem:[%s9797_s25] sm:$0xff] }
0x2a5d   :  { %v1669_v29 = vpop.permute.xlu0 %1668  ;;  %v8755_v45 = vpack.c.bf16 %v2928_v37, %v2927_v10 }
0x2a5e   :  { %1671 = vst.msk [vmem:[#allocation2 + $0x14] sm:$0xf] %vm1396_vm3, %v1669_v29 }
0x2a5f   :  { %7594 = vmatpush3.bf16.msra.mxu0 %v7591_v28  ;;  %v6725_v28 = vld [vmem:[%s9789_s17] ss:$0 sm:$0xff] }
0x2a60   :  { %7598 = vmatprep.subr.bf16.mxu0 %v9810_v9 }
0x2a61   :  { %v1394_v30 = vpop.permute.xlu0 %1393  ;;  %v8744_v40 = vld [vmem:[#allocation2 + $0xc] sm:$0xf] }
0x2a62   :  { %1397 = vst.msk [vmem:[#allocation2 + $0x1c] sm:$0xf] %vm1396_vm3, %v1394_v30  ;;  %v2697_v38 = vcombine.low %v8753_v20, %v8744_v40 }
0x2a65   :  { %v8763_v15 = vld [vmem:[#allocation2 + $0x14] sm:$0xf] }
0x2a69   :  { %v8772_v50 = vld [vmem:[#allocation2 + $0x1c] sm:$0xf] }
0x2ac5   :  { %v2503_v13 = vpop.f32.mrb[20].mxu1 }
0x2ac6   :  { %v2354_v33 = vpop.permute.xlu1 %2353  ;;  %v7151_v34 = vpop.f32.mrb[21].mxu1 }
0x2ac7   :  { %2356 = vst.msk [vmem:[#allocation2] sm:$0xf] %vm1396_vm3, %v2354_v33 }
0x2aca   :  { %v1806_v35 = vpop.permute.xlu1 %1805 }
0x2acb   :  { %1808 = vst.msk [vmem:[#allocation2 + $0x10] sm:$0xf] %vm1396_vm3, %v1806_v35 }
0x2ace   :  { %v1532_v52 = vpop.permute.xlu1 %1531  ;;  %v8746_v42 = vld [vmem:[#allocation2] sm:$0xf] }
0x2acf   :  { %1534 = vst.msk [vmem:[#allocation2 + $0x18] sm:$0xf] %vm1396_vm3, %v1532_v52  ;;  %v2696_v32 = vcombine.low %v8746_v42, %v8748_v44 }
0x2ad1   :  { %7174 = vmatprep.mubr.msk.f32.mxu0 %vm2700_vm4, %v2696_v32 }
0x2ad2   :  { %7175 = vmatmul.mubr.msk.f32.vlgmr.msra.gmra.mrb[20].mxu0 %vm2700_vm4, %v2697_v38  ;;  %v8761_v46 = vld [vmem:[#allocation2 + $0x10] sm:$0xf] }
0x2ad3   :  { %v2698_v47 = vcombine.low %v8761_v46, %v8763_v15  ;;  %7600 = vmatpush3.bf16.msra.mxu0 %v8755_v45 }
0x2ad4   :  { %7609 = vmatprep.subr.bf16.mxu0 %v9810_v9 }
0x2ad5   :  { %7177 = vmatprep.mubr.msk.f32.mxu0 %vm2700_vm4, %v2698_v47 }
0x2ad6   :  { %v8770_v48 = vld [vmem:[#allocation2 + $0x18] sm:$0xf] }
0x2ad7   :  { %v2699_v51 = vcombine.low %v8770_v48, %v8772_v50 }
0x2ad9   :  { %7178 = vmatmul.mubr.msk.f32.gmra.mrb[22].mxu0 %vm2700_vm4, %v2699_v51 }
0x2ada   :  { %7197 = vmatprep.mubr.msk.f32.mxu0 %vm8112_vm1, %v8113_v11 }
0x2add   :  { %7198 = vmatmul.mubr.msk.f32.vlgmr.msra.gmra.mrb[24].mxu0 %vm116_vm0, %v8786_v55 }
0x2ade   :  { %7611 = vmatpush3.bf16.msra.mxu0 %v8790_v57  ;;  %7200 = vmatprep.mubr.msk.f32.mxu0 %vm8112_vm1, %v8113_v11 }
0x2adf   :  { %7612 = vmatprep.subr.bf16.mxu0 %v9810_v9 }
0x2ae1   :  { %7201 = vmatmul.mubr.msk.f32.gmra.mrb[26].mxu0 %vm116_vm0, %v8803_v61 }
0x2ae2   :  { %7203 = vmatprep.mubr.msk.f32.mxu0 %vm8112_vm1, %v8113_v11  ;;  %7614 = vmatpush3.bf16.msra.mxu0 %v8808_v19 }
0x2ae3   :  { %7621 = vmatprep.subr.bf16.mxu0 %v9810_v9 }
0x2ae5   :  { %7204 = vmatmul.mubr.msk.f32.gmra.mrb[28].mxu0 %vm116_vm0, %v8816_v62 }
0x2ae6   :  { %7228 = vmatprep.mubr.msk.f32.mxu0 %vm8112_vm1, %v8113_v11 }
0x2b29   :  { %v2430_v63 = vpop.f32.mrb[16].mxu0 }
0x2b2a   :  { %v2504_v1 = vadd.f32 %v2503_v13, %v2430_v63  ;;  %v7144_v25 = vpop.f32.mrb[17].mxu0 }
0x2b2c   :  { %v2514_v2 = vadd.f32 %v6717_v0, %v2504_v1 }
0x2b2d   :  { %v8829_v3 = vpop.f32.mrb[18].mxu0 }
0x2b2e   :  { %7927 = vtanh.f32 %v2514_v2  ;;  %v7158_v39 = vpop.f32.mrb[19].mxu0  ;;  %v8888_v2 = vld [vmem:[%s9790_s18] ss:$0 sm:$0xff] }
0x2b38   :  { %v7928_v21 = vpop.eup %7927 }
0x2b39   :  { %7229 = vmatmul.mubr.msk.f32.vlgmr.msra.gmra.mrb[30].mxu0 %vm2700_vm4, %v7928_v21 }
0x2b3a   :  { %7623 = vmatpush3.bf16.msra.mxu0 %v7622_v54  ;;  %7250 = vmatprep.mubr.msk.f32.mxu0 %vm8112_vm1, %v8113_v11 }
0x2b3b   :  { %7624 = vmatprep.subr.bf16.mxu0 %v9810_v9 }
0x2b3e   :  { %7626 = vmatpush3.bf16.msra.mxu0 %v7625_v27 }
0x2b3f   :  { %7633 = vmatprep.subr.bf16.mxu0 %v9810_v9 }
0x2b41   :  { %7251 = vmatmul.mubr.msk.f32.vlgmr.msra.gmra.mrb[32].mxu0 %vm2700_vm4, %v7928_v21 }
0x2b42   :  { %7272 = vmatprep.mubr.msk.f32.mxu0 %vm8112_vm1, %v8113_v11 }
0x2ba5   :  { %v7176_v59 = vpop.f32.mrb[20].mxu0 }
0x2ba6   :  { %v2775_v12 = vpop.f32.mrb[21].mxu0  ;;  %v2799_v26 = vcombine.high %v7176_v59, %v7176_v59  ;;  %v8860_v29 = vadd.f32 %v7176_v59, %v6725_v28 }
0x2ba7   :  { %v2798_v56 = vcombine.high %v2775_v12, %v2775_v12  ;;  %v8862_v30 = vadd.f32 %v6725_v28, %v2775_v12 }
0x2ba8   :  { %v8868_v35 = vadd.f32 %v6725_v28, %v2799_v26 }
0x2ba9   :  { %v8864_v13 = vadd.f32 %v6725_v28, %v2798_v56 }
0x2bac   :  { %v7179_v14 = vpop.f32.mrb[22].mxu0 }
0x2bad   :  { %v2785_v18 = vpop.f32.mrb[23].mxu0  ;;  %v8873_v38 = vadd.f32 %v7179_v14, %v6725_v28  ;;  %v2801_v58 = vcombine.high %v7179_v14, %v7179_v14 }
0x2bae   :  { %v8866_v33 = vadd.f32 %v6725_v28, %v2785_v18  ;;  %v2800_v47 = vcombine.high %v2785_v18, %v2785_v18 }
0x2baf   :  { %v8883_v25 = vadd.f32 %v6725_v28, %v2801_v58 }
0x2bb0   :  { %v8851_v22 = vpop.f32.mrb[24].mxu0  ;;  %v8878_v60 = vadd.f32 %v6725_v28, %v2800_v47 }
0x2bb1   :  { %v7199_v36 = vpop.f32.mrb[25].mxu0 }
0x2bb4   :  { %v8853_v17 = vpop.f32.mrb[26].mxu0 }
0x2bb5   :  { %v7202_v23 = vpop.f32.mrb[27].mxu0 }
0x2bb8   :  { %v8855_v24 = vpop.f32.mrb[28].mxu0 }
0x2bb9   :  { %v7205_v5 = vpop.f32.mrb[29].mxu0 }
0x2c0c   :  { %v3249_v34 = vpop.f32.mrb[30].mxu0 }
0x2c0d   :  { %v7230_v10 = vpop.f32.mrb[31].mxu0  ;;  %v3254_v37 = vadd.f32 %v3249_v34, %v8864_v13  ;;  %v3253_v52 = vadd.f32 %v3249_v34, %v8862_v30  ;;  %v3255_v32 = vadd.f32 %v3249_v34, %v8860_v29  ;;  %v3257_v51 = vadd.f32 %v3249_v34, %v8866_v33 }
0x2c0e   :  { %v3256_v49 = vadd.f32 %v3249_v34, %v8868_v35  ;;  %v3259_v53 = vadd.f32 %v3249_v34, %v8873_v38  ;;  %v3258_v0 = vadd.f32 %v3249_v34, %v8878_v60  ;;  %v3260_v39 = vadd.f32 %v3249_v34, %v8883_v25 }
0x2c0f   :  { %7929 = vtanh.f32 %v3254_v37 }
0x2c10   :  { %7931 = vtanh.f32 %v3253_v52 }
0x2c11   :  { %7933 = vtanh.f32 %v3255_v32 }
0x2c12   :  { %7935 = vtanh.f32 %v3257_v51 }
0x2c13   :  { %7937 = vtanh.f32 %v3256_v49  ;;  %v2516_v49 = vld [vmem:[%s9784_s12] sm:$0xff] }
0x2c14   :  { %v8880_v63 = vpop.f32.mrb[32].mxu0  ;;  %7939 = vtanh.f32 %v3259_v53  ;;  %v2517_v53 = vld [vmem:[%s9784_s12 + $0x8] sm:$0xff] }
0x2c15   :  { %v7252_v1 = vpop.f32.mrb[33].mxu0  ;;  %7941 = vtanh.f32 %v3258_v0  ;;  %v7585_v58 = vpack.c.bf16 %v2517_v53, %v2516_v49  ;;  %v3318_v0 = vlaneseq  ;;  %v8946_v49 = vld [vmem:[%s9834_s7] sm:$0xff] }
0x2c16   :  { %7943 = vtanh.f32 %v3260_v39  ;;  %vm3309_vm13 = vcmp.gt.f32.partialorder %v8946_v49, 0.0 }
0x2c17   :  { %7586 = vmatpush3.bf16.msra.mxu1 %v7585_v58  ;;  %v8916_v1 = vand.u32 127, %v3318_v0  ;;  %v8918_v39 = vshrl.u32 %v3318_v0, 7 }
0x2c18   :  { %7595 = vmatprep.subr.bf16.mxu1 %v9810_v9 }
0x2c19   :  { %v7930_v31 = vpop.eup %7929 }
0x2c1a   :  { %v7932_v7 = vpop.eup %7931  ;;  %v3277_v54 = vmul.f32 %v7930_v31, %v8888_v2 }
0x2c1b   :  { %v7934_v41 = vpop.eup %7933  ;;  %v3276_v8 = vmul.f32 %v7932_v7, %v8888_v2 }
0x2c1c   :  { %v7936_v21 = vpop.eup %7935  ;;  %v3288_v27 = vsel %vm3284_vm5, %v3277_v54, 0.0  ;;  %v3278_v14 = vmul.f32 %v7934_v41, %v8888_v2 }
0x2c1d   :  { %v7938_v59 = vpop.eup %7937  ;;  %3289 = vadd.xlane.f32.xlu1 %v3288_v27  ;;  %v3285_v12 = vsel %vm3284_vm5, %v3276_v8, 0.0  ;;  %v3280_v18 = vmul.f32 %v7936_v21, %v8888_v2 }
0x2c1e   :  { %v7940_v36 = vpop.eup %7939  ;;  %3286 = vadd.xlane.f32.xlu0 %v3285_v12  ;;  %v3291_v56 = vsel %vm3284_vm5, %v3278_v14, 0.0  ;;  %v3279_v28 = vmul.f32 %v7938_v59, %v8888_v2 }
0x2c1f   :  { %v3297_v23 = vsel %vm3284_vm5, %v3280_v18, 0.0  ;;  %v3282_v5 = vmul.f32 %v7940_v36, %v8888_v2  ;;  %v7942_v26 = vpop.eup %7941 }
0x2c20   :  { %v3294_v10 = vsel %vm3284_vm5, %v3279_v28, 0.0  ;;  %v3281_v37 = vmul.f32 %v7942_v26, %v8888_v2  ;;  %v7944_v52 = vpop.eup %7943  ;;  %v1264_v26 = vmul.f32 %v8692_v4, %v8634_v16 }
0x2c21   :  { %3298 = vadd.xlane.f32.xlu1 %v3297_v23  ;;  %v3303_v34 = vsel %vm3284_vm5, %v3282_v5, 0.0  ;;  %v3283_v47 = vmul.f32 %v7944_v52, %v8888_v2  ;;  %v2827_v23 = vld [vmem:[%s9791_s19] sm:$0xff]  ;;  %v2828_v5 = vld [vmem:[%s9791_s19 + $0x8] sm:$0xff] }
0x2c22   :  { %3292 = vadd.xlane.f32.xlu0 %v3291_v56  ;;  %v3300_v32 = vsel %vm3284_vm5, %v3281_v37, 0.0 }
0x2c23   :  { %v3306_v51 = vsel %vm3284_vm5, %v3283_v47, 0.0 }
0x2c25   :  { %3304 = vadd.xlane.f32.xlu1 %v3303_v34 }
0x2c26   :  { %3295 = vadd.xlane.f32.xlu0 %v3294_v10 }
0x2c2a   :  { %3301 = vadd.xlane.f32.xlu0 %v3300_v32  ;;  %v7596_v32 = vpack.c.bf16 %v2828_v5, %v2827_v23 }
0x2c2e   :  { %3307 = vadd.xlane.f32.xlu0 %v3306_v51 }
0x2c36   :  { %1260 = vrot.lane.b32.xlu1 %v8639_v6, %s8119_s3  ;;  %v8922_v6 = vsub.s32 %v8916_v1, %v8918_v39 }
0x2caa   :  { %v3290_v31 = vpop.xlane.xlu1 %3289 }
0x2cab   :  { %v3287_v7 = vpop.xlane.xlu0 %3286  ;;  %v3327_v8 = vrot.slane %v3290_v31, %v8922_v6 }
0x2cac   :  { %v3323_v21 = vrot.slane %v3287_v7, %v8922_v6 }
0x2cae   :  { %v3299_v54 = vpop.xlane.xlu1 %3298  ;;  %v3353_v14 = vsel %vm3352_vm6, %v3327_v8, %v3323_v21 }
0x2caf   :  { %v3293_v41 = vpop.xlane.xlu0 %3292  ;;  %v3339_v34 = vrot.slane %v3299_v54, %v8922_v6 }
0x2cb0   :  { %v3331_v27 = vrot.slane %v3293_v41, %v8922_v6 }
0x2cb2   :  { %v3305_v59 = vpop.xlane.xlu1 %3304  ;;  %v3355_v36 = vsel %vm3354_vm7, %v3331_v27, %v3353_v14 }
0x2cb3   :  { %v3296_v12 = vpop.xlane.xlu0 %3295  ;;  %v3347_v16 = vrot.slane %v3305_v59, %v8922_v6 }
0x2cb4   :  { %v3335_v18 = vrot.slane %v3296_v12, %v8922_v6 }
0x2cb6   :  { %v3357_v56 = vsel %vm3356_vm8, %v3335_v18, %v3355_v36  ;;  %v1261_v28 = vpop.permute.xlu1 %1260 }
0x2cb7   :  { %v1263_v10 = vmul.f32 %v1261_v28, %v8662_v43  ;;  %v3302_v37 = vpop.xlane.xlu0 %3301  ;;  %v3359_v51 = vsel %vm3358_vm9, %v3339_v34, %v3357_v56 }
0x2cb8   :  { %v3343_v52 = vrot.slane %v3302_v37, %v8922_v6  ;;  %v3012_v37 = vld [vmem:[%s9835_s30] sm:$0xff] }
0x2cb9   :  { %v1265_v47 = vadd.f32 %v1264_v26, %v1263_v10  ;;  %v8973_v26 = vsub.s32 1, %v8918_v39 }
0x2cba   :  { %v3361_v53 = vsel %vm3360_vm10, %v3343_v52, %v3359_v51  ;;  %v3013_v52 = vld [vmem:[%s9835_s30 + $0x8] sm:$0xff]  ;;  %v8988_v51 = vsub.s32 2, %v8918_v39 }
0x2cbb   :  { %v3308_v43 = vpop.xlane.xlu0 %3307  ;;  %7164 = vmatmul.mubr.msk.f32.vlgmr.msra.gmra.mrb[22].mxu1 %vm116_vm0, %v1265_v47  ;;  %v3363_v58 = vsel %vm3362_vm11, %v3347_v16, %v3361_v53  ;;  %v8991_v53 = vsub.s32 3, %v8918_v39  ;;  %v3467_v16 = vld [vmem:[%s9792_s20] sm:$0xff] }
0x2cbc   :  { %v3351_v4 = vrot.slane %v3308_v43, %v8922_v6  ;;  %7597 = vmatpush3.bf16.msra.mxu1 %v7596_v32  ;;  %7184 = vmatprep.mubr.msk.f32.mxu1 %vm8112_vm1, %v8113_v11  ;;  %v3468_v43 = vld [vmem:[%s9792_s20 + $0x8] sm:$0xff] }
0x2cbd   :  { %7602 = vmatprep.subr.bf16.mxu1 %v7596_v32 }
0x2cbe   :  { %v3365_v0 = vsel %vm3364_vm12, %v3351_v4, %v3363_v58  ;;  %v9003_v4 = vpack.c.bf16 %v3468_v43, %v3467_v16 }
0x2cbf   :  { %v3367_v31 = vsel %vm3309_vm13, %v3365_v0, -1e+10  ;;  %7185 = vmatmul.mubr.msk.f32.vlgmr.msra.gmra.mrb[24].mxu1 %vm116_vm0, %v8786_v55  ;;  %v9008_v0 = vsub.s32 4, %v8918_v39 }
0x2cc0   :  { %v3369_v7 = vsel %vm9809_vm14, %v3367_v31, -inf  ;;  %7604 = vmatpush3.bf16.msra.mxu1 %v7596_v32  ;;  %7187 = vmatprep.mubr.msk.f32.mxu1 %vm8112_vm1, %v8113_v11 }
0x2cc1   :  { %v3370_v54 = vrot.slane %v3369_v7, 4  ;;  %7606 = vmatprep.subr.bf16.mxu1 %v8755_v45 }
0x2cc3   :  { %v3371_v41 = vmax.f32 %v3369_v7, %v3370_v54  ;;  %7188 = vmatmul.mubr.msk.f32.gmra.mrb[26].mxu1 %vm116_vm0, %v8803_v61  ;;  %v3469_v7 = vld [vmem:[%s9792_s20 + $0x10] sm:$0xff]  ;;  %v3470_v54 = vld [vmem:[%s9792_s20 + $0x18] sm:$0xff] }
0x2cc4   :  { %7190 = vmatprep.mubr.msk.f32.mxu1 %vm8112_vm1, %v8113_v11 }
0x2cc5   :  { %v3372_v8 = vrot.slane %v3371_v41, 2 }
0x2cc7   :  { %v3373_v21 = vmax.f32 %v3371_v41, %v3372_v8  ;;  %7191 = vmatmul.mubr.msk.f32.gmra.mrb[28].mxu1 %vm116_vm0, %v8816_v62  ;;  %v8976_v62 = vsub.s32 0, %v8918_v39  ;;  %v9024_v41 = vpack.c.bf16 %v3470_v54, %v3469_v7 }
0x2cc8   :  { %7210 = vmatprep.mubr.msk.f32.mxu1 %vm116_vm0, %v3012_v37 }
0x2cc9   :  { %v3374_v55 = vrot.slane %v3373_v21, 1 }
0x2ccb   :  { %v3375_v27 = vmax.f32 %v3373_v21, %v3374_v55  ;;  %7211 = vmatmul.mubr.msk.f32.vlgmr.msra.gmra.mrb[30].mxu1 %vm116_vm0, %v3013_v52  ;;  %v9029_v55 = vsub.s32 6, %v8918_v39 }
0x2ccc   :  { %7608 = vmatpush3.bf16.msra.mxu1 %v8755_v45  ;;  %7217 = vmatprep.mubr.msk.f32.mxu1 %vm116_vm0, %v3012_v37 }
0x2ccd   :  { %v3376_v59 = vsub.f32 %v3367_v31, %v3375_v27  ;;  %7615 = vmatprep.subr.bf16.mxu1 %v9810_v9  ;;  %v9011_v31 = vsub.s32 5, %v8918_v39  ;;  %v9032_v27 = vsub.s32 7, %v8918_v39 }
0x2ccf   :  { %v3377_v12 = vmul.f32 1.442695, %v3376_v59  ;;  %7218 = vmatmul.mubr.msk.f32.vlgmr.msra.gmra.mrb[32].mxu1 %vm116_vm0, %v3013_v52 }
0x2cd0   :  { %7617 = vmatpush3.bf16.msra.mxu1 %v9003_v4  ;;  %7239 = vmatprep.mubr.msk.f32.mxu1 %vm8112_vm1, %v8113_v11 }
0x2cd1   :  { %7945 = vpow2.f32 %v3377_v12  ;;  %7618 = vmatprep.subr.bf16.mxu1 %v9810_v9 }
0x2cd4   :  { %7620 = vmatpush3.bf16.msra.mxu1 %v9024_v41 }
0x2cd5   :  { %7627 = vmatprep.subr.bf16.mxu1 %v9810_v9 }
0x2cdb   :  { %v7946_v14 = vpop.eup %7945 }
0x2cdc   :  { %v3379_v18 = vsel %vm9809_vm14, %v7946_v14, 0.0 }
0x2cdd   :  { %v3380_v36 = vrot.slane %v3379_v18, 4 }
0x2cdf   :  { %v3381_v23 = vadd.f32 %v3380_v36, %v3379_v18 }
0x2ce1   :  { %v3382_v5 = vrot.slane %v3381_v23, 2 }
0x2ce3   :  { %v3383_v61 = vadd.f32 %v3382_v5, %v3381_v23 }
0x2ce5   :  { %v3384_v56 = vrot.slane %v3383_v61, 1 }
0x2ce7   :  { %v3385_v28 = vadd.f32 %v3384_v56, %v3383_v61 }
0x2ce9   :  { %7947 = vrcp.f32 %v3385_v28 }
0x2cf3   :  { %v7948_v34 = vpop.eup %7947 }
0x2cf4   :  { %v3387_v10 = vmul.f32 %v7948_v34, %v7946_v14 }
0x2cf6   :  { %v3398_v32 = vrot.slane %v3387_v10, %v8973_v26  ;;  %v3391_v47 = vrot.slane %v3387_v10, %v8976_v62  ;;  %v3405_v58 = vrot.slane %v3387_v10, %v8988_v51  ;;  %v3412_v45 = vrot.slane %v3387_v10, %v8991_v53 }
0x2cf7   :  { %v3419_v8 = vrot.slane %v3387_v10, %v9008_v0  ;;  %v3426_v21 = vrot.slane %v3387_v10, %v9011_v31  ;;  %v3433_v59 = vrot.slane %v3387_v10, %v9029_v55  ;;  %v3440_v12 = vrot.slane %v3387_v10, %v9032_v27 }
0x2cf8   :  { %3400 = vbcast.lane.b32.xlu1 %v3398_v32, 256  ;;  %3393 = vbcast.lane.b32.xlu0 %v3391_v47, 256 }
0x2cfc   :  { %3407 = vbcast.lane.b32.xlu1 %v3405_v58, 256  ;;  %3414 = vbcast.lane.b32.xlu0 %v3412_v45, 256 }
0x2d00   :  { %3421 = vbcast.lane.b32.xlu1 %v3419_v8, 256  ;;  %3428 = vbcast.lane.b32.xlu0 %v3426_v21, 256 }
0x2d04   :  { %3435 = vbcast.lane.b32.xlu1 %v3433_v59, 256  ;;  %3442 = vbcast.lane.b32.xlu0 %v3440_v12, 256  ;;  %v3660_v59 = vld [vmem:[%s9796_s24] sm:$0xff] }
0x2d6a   :  { %v3401_v14 = vpop.permute.xlu1 %3400  ;;  %v3394_v18 = vpop.permute.xlu0 %3393 }
0x2d6b   :  { %v3445_v36 = vmul.f32 %v3401_v14, %v8748_v44  ;;  %v3444_v23 = vmul.f32 %v3394_v18, %v8746_v42 }
0x2d6d   :  { %v3453_v39 = vsel %vm3284_vm5, %v3445_v36, 0.0  ;;  %v3452_v5 = vsel %vm3284_vm5, %v3444_v23, 0.0 }
0x2d6e   :  { %v3408_v61 = vpop.permute.xlu1 %3407  ;;  %v3415_v56 = vpop.permute.xlu0 %3414  ;;  %v3454_v37 = vadd.f32 %v3453_v39, %v3452_v5  ;;  %v6720_v5 = vld [vmem:[%s9786_s14] ss:$0 sm:$0xff] }
0x2d6f   :  { %v3446_v28 = vmul.f32 %v3408_v61, %v8753_v20  ;;  %v3447_v34 = vmul.f32 %v3415_v56, %v8744_v40 }
0x2d71   :  { %v3455_v10 = vsel %vm3284_vm5, %v3446_v28, 0.0  ;;  %v3457_v44 = vsel %vm3284_vm5, %v3447_v34, 0.0 }
0x2d72   :  { %v3456_v52 = vadd.f32 %v3455_v10, %v3454_v37  ;;  %v3422_v32 = vpop.permute.xlu1 %3421  ;;  %v3429_v47 = vpop.permute.xlu0 %3428 }
0x2d73   :  { %v3448_v42 = vmul.f32 %v3422_v32, %v8761_v46  ;;  %v3449_v16 = vmul.f32 %v3429_v47, %v8763_v15  ;;  %v3661_v46 = vld [vmem:[%s9796_s24 + $0x8] sm:$0xff] }
0x2d74   :  { %v3458_v43 = vadd.f32 %v3457_v44, %v3456_v52  ;;  %v9060_v18 = vpack.c.bf16 %v3661_v46, %v3660_v59 }
0x2d75   :  { %v3459_v58 = vsel %vm3284_vm5, %v3448_v42, 0.0  ;;  %v3461_v40 = vsel %vm3284_vm5, %v3449_v16, 0.0 }
0x2d76   :  { %v3460_v45 = vadd.f32 %v3459_v58, %v3458_v43  ;;  %v3436_v7 = vpop.permute.xlu1 %3435  ;;  %v3443_v20 = vpop.permute.xlu0 %3442 }
0x2d77   :  { %v3450_v54 = vmul.f32 %v3436_v7, %v8770_v48  ;;  %v3451_v8 = vmul.f32 %v3443_v20, %v8772_v50  ;;  %v3662_v48 = vld [vmem:[%s9796_s24 + $0x10] sm:$0xff]  ;;  %v3663_v50 = vld [vmem:[%s9796_s24 + $0x18] sm:$0xff] }
0x2d78   :  { %v3462_v21 = vadd.f32 %v3461_v40, %v3460_v45  ;;  %v9070_v23 = vpack.c.bf16 %v3663_v50, %v3662_v48 }
0x2d79   :  { %v3463_v15 = vsel %vm3284_vm5, %v3450_v54, 0.0  ;;  %v3465_v14 = vsel %vm3284_vm5, %v3451_v8, 0.0  ;;  %v9098_v54 = vld [vmem:[%s9794_s22] ss:$0 sm:$0xff] }
0x2d7a   :  { %v3464_v12 = vadd.f32 %v3463_v15, %v3462_v21 }
0x2d7c   :  { %v3466_v36 = vadd.f32 %v3465_v14, %v3464_v12 }
0x2d7e   :  { %7240 = vmatmul.mubr.msk.f32.vlgmr.msra.gmra.mrb[34].mxu1 %vm2700_vm4, %v3466_v36 }
0x2d7f   :  { %7629 = vmatpush3.bf16.msra.mxu1 %v9060_v18  ;;  %7261 = vmatprep.mubr.msk.f32.mxu1 %vm8112_vm1, %v8113_v11 }
0x2d80   :  { %7630 = vmatprep.subr.bf16.mxu1 %v9810_v9 }
0x2d83   :  { %7632 = vmatpush3.bf16.msra.mxu1 %v9070_v23 }
0x2d84   :  { %7639 = vmatprep.subr.bf16.mxu1 %v9810_v9 }
0x2d86   :  { %7262 = vmatmul.mubr.msk.f32.vlgmr.msra.gmra.mrb[36].mxu1 %vm2700_vm4, %v3466_v36 }
0x2d87   :  { %7279 = vmatprep.mubr.msk.f32.mxu1 %vm8112_vm1, %v8113_v11 }
0x2d8e   :  { %v2662_v39 = vpop.f32.mrb[22].mxu1 }
0x2d8f   :  { %v2663_v61 = vadd.f32 %v2662_v39, %v8829_v3  ;;  %v7165_v56 = vpop.f32.mrb[23].mxu1 }
0x2d91   :  { %v2673_v28 = vadd.f32 %v6720_v5, %v2663_v61 }
0x2d92   :  { %v2910_v34 = vpop.f32.mrb[24].mxu1 }
0x2d93   :  { %7949 = vtanh.f32 %v2673_v28  ;;  %v7186_v37 = vpop.f32.mrb[25].mxu1  ;;  %v3656_v28 = vld [vmem:[%s9795_s23] sm:$0xff] }
0x2d94   :  { %v3658_v37 = vld [vmem:[%s9795_s23 + $0x10] sm:$0xff] }
0x2d96   :  { %v9084_v10 = vpop.f32.mrb[26].mxu1 }
0x2d97   :  { %v7189_v52 = vpop.f32.mrb[27].mxu1 }
0x2d9a   :  { %v9086_v32 = vpop.f32.mrb[28].mxu1 }
0x2d9b   :  { %v7192_v47 = vpop.f32.mrb[29].mxu1 }
0x2d9c   :  { %v3659_v47 = vld [vmem:[%s9795_s23 + $0x18] sm:$0xff] }
0x2d9d   :  { %v7950_v44 = vpop.eup %7949 }
0x2d9e   :  { %3636 = vrot.lane.b32.xlu0 %v7950_v44, %s8117_s11  ;;  %v7212_v42 = vpop.f32.mrb[30].mxu1  ;;  %v9122_v44 = vpack.c.bf16 %v3659_v47, %v3658_v37 }
0x2d9f   :  { %v3086_v16 = vpop.f32.mrb[31].mxu1 }
0x2da0   :  { %v9089_v43 = vpack.c.bf16 %v7212_v42, %v3086_v16 }
0x2da2   :  { %v7219_v58 = vpop.f32.mrb[32].mxu1 }
0x2da3   :  { %v3161_v3 = vpop.f32.mrb[33].mxu1 }
0x2da4   :  { %v9091_v45 = vpack.c.bf16 %v7219_v58, %v3161_v3 }
0x2da6   :  { %7641 = vmatpush3.bf16.msra.mxu1 %v9091_v45 }
0x2da7   :  { %7642 = vmatprep.subr.bf16.mxu1 %v9810_v9 }
0x2e10   :  { %v3637_v5 = vpop.permute.xlu0 %3636 }
0x2e51   :  { %v3540_v7 = vpop.f32.mrb[34].mxu1 }
0x2e52   :  { %v3544_v20 = vadd.f32 %v3540_v7, %v2910_v34  ;;  %v7241_v40 = vpop.f32.mrb[35].mxu1  ;;  %v3657_v34 = vld [vmem:[%s9795_s23 + $0x8] sm:$0xff] }
0x2e53   :  { %v9116_v52 = vpack.c.bf16 %v3657_v34, %v3656_v28 }
0x2e54   :  { %v3619_v8 = vadd.f32 %v8880_v63, %v3544_v20 }
0x2e55   :  { %7635 = vmatpush3.bf16.msra.mxu0 %v9116_v52 }
0x2e56   :  { %v3627_v21 = vadd.f32 %v9098_v54, %v3619_v8  ;;  %7636 = vmatprep.subr.bf16.mxu0 %v9810_v9  ;;  %v9142_v8 = vld [vmem:[%s9798_s26] ss:$0 sm:$0xff] }
0x2e58   :  { %7951 = vtanh.f32 %v3627_v21  ;;  %v6741_v12 = vmul.f32 -1.442695, %v3627_v21 }
0x2e59   :  { %v3730_v59 = vpop.f32.mrb[36].mxu1  ;;  %7638 = vmatpush3.bf16.msra.mxu0 %v9122_v44 }
0x2e5a   :  { %v7263_v46 = vpop.f32.mrb[37].mxu1  ;;  %7953 = vpow2.f32 %v6741_v12  ;;  %7648 = vmatprep.subr.bf16.mxu0 %v9810_v9 }
0x2e62   :  { %v7952_v15 = vpop.eup %7951 }
0x2e63   :  { %3641 = vrot.lane.b32.xlu1 %v7952_v15, %s8120_s28 }
0x2e64   :  { %v7954_v14 = vpop.eup %7953 }
0x2e65   :  { %v3631_v36 = vadd.f32 1.0, %v7954_v14 }
0x2e67   :  { %7955 = vrcp.f32 %v3631_v36 }
0x2e71   :  { %v7956_v48 = vpop.eup %7955 }
0x2e72   :  { %v3639_v63 = vmul.f32 %v7956_v48, %v3637_v5 }
0x2ed5   :  { %v3642_v50 = vpop.permute.xlu1 %3641 }
0x2ed6   :  { %v3644_v39 = vmul.f32 %v7956_v48, %v3642_v50 }
0x2ed8   :  { %3646 = vrot.lane.b32.xlu1 %v3644_v39, %s8117_s11 }
0x2f4a   :  { %v3647_v61 = vpop.permute.xlu1 %3646 }
0x2f4b   :  { %v9104_v56 = vadd.f32 %v3647_v61, %v3639_v63 }
0x2f4d   :  { %7957 = vtanh.f32 %v9104_v56 }
0x2f57   :  { %v7958_v42 = vpop.eup %7957 }
0x2f58   :  { %3652 = vrot.lane.b32.xlu0 %v7958_v42, %s8120_s28 }
0x2fca   :  { %v3653_v16 = vpop.permute.xlu0 %3652 }
0x2fcb   :  { %v3655_v58 = vmul.f32 %v7956_v48, %v3653_v16 }
0x2fcd   :  { %3735 = vrot.lane.b32.xlu1 %v3655_v58, %s8117_s11 }
0x303f   :  { %v9129_v3 = vpop.permute.xlu1 %3735 }
0x3040   :  { %7273 = vmatmul.mubr.msk.f32.vlgmr.msra.gmra.mrb[34].mxu0 %vm2700_vm4, %v9129_v3 }
0x3041   :  { %7650 = vmatpush3.bf16.msra.mxu0 %v9003_v4  ;;  %7301 = vmatprep.mubr.msk.f32.mxu0 %vm8112_vm1, %v8113_v11 }
0x3042   :  { %7651 = vmatprep.subr.bf16.mxu0 %v9810_v9 }
0x3045   :  { %7653 = vmatpush3.bf16.msra.mxu0 %v9024_v41 }
0x3046   :  { %7657 = vmatprep.subr.bf16.mxu0 %v9810_v9 }
0x3113   :  { %v3805_v7 = vpop.f32.mrb[34].mxu0 }
0x3114   :  { %v3806_v20 = vadd.f32 %v3805_v7, %v3730_v59  ;;  %v7274_v40 = vpop.f32.mrb[35].mxu0 }
0x3116   :  { %v3809_v21 = vadd.f32 %v3806_v20, %v8851_v22 }
0x3118   :  { %v3817_v4 = vadd.f32 %v9142_v8, %v3809_v21 }
0x311a   :  { %3819 = vst.msk [vmem:[#allocation3 + $0x4] sm:$0xf] %vm349_vm2, %v3817_v4  ;;  %v3820_v46 = vsel %vm349_vm2, %v3817_v4, -inf }
0x311b   :  { %3821 = vmax.xlane.f32.xlu0 %v3820_v46 }
0x31a8   :  { %v3822_v41 = vpop.xlane.xlu0 %3821 }
0x31a9   :  { %vm3823_vm15 = vcmp.ge.f32.partialorder %v3817_v4, %v3822_v41 }
0x31aa   :  { %v3824_v15 = vsel %vm3823_vm15, %v8916_v1, 16 }
0x31ab   :  { %v3825_v59 = vsel %vm349_vm2, %v3824_v15, 2147483647 }
0x31ac   :  { %v3827_v12 = vshra.s32 %v3825_v59, 16  ;;  %v3826_v36 = vand.u32 65535, %v3825_v59 }
0x31ae   :  { %v3829_v14 = vcvt.s32.f32 %v3827_v12  ;;  %v3828_v50 = vcvt.s32.f32 %v3826_v36 }
0x31b0   :  { %3830 = vmin.xlane.f32.xlu1 %v3829_v14 }
0x323d   :  { %v3831_v48 = vpop.xlane.xlu1 %3830 }
0x323e   :  { %vm3832_vm3 = vcmp.eq.f32.partialorder %v3829_v14, %v3831_v48  ;;  %v3837_v39 = vcvt.f32.s32 %v3831_v48 }
0x323f   :  { %v3833_v22 = vsel %vm3832_vm3, %v3828_v50, inf }
0x3240   :  { %3834 = vmin.xlane.f32.xlu0 %v3833_v22  ;;  %v3838_v63 = vshll.u32 %v3837_v39, 16 }
0x32cd   :  { %v3835_v5 = vpop.xlane.xlu0 %3834 }
0x32ce   :  { %v3836_v61 = vcvt.f32.s32 %v3835_v5 }
0x32d0   :  { %v3839_v28 = vadd.s32 %v3838_v63, %v3836_v61 }
0x32d2   :  { %vm3840_vm14 = vcmp.eq.s32.totalorder %v8916_v1, %v3839_v28 }
0x32d3   :  { %v6745_v34 = vsel %vm3840_vm14, 1.0, %v8113_v11  ;;  %vm9836_vm14 = vcmask 31744  }
0x32d4   :  { %7280 = vmatmul.mubr.msk.f32.vlgmr.msra.gmra.mrb[38].mxu1 %vm116_vm0, %v6745_v34  ;;  %vm9837_vm15 = vmmov %vm9836_vm14 }
0x32d5   :  { %7644 = vmatpush3.bf16.msra.mxu1 %v8790_v57  ;;  %7290 = vmatprep.mubr.msk.f32.mxu1 %vm8112_vm1, %v8113_v11 }
0x32d6   :  { %7645 = vmatprep.subr.bf16.mxu1 %v9810_v9 }
0x32d9   :  { %7647 = vmatpush3.bf16.msra.mxu1 %v8808_v19 }
0x32da   :  { %7654 = vmatprep.subr.bf16.mxu1 %v9810_v9 }
0x32dc   :  { %7291 = vmatmul.mubr.msk.f32.vlgmr.msra.gmra.mrb[40].mxu1 %vm2700_vm4, %v9129_v3 }
0x32dd   :  { %7656 = vmatpush3.bf16.msra.mxu1 %v9089_v43  ;;  %7308 = vmatprep.mubr.msk.f32.mxu1 %vm8112_vm1, %v8113_v11 }
0x32de   :  { %7663 = vmatprep.subr.bf16.mxu1 %v9810_v9 }
0x32e0   :  { %7309 = vmatmul.mubr.msk.f32.vlgmr.msra.gmra.mrb[42].mxu1 %vm116_vm0, %v6745_v34 }
0x32e1   :  { %7665 = vmatpush3.bf16.msra.mxu1 %v9060_v18  ;;  %7330 = vmatprep.mubr.msk.f32.mxu1 %vm8112_vm1, %v8113_v11 }
0x32e2   :  { %7666 = vmatprep.subr.bf16.mxu1 %v9810_v9 }
0x32e5   :  { %7668 = vmatpush3.bf16.msra.mxu1 %v9070_v23 }
0x32e6   :  { %7675 = vmatprep.subr.bf16.mxu1 %v9810_v9 }
0x33a7   :  { %v9172_v57 = vpop.f32.mrb[38].mxu1 }
0x33a8   :  { %v7281_v19 = vpop.f32.mrb[39].mxu1 }
0x33af   :  { %v3986_v37 = vpop.f32.mrb[40].mxu1 }
0x33b0   :  { %v7292_v47 = vpop.f32.mrb[41].mxu1  ;;  %v3991_v42 = vadd.f32 %v3986_v37, %v8864_v13  ;;  %v3990_v16 = vadd.f32 %v3986_v37, %v8862_v30  ;;  %v3993_v18 = vadd.f32 %v3986_v37, %v8868_v35  ;;  %v3992_v58 = vadd.f32 %v3986_v37, %v8860_v29 }
0x33b1   :  { %v3995_v7 = vadd.f32 %v3986_v37, %v8878_v60  ;;  %v3994_v23 = vadd.f32 %v3986_v37, %v8866_v33  ;;  %v3997_v21 = vadd.f32 %v3986_v37, %v8883_v25  ;;  %v3996_v4 = vadd.f32 %v3986_v37, %v8873_v38 }
0x33b2   :  { %7959 = vtanh.f32 %v3991_v42 }
0x33b3   :  { %v9179_v20 = vpop.f32.mrb[42].mxu1  ;;  %7961 = vtanh.f32 %v3990_v16 }
0x33b4   :  { %v7310_v40 = vpop.f32.mrb[43].mxu1  ;;  %7963 = vtanh.f32 %v3993_v18 }
0x33b5   :  { %7965 = vtanh.f32 %v3992_v58 }
0x33b6   :  { %7967 = vtanh.f32 %v3995_v7 }
0x33b7   :  { %7969 = vtanh.f32 %v3994_v23 }
0x33b8   :  { %7971 = vtanh.f32 %v3997_v21 }
0x33b9   :  { %7973 = vtanh.f32 %v3996_v4 }
0x33bc   :  { %v7960_v46 = vpop.eup %7959 }
0x33bd   :  { %v7962_v41 = vpop.eup %7961  ;;  %v4014_v15 = vmul.f32 %v7960_v46, %v8888_v2 }
0x33be   :  { %v7964_v59 = vpop.eup %7963  ;;  %v4013_v12 = vmul.f32 %v7962_v41, %v8888_v2 }
0x33bf   :  { %v7966_v14 = vpop.eup %7965  ;;  %v4024_v36 = vsel %vm3284_vm5, %v4014_v15, 0.0  ;;  %v4016_v48 = vmul.f32 %v7964_v59, %v8888_v2 }
0x33c0   :  { %v7968_v50 = vpop.eup %7967  ;;  %4025 = vadd.xlane.f32.xlu1 %v4024_v36  ;;  %v4021_v22 = vsel %vm3284_vm5, %v4013_v12, 0.0  ;;  %v4015_v39 = vmul.f32 %v7966_v14, %v8888_v2 }
0x33c1   :  { %v7970_v5 = vpop.eup %7969  ;;  %4022 = vadd.xlane.f32.xlu0 %v4021_v22  ;;  %v4030_v63 = vsel %vm3284_vm5, %v4016_v48, 0.0  ;;  %v4018_v61 = vmul.f32 %v7968_v50, %v8888_v2 }
0x33c2   :  { %v7972_v28 = vpop.eup %7971  ;;  %v4027_v34 = vsel %vm3284_vm5, %v4015_v39, 0.0  ;;  %v4017_v19 = vmul.f32 %v7970_v5, %v8888_v2 }
0x33c3   :  { %v7974_v37 = vpop.eup %7973  ;;  %v4036_v47 = vsel %vm3284_vm5, %v4018_v61, 0.0  ;;  %v4020_v42 = vmul.f32 %v7972_v28, %v8888_v2 }
0x33c4   :  { %4031 = vadd.xlane.f32.xlu1 %v4030_v63  ;;  %v4033_v16 = vsel %vm3284_vm5, %v4017_v19, 0.0  ;;  %v4019_v18 = vmul.f32 %v7974_v37, %v8888_v2 }
0x33c5   :  { %4028 = vadd.xlane.f32.xlu0 %v4027_v34  ;;  %v4042_v58 = vsel %vm3284_vm5, %v4020_v42, 0.0 }
0x33c6   :  { %v4039_v7 = vsel %vm3284_vm5, %v4019_v18, 0.0 }
0x33c8   :  { %4037 = vadd.xlane.f32.xlu1 %v4036_v47 }
0x33c9   :  { %4034 = vadd.xlane.f32.xlu0 %v4033_v16 }
0x33cc   :  { %4043 = vadd.xlane.f32.xlu1 %v4042_v58 }
0x33cd   :  { %4040 = vadd.xlane.f32.xlu0 %v4039_v7 }
0x344d   :  { %v4026_v23 = vpop.xlane.xlu1 %4025 }
0x344e   :  { %v4023_v40 = vpop.xlane.xlu0 %4022  ;;  %v4060_v21 = vrot.slane %v4026_v23, %v8922_v6 }
0x344f   :  { %v4056_v4 = vrot.slane %v4023_v40, %v8922_v6 }
0x3451   :  { %v4032_v46 = vpop.xlane.xlu1 %4031  ;;  %v4085_v59 = vsel %vm3352_vm6, %v4060_v21, %v4056_v4 }
0x3452   :  { %v4029_v41 = vpop.xlane.xlu0 %4028  ;;  %v4068_v2 = vrot.slane %v4032_v46, %v8922_v6 }
0x3453   :  { %v4064_v15 = vrot.slane %v4029_v41, %v8922_v6 }
0x3455   :  { %v4086_v12 = vsel %vm3354_vm7, %v4064_v15, %v4085_v59  ;;  %v4038_v14 = vpop.xlane.xlu1 %4037 }
0x3456   :  { %v4035_v36 = vpop.xlane.xlu0 %4034  ;;  %v4076_v50 = vrot.slane %v4038_v14, %v8922_v6  ;;  %v4087_v22 = vsel %vm3356_vm8, %v4068_v2, %v4086_v12 }
0x3457   :  { %v4072_v48 = vrot.slane %v4035_v36, %v8922_v6 }
0x3459   :  { %v4088_v39 = vsel %vm3358_vm9, %v4072_v48, %v4087_v22  ;;  %v4044_v5 = vpop.xlane.xlu1 %4043 }
0x345a   :  { %v4084_v63 = vrot.slane %v4044_v5, %v8922_v6  ;;  %v4041_v61 = vpop.xlane.xlu0 %4040  ;;  %v4089_v34 = vsel %vm3360_vm10, %v4076_v50, %v4088_v39 }
0x345b   :  { %v4080_v28 = vrot.slane %v4041_v61, %v8922_v6 }
0x345d   :  { %v4090_v19 = vsel %vm3362_vm11, %v4080_v28, %v4089_v34 }
0x345e   :  { %v4091_v37 = vsel %vm3364_vm12, %v4084_v63, %v4090_v19 }
0x345f   :  { %v4093_v47 = vsel %vm3309_vm13, %v4091_v37, -1e+10 }
0x3460   :  { %v4094_v42 = vsel %vm9836_vm14, %v4093_v47, -inf }
0x3461   :  { %v4095_v16 = vrot.slane %v4094_v42, 4 }
0x3463   :  { %v4096_v18 = vmax.f32 %v4094_v42, %v4095_v16  ;;  %v9227_v42 = vld [vmem:[#allocation2 + $0x4] sm:$0xf] }
0x3465   :  { %v4097_v58 = vrot.slane %v4096_v18, 2 }
0x3467   :  { %v4098_v7 = vmax.f32 %v4096_v18, %v4097_v58  ;;  %v9230_v18 = vld [vmem:[#allocation2] sm:$0xf] }
0x3469   :  { %v4099_v23 = vrot.slane %v4098_v7, 1 }
0x346b   :  { %v4100_v40 = vmax.f32 %v4098_v7, %v4099_v23 }
0x346d   :  { %v4101_v21 = vsub.f32 %v4093_v47, %v4100_v40 }
0x346f   :  { %v4102_v4 = vmul.f32 1.442695, %v4101_v21 }
0x3471   :  { %7975 = vpow2.f32 %v4102_v4  ;;  %v9235_v4 = vld [vmem:[#allocation2 + $0x8] sm:$0xf] }
0x347b   :  { %v7976_v46 = vpop.eup %7975 }
0x347c   :  { %v4104_v41 = vsel %vm9837_vm15, %v7976_v46, 0.0 }
0x347d   :  { %v4105_v15 = vrot.slane %v4104_v41, 4 }
0x347f   :  { %v4106_v59 = vadd.f32 %v4105_v15, %v4104_v41  ;;  %v9238_v41 = vld [vmem:[#allocation2 + $0xc] sm:$0xf] }
0x3481   :  { %v4107_v2 = vrot.slane %v4106_v59, 2 }
0x3483   :  { %v4108_v12 = vadd.f32 %v4107_v2, %v4106_v59 }
0x3485   :  { %v4109_v14 = vrot.slane %v4108_v12, 1 }
0x3487   :  { %v4110_v36 = vadd.f32 %v4109_v14, %v4108_v12 }
0x3489   :  { %7977 = vrcp.f32 %v4110_v36 }
0x3493   :  { %v7978_v48 = vpop.eup %7977 }
0x3494   :  { %v4112_v50 = vmul.f32 %v7978_v48, %v7976_v46 }
0x3496   :  { %v4123_v22 = vrot.slane %v4112_v50, %v8973_v26  ;;  %v4116_v39 = vrot.slane %v4112_v50, %v8976_v62  ;;  %v4130_v5 = vrot.slane %v4112_v50, %v8988_v51  ;;  %v4137_v63 = vrot.slane %v4112_v50, %v8991_v53 }
0x3497   :  { %v4144_v61 = vrot.slane %v4112_v50, %v9008_v0  ;;  %v4151_v28 = vrot.slane %v4112_v50, %v9011_v31  ;;  %v4158_v34 = vrot.slane %v4112_v50, %v9029_v55  ;;  %v4165_v19 = vrot.slane %v4112_v50, %v9032_v27  ;;  %v9243_v50 = vld [vmem:[#allocation2 + $0x10] sm:$0xf] }
0x3498   :  { %4125 = vbcast.lane.b32.xlu1 %v4123_v22, 256  ;;  %4118 = vbcast.lane.b32.xlu0 %v4116_v39, 256  ;;  %v9246_v39 = vld [vmem:[#allocation2 + $0x14] sm:$0xf] }
0x349c   :  { %4132 = vbcast.lane.b32.xlu1 %v4130_v5, 256  ;;  %4139 = vbcast.lane.b32.xlu0 %v4137_v63, 256 }
0x34a0   :  { %4146 = vbcast.lane.b32.xlu1 %v4144_v61, 256  ;;  %4153 = vbcast.lane.b32.xlu0 %v4151_v28, 256 }
0x34a4   :  { %4160 = vbcast.lane.b32.xlu1 %v4158_v34, 256  ;;  %4167 = vbcast.lane.b32.xlu0 %v4165_v19, 256 }
0x350a   :  { %v4126_v37 = vpop.permute.xlu1 %4125  ;;  %v4119_v47 = vpop.permute.xlu0 %4118 }
0x350b   :  { %v4170_v16 = vmul.f32 %v9227_v42, %v4126_v37  ;;  %v4169_v58 = vmul.f32 %v9230_v18, %v4119_v47  ;;  %v9251_v47 = vld [vmem:[#allocation2 + $0x18] sm:$0xf] }
0x350d   :  { %v4178_v7 = vsel %vm3284_vm5, %v4170_v16, 0.0  ;;  %v4177_v23 = vsel %vm3284_vm5, %v4169_v58, 0.0  ;;  %v9254_v58 = vld [vmem:[#allocation2 + $0x1c] sm:$0xf] }
0x350e   :  { %v4133_v40 = vpop.permute.xlu1 %4132  ;;  %v4140_v21 = vpop.permute.xlu0 %4139  ;;  %v4179_v59 = vadd.f32 %v4178_v7, %v4177_v23 }
0x350f   :  { %v4171_v46 = vmul.f32 %v9235_v4, %v4133_v40  ;;  %v4172_v15 = vmul.f32 %v9238_v41, %v4140_v21  ;;  %v4339_v40 = vld [vmem:[%s9793_s21] sm:$0xff]  ;;  %v4340_v21 = vld [vmem:[%s9793_s21 + $0x8] sm:$0xff] }
0x3511   :  { %v4180_v2 = vsel %vm3284_vm5, %v4171_v46, 0.0  ;;  %v4182_v48 = vsel %vm3284_vm5, %v4172_v15, 0.0 }
0x3512   :  { %v4181_v12 = vadd.f32 %v4180_v2, %v4179_v59  ;;  %v4147_v14 = vpop.permute.xlu1 %4146  ;;  %v4154_v36 = vpop.permute.xlu0 %4153  ;;  %v9265_v2 = vpack.c.bf16 %v4340_v21, %v4339_v40 }
0x3513   :  { %v4173_v22 = vmul.f32 %v9243_v50, %v4147_v14  ;;  %v4174_v5 = vmul.f32 %v9246_v39, %v4154_v36  ;;  %v4341_v14 = vld [vmem:[%s9793_s21 + $0x10] sm:$0xff]  ;;  %v4342_v36 = vld [vmem:[%s9793_s21 + $0x18] sm:$0xff] }
0x3514   :  { %v4183_v63 = vadd.f32 %v4182_v48, %v4181_v12  ;;  %v9277_v48 = vpack.c.bf16 %v4342_v36, %v4341_v14 }
0x3515   :  { %v4184_v61 = vsel %vm3284_vm5, %v4173_v22, 0.0  ;;  %v4186_v37 = vsel %vm3284_vm5, %v4174_v5, 0.0 }
0x3516   :  { %v4185_v28 = vadd.f32 %v4184_v61, %v4183_v63  ;;  %v4161_v34 = vpop.permute.xlu1 %4160  ;;  %v4168_v19 = vpop.permute.xlu0 %4167 }
0x3517   :  { %v4175_v16 = vmul.f32 %v9251_v47, %v4161_v34  ;;  %v4176_v7 = vmul.f32 %v9254_v58, %v4168_v19 }
0x3518   :  { %v4187_v23 = vadd.f32 %v4186_v37, %v4185_v28 }
0x3519   :  { %v4188_v46 = vsel %vm3284_vm5, %v4175_v16, 0.0  ;;  %v4190_v59 = vsel %vm3284_vm5, %v4176_v7, 0.0 }
0x351a   :  { %v4189_v15 = vadd.f32 %v4188_v46, %v4187_v23 }
0x351c   :  { %v4191_v12 = vadd.f32 %v4190_v59, %v4189_v15 }
0x351e   :  { %7302 = vmatmul.mubr.msk.f32.vlgmr.msra.gmra.mrb[36].mxu0 %vm2700_vm4, %v4191_v12  ;;  %7331 = vmatmul.mubr.msk.f32.vlgmr.msra.gmra.mrb[44].mxu1 %vm2700_vm4, %v4191_v12 }
0x351f   :  { %7659 = vmatpush3.bf16.msra.mxu0 %v9265_v2  ;;  %7677 = vmatpush3.bf16.msra.mxu1 %v9091_v45 }
0x3520   :  { %7660 = vmatprep.subr.bf16.mxu0 %v9810_v9  ;;  %7319 = vmatprep.mubr.msk.f32.mxu0 %vm8112_vm1, %v8113_v11 }
0x3521   :  { %7348 = vmatprep.mubr.msk.f32.mxu1 %vm8112_vm1, %v8113_v11  ;;  %7678 = vmatprep.subr.bf16.mxu1 %v9810_v9 }
0x3523   :  { %7662 = vmatpush3.bf16.msra.mxu0 %v9277_v48 }
0x3524   :  { %7669 = vmatprep.subr.bf16.mxu0 %v9810_v9 }
0x3526   :  { %7320 = vmatmul.mubr.msk.f32.vlgmr.msra.gmra.mrb[38].mxu0 %vm2700_vm4, %v9129_v3 }
0x3527   :  { %7671 = vmatpush3.bf16.msra.mxu0 %v9116_v52  ;;  %7341 = vmatprep.mubr.msk.f32.mxu0 %vm8112_vm1, %v8113_v11 }
0x3528   :  { %7672 = vmatprep.subr.bf16.mxu0 %v9810_v9 }
0x352b   :  { %7674 = vmatpush3.bf16.msra.mxu0 %v9122_v44 }
0x352c   :  { %7684 = vmatprep.subr.bf16.mxu0 %v9810_v9 }
0x35f1   :  { %v4265_v45 = vpop.f32.mrb[36].mxu0  ;;  %v4520_v22 = vpop.f32.mrb[44].mxu1 }
0x35f2   :  { %v4336_v5 = vadd.f32 %v9179_v20, %v4265_v45  ;;  %v7303_v63 = vpop.f32.mrb[37].mxu0  ;;  %v7332_v61 = vpop.f32.mrb[45].mxu1 }
0x35f9   :  { %v4409_v28 = vpop.f32.mrb[38].mxu0 }
0x35fa   :  { %v4413_v34 = vadd.f32 %v4409_v28, %v4336_v5  ;;  %v7321_v3 = vpop.f32.mrb[39].mxu0 }
0x35fc   :  { %v4421_v52 = vadd.f32 %v9098_v54, %v4413_v34 }
0x35fe   :  { %7979 = vtanh.f32 %v4421_v52  ;;  %v6753_v37 = vmul.f32 -1.442695, %v4421_v52 }
0x3600   :  { %7981 = vpow2.f32 %v6753_v37 }
0x3608   :  { %v7980_v19 = vpop.eup %7979 }
0x3609   :  { %4431 = vrot.lane.b32.xlu1 %v7980_v19, %s8120_s28 }
0x360a   :  { %v7982_v44 = vpop.eup %7981 }
0x360b   :  { %v4425_v16 = vadd.f32 1.0, %v7982_v44 }
0x360d   :  { %7983 = vrcp.f32 %v4425_v16 }
0x3617   :  { %v7984_v7 = vpop.eup %7983 }
0x3618   :  { %v4429_v20 = vmul.f32 %v7984_v7, %v9104_v56 }
0x367b   :  { %v4432_v23 = vpop.permute.xlu1 %4431 }
0x367c   :  { %v4434_v40 = vmul.f32 %v7984_v7, %v4432_v23  ;;  %v4706_v23 = vld [vmem:[%s9787_s15] sm:$0xff] }
0x367e   :  { %4436 = vrot.lane.b32.xlu0 %v4434_v40, %s8117_s11  ;;  %v4707_v40 = vld [vmem:[%s9787_s15 + $0x8] sm:$0xff] }
0x36f0   :  { %v4437_v21 = vpop.permute.xlu0 %4436 }
0x36f1   :  { %v9300_v46 = vadd.f32 %v4437_v21, %v4429_v20  ;;  %v9323_v21 = vpack.c.bf16 %v4707_v40, %v4706_v23 }
0x36f3   :  { %7985 = vtanh.f32 %v9300_v46 }
0x36fd   :  { %v7986_v54 = vpop.eup %7985 }
0x36fe   :  { %4442 = vrot.lane.b32.xlu1 %v7986_v54, %s8120_s28  ;;  %v4708_v54 = vld [vmem:[%s9787_s15 + $0x10] sm:$0xff] }
0x3770   :  { %v4443_v15 = vpop.permute.xlu1 %4442 }
0x3771   :  { %v4445_v59 = vmul.f32 %v7984_v7, %v4443_v15  ;;  %v4709_v15 = vld [vmem:[%s9787_s15 + $0x18] sm:$0xff] }
0x3773   :  { %4525 = vrot.lane.b32.xlu0 %v4445_v59, %s8117_s11 }
0x37e5   :  { %v9305_v12 = vpop.permute.xlu0 %4525 }
0x37e6   :  { %7342 = vmatmul.mubr.msk.f32.vlgmr.msra.gmra.mrb[40].mxu0 %vm2700_vm4, %v9305_v12 }
0x37e7   :  { %7370 = vmatprep.mubr.msk.f32.mxu0 %vm8112_vm1, %v8113_v11 }
0x38b9   :  { %v4595_v56 = vpop.f32.mrb[40].mxu0 }
0x38ba   :  { %v4596_v14 = vadd.f32 %v4595_v56, %v4520_v22  ;;  %v7343_v36 = vpop.f32.mrb[41].mxu0  ;;  %v9335_v56 = vpack.c.bf16 %v4709_v15, %v4708_v54 }
0x38bc   :  { %v4599_v45 = vadd.f32 %v4596_v14, %v9172_v57 }
0x38be   :  { %v4607_v5 = vadd.f32 %v9142_v8, %v4599_v45 }
0x38c0   :  { %4609 = vst.msk [vmem:[#allocation3 + $0x8] sm:$0xf] %vm349_vm2, %v4607_v5  ;;  %v4610_v63 = vsel %vm349_vm2, %v4607_v5, -inf }
0x38c1   :  { %4611 = vmax.xlane.f32.xlu1 %v4610_v63 }
0x394e   :  { %v4612_v61 = vpop.xlane.xlu1 %4611 }
0x394f   :  { %vm4613_vm3 = vcmp.ge.f32.partialorder %v4607_v5, %v4612_v61 }
0x3950   :  { %v4614_v28 = vsel %vm4613_vm3, %v8916_v1, 16 }
0x3951   :  { %v4615_v34 = vsel %vm349_vm2, %v4614_v28, 2147483647 }
0x3952   :  { %v4617_v3 = vshra.s32 %v4615_v34, 16  ;;  %v4616_v22 = vand.u32 65535, %v4615_v34 }
0x3954   :  { %v4619_v52 = vcvt.s32.f32 %v4617_v3  ;;  %v4618_v37 = vcvt.s32.f32 %v4616_v22 }
0x3956   :  { %4620 = vmin.xlane.f32.xlu0 %v4619_v52 }
0x39e3   :  { %v4621_v19 = vpop.xlane.xlu0 %4620 }
0x39e4   :  { %vm4622_vm14 = vcmp.eq.f32.partialorder %v4619_v52, %v4621_v19  ;;  %v4627_v8 = vcvt.f32.s32 %v4621_v19 }
0x39e5   :  { %v4623_v57 = vsel %vm4622_vm14, %v4618_v37, inf  ;;  %v9366_v37 = vld [vmem:[%s9790_s18] ss:$0 sm:$0xff] }
0x39e6   :  { %4624 = vmin.xlane.f32.xlu0 %v4623_v57  ;;  %v4628_v16 = vshll.u32 %v4627_v8, 16 }
0x3a73   :  { %v4625_v44 = vpop.xlane.xlu0 %4624 }
0x3a74   :  { %v4626_v7 = vcvt.f32.s32 %v4625_v44 }
0x3a76   :  { %v4629_v20 = vadd.s32 %v4628_v16, %v4626_v7 }
0x3a78   :  { %vm4630_vm15 = vcmp.eq.s32.totalorder %v8916_v1, %v4629_v20 }
0x3a79   :  { %v6757_v59 = vsel %vm4630_vm15, 1.0, %v8113_v11 }
0x3a7a   :  { %7349 = vmatmul.mubr.msk.f32.vlgmr.msra.gmra.mrb[46].mxu1 %vm116_vm0, %v6757_v59 }
0x3a7b   :  { %7680 = vmatpush3.bf16.msra.mxu1 %v9323_v21  ;;  %7359 = vmatprep.mubr.msk.f32.mxu1 %vm8112_vm1, %v8113_v11 }
0x3a7c   :  { %7681 = vmatprep.subr.bf16.mxu1 %v9810_v9 }
0x3a7f   :  { %7683 = vmatpush3.bf16.msra.mxu1 %v9335_v56 }
0x3a80   :  { %7690 = vmatprep.subr.bf16.mxu1 %v9810_v9 }
0x3a82   :  { %7360 = vmatmul.mubr.msk.f32.vlgmr.msra.gmra.mrb[48].mxu1 %vm2700_vm4, %v9305_v12 }
0x3a83   :  { %7692 = vmatpush3.bf16.msra.mxu1 %v9089_v43  ;;  %7377 = vmatprep.mubr.msk.f32.mxu1 %vm8112_vm1, %v8113_v11 }
0x3a84   :  { %7699 = vmatprep.subr.bf16.mxu1 %v9810_v9 }
0x3a86   :  { %7378 = vmatmul.mubr.msk.f32.vlgmr.msra.gmra.mrb[50].mxu1 %vm116_vm0, %v6757_v59  ;;  %vm9838_vm0 = vcmask 31744  }
0x3a87   :  { %7399 = vmatprep.mubr.msk.f32.mxu1 %vm8112_vm1, %v8113_v11  ;;  %vm9839_vm3 = vmmov %vm9838_vm0 }
0x3a88   :  { %vm9840_vm14 = vmmov %vm9838_vm0 }
0x3a89   :  { %vm9841_vm15 = vmmov %vm9838_vm0 }
0x3b4d   :  { %v9351_v1 = vpop.f32.mrb[46].mxu1 }
0x3b4e   :  { %v7350_v14 = vpop.f32.mrb[47].mxu1 }
0x3b55   :  { %v4776_v36 = vpop.f32.mrb[48].mxu1 }
0x3b56   :  { %v7361_v45 = vpop.f32.mrb[49].mxu1  ;;  %v4781_v5 = vadd.f32 %v4776_v36, %v8864_v13  ;;  %v4780_v63 = vadd.f32 %v4776_v36, %v8862_v30  ;;  %v4783_v43 = vadd.f32 %v4776_v36, %v8868_v35  ;;  %v4782_v61 = vadd.f32 %v4776_v36, %v8860_v29 }
0x3b57   :  { %v4785_v28 = vadd.f32 %v4776_v36, %v8878_v60  ;;  %v4784_v3 = vadd.f32 %v4776_v36, %v8866_v33  ;;  %v4787_v22 = vadd.f32 %v4776_v36, %v8883_v25  ;;  %v4786_v19 = vadd.f32 %v4776_v36, %v8873_v38 }
0x3b58   :  { %7987 = vtanh.f32 %v4781_v5 }
0x3b59   :  { %v9358_v34 = vpop.f32.mrb[50].mxu1  ;;  %7989 = vtanh.f32 %v4780_v63 }
0x3b5a   :  { %v7379_v52 = vpop.f32.mrb[51].mxu1  ;;  %7991 = vtanh.f32 %v4783_v43 }
0x3b5b   :  { %7993 = vtanh.f32 %v4782_v61 }
0x3b5c   :  { %7995 = vtanh.f32 %v4785_v28 }
0x3b5d   :  { %7997 = vtanh.f32 %v4784_v3 }
0x3b5e   :  { %7999 = vtanh.f32 %v4787_v22 }
0x3b5f   :  { %8001 = vtanh.f32 %v4786_v19 }
0x3b62   :  { %v7988_v57 = vpop.eup %7987 }
0x3b63   :  { %v7990_v8 = vpop.eup %7989  ;;  %v4804_v44 = vmul.f32 %v7988_v57, %v9366_v37 }
0x3b64   :  { %v7992_v16 = vpop.eup %7991  ;;  %v4803_v7 = vmul.f32 %v7990_v8, %v9366_v37 }
0x3b65   :  { %v7994_v23 = vpop.eup %7993  ;;  %v4814_v40 = vsel %vm3284_vm5, %v4804_v44, 0.0  ;;  %v4806_v20 = vmul.f32 %v7992_v16, %v9366_v37 }
0x3b66   :  { %v7996_v54 = vpop.eup %7995  ;;  %4815 = vadd.xlane.f32.xlu0 %v4814_v40  ;;  %v4811_v15 = vsel %vm3284_vm5, %v4803_v7, 0.0  ;;  %v4805_v59 = vmul.f32 %v7994_v23, %v9366_v37 }
0x3b67   :  { %v7998_v14 = vpop.eup %7997  ;;  %4812 = vadd.xlane.f32.xlu1 %v4811_v15  ;;  %v4820_v36 = vsel %vm3284_vm5, %v4806_v20, 0.0  ;;  %v4808_v45 = vmul.f32 %v7996_v54, %v9366_v37 }
0x3b68   :  { %v8000_v5 = vpop.eup %7999  ;;  %v4817_v63 = vsel %vm3284_vm5, %v4805_v59, 0.0  ;;  %v4807_v43 = vmul.f32 %v7998_v14, %v9366_v37 }
0x3b69   :  { %v8002_v61 = vpop.eup %8001  ;;  %v4826_v28 = vsel %vm3284_vm5, %v4808_v45, 0.0  ;;  %v4810_v3 = vmul.f32 %v8000_v5, %v9366_v37 }
0x3b6a   :  { %4821 = vadd.xlane.f32.xlu0 %v4820_v36  ;;  %v4823_v52 = vsel %vm3284_vm5, %v4807_v43, 0.0  ;;  %v4809_v22 = vmul.f32 %v8002_v61, %v9366_v37 }
0x3b6b   :  { %4818 = vadd.xlane.f32.xlu1 %v4817_v63  ;;  %v4832_v19 = vsel %vm3284_vm5, %v4810_v3, 0.0 }
0x3b6c   :  { %v4829_v57 = vsel %vm3284_vm5, %v4809_v22, 0.0 }
0x3b6e   :  { %4827 = vadd.xlane.f32.xlu0 %v4826_v28 }
0x3b6f   :  { %4824 = vadd.xlane.f32.xlu1 %v4823_v52 }
0x3b72   :  { %4833 = vadd.xlane.f32.xlu0 %v4832_v19 }
0x3b73   :  { %4830 = vadd.xlane.f32.xlu1 %v4829_v57 }
0x3bf3   :  { %v4816_v8 = vpop.xlane.xlu0 %4815 }
0x3bf4   :  { %v4813_v44 = vpop.xlane.xlu1 %4812  ;;  %v4850_v16 = vrot.slane %v4816_v8, %v8922_v6 }
0x3bf5   :  { %v4846_v7 = vrot.slane %v4813_v44, %v8922_v6 }
0x3bf7   :  { %v4822_v23 = vpop.xlane.xlu0 %4821  ;;  %v4875_v54 = vsel %vm3352_vm6, %v4850_v16, %v4846_v7 }
0x3bf8   :  { %v4819_v40 = vpop.xlane.xlu1 %4818  ;;  %v4858_v15 = vrot.slane %v4822_v23, %v8922_v6 }
0x3bf9   :  { %v4854_v20 = vrot.slane %v4819_v40, %v8922_v6 }
0x3bfb   :  { %v4876_v59 = vsel %vm3354_vm7, %v4854_v20, %v4875_v54  ;;  %v4828_v14 = vpop.xlane.xlu0 %4827 }
0x3bfc   :  { %v4825_v36 = vpop.xlane.xlu1 %4824  ;;  %v4866_v5 = vrot.slane %v4828_v14, %v8922_v6  ;;  %v4877_v63 = vsel %vm3356_vm8, %v4858_v15, %v4876_v59 }
0x3bfd   :  { %v4862_v45 = vrot.slane %v4825_v36, %v8922_v6 }
0x3bff   :  { %v4878_v43 = vsel %vm3358_vm9, %v4862_v45, %v4877_v63  ;;  %v4834_v61 = vpop.xlane.xlu0 %4833 }
0x3c00   :  { %v4874_v28 = vrot.slane %v4834_v61, %v8922_v6  ;;  %v4831_v3 = vpop.xlane.xlu1 %4830  ;;  %v4879_v22 = vsel %vm3360_vm10, %v4866_v5, %v4878_v43 }
0x3c01   :  { %v4870_v52 = vrot.slane %v4831_v3, %v8922_v6 }
0x3c03   :  { %v4880_v19 = vsel %vm3362_vm11, %v4870_v52, %v4879_v22 }
0x3c04   :  { %v4881_v57 = vsel %vm3364_vm12, %v4874_v28, %v4880_v19 }
0x3c05   :  { %v4883_v8 = vsel %vm3309_vm13, %v4881_v57, -1e+10 }
0x3c06   :  { %v4884_v44 = vsel %vm9838_vm0, %v4883_v8, -inf }
0x3c07   :  { %v4885_v16 = vrot.slane %v4884_v44, 4 }
0x3c09   :  { %v4886_v7 = vmax.f32 %v4884_v44, %v4885_v16  ;;  %v4982_v44 = vld [vmem:[%s9792_s20] sm:$0xff]  ;;  %v4983_v16 = vld [vmem:[%s9792_s20 + $0x8] sm:$0xff] }
0x3c0b   :  { %v4887_v23 = vrot.slane %v4886_v7, 2 }
0x3c0d   :  { %v4888_v40 = vmax.f32 %v4886_v7, %v4887_v23  ;;  %v5240_v7 = vld [vmem:[%s9796_s24] sm:$0xff]  ;;  %v9416_v23 = vpack.c.bf16 %v4983_v16, %v4982_v44 }
0x3c0f   :  { %v4889_v20 = vrot.slane %v4888_v40, 1  ;;  %7686 = vmatpush3.bf16.msra.mxu0 %v9416_v23 }
0x3c10   :  { %7687 = vmatprep.subr.bf16.mxu0 %v9810_v9 }
0x3c11   :  { %v4890_v54 = vmax.f32 %v4888_v40, %v4889_v20  ;;  %v5241_v40 = vld [vmem:[%s9796_s24 + $0x8] sm:$0xff] }
0x3c12   :  { %v9421_v20 = vpack.c.bf16 %v5241_v40, %v5240_v7 }
0x3c13   :  { %v4891_v15 = vsub.f32 %v4883_v8, %v4890_v54 }
0x3c14   :  { %7701 = vmatpush3.bf16.msra.mxu1 %v9421_v20 }
0x3c15   :  { %v4892_v59 = vmul.f32 1.442695, %v4891_v15  ;;  %7702 = vmatprep.subr.bf16.mxu1 %v9810_v9 }
0x3c17   :  { %8003 = vpow2.f32 %v4892_v59  ;;  %v4984_v59 = vld [vmem:[%s9792_s20 + $0x10] sm:$0xff] }
0x3c21   :  { %v8004_v14 = vpop.eup %8003 }
0x3c22   :  { %v4894_v36 = vsel %vm9839_vm3, %v8004_v14, 0.0 }
0x3c23   :  { %v4895_v45 = vrot.slane %v4894_v36, 4 }
0x3c25   :  { %v4896_v5 = vadd.f32 %v4895_v45, %v4894_v36  ;;  %v5242_v36 = vld [vmem:[%s9796_s24 + $0x10] sm:$0xff] }
0x3c27   :  { %v4897_v63 = vrot.slane %v4896_v5, 2 }
0x3c29   :  { %v4898_v43 = vadd.f32 %v4897_v63, %v4896_v5  ;;  %v5243_v5 = vld [vmem:[%s9796_s24 + $0x18] sm:$0xff] }
0x3c2a   :  { %v9443_v63 = vpack.c.bf16 %v5243_v5, %v5242_v36 }
0x3c2b   :  { %v4899_v61 = vrot.slane %v4898_v43, 1 }
0x3c2c   :  { %7704 = vmatpush3.bf16.msra.mxu1 %v9443_v63 }
0x3c2d   :  { %v4900_v28 = vadd.f32 %v4899_v61, %v4898_v43  ;;  %7711 = vmatprep.subr.bf16.mxu1 %v9810_v9 }
0x3c2f   :  { %8005 = vrcp.f32 %v4900_v28 }
0x3c39   :  { %v8006_v3 = vpop.eup %8005 }
0x3c3a   :  { %v4902_v52 = vmul.f32 %v8006_v3, %v8004_v14  ;;  %v4985_v14 = vld [vmem:[%s9792_s20 + $0x18] sm:$0xff] }
0x3c3b   :  { %v9437_v45 = vpack.c.bf16 %v4985_v14, %v4984_v59 }
0x3c3c   :  { %v4913_v22 = vrot.slane %v4902_v52, %v8973_v26  ;;  %v4906_v19 = vrot.slane %v4902_v52, %v8976_v62  ;;  %v4934_v57 = vrot.slane %v4902_v52, %v9008_v0  ;;  %v4920_v8 = vrot.slane %v4902_v52, %v8988_v51 }
0x3c3d   :  { %v4948_v54 = vrot.slane %v4902_v52, %v9029_v55  ;;  %v4927_v15 = vrot.slane %v4902_v52, %v8991_v53  ;;  %7689 = vmatpush3.bf16.msra.mxu0 %v9437_v45  ;;  %v4941_v43 = vrot.slane %v4902_v52, %v9011_v31  ;;  %v4955_v61 = vrot.slane %v4902_v52, %v9032_v27 }
0x3c3e   :  { %4915 = vbcast.lane.b32.xlu0 %v4913_v22, 256  ;;  %4908 = vbcast.lane.b32.xlu1 %v4906_v19, 256 }
0x3c3f   :  { %7693 = vmatprep.subr.bf16.mxu0 %v9810_v9 }
0x3c42   :  { %4936 = vbcast.lane.b32.xlu0 %v4934_v57, 256  ;;  %4922 = vbcast.lane.b32.xlu1 %v4920_v8, 256 }
0x3c46   :  { %4950 = vbcast.lane.b32.xlu0 %v4948_v54, 256  ;;  %4929 = vbcast.lane.b32.xlu1 %v4927_v15, 256 }
0x3c4a   :  { %4943 = vbcast.lane.b32.xlu1 %v4941_v43, 256 }
0x3c4e   :  { %4957 = vbcast.lane.b32.xlu1 %v4955_v61, 256 }
0x3cb0   :  { %v4916_v28 = vpop.permute.xlu0 %4915  ;;  %v4909_v3 = vpop.permute.xlu1 %4908 }
0x3cb1   :  { %v4960_v22 = vmul.f32 %v9227_v42, %v4916_v28  ;;  %v4959_v19 = vmul.f32 %v9230_v18, %v4909_v3 }
0x3cb3   :  { %v4968_v44 = vsel %vm3284_vm5, %v4960_v22, 0.0  ;;  %v4967_v16 = vsel %vm3284_vm5, %v4959_v19, 0.0 }
0x3cb4   :  { %v4937_v57 = vpop.permute.xlu0 %4936  ;;  %v4923_v8 = vpop.permute.xlu1 %4922  ;;  %v4969_v54 = vadd.f32 %v4968_v44, %v4967_v16 }
0x3cb5   :  { %v4961_v7 = vmul.f32 %v9235_v4, %v4923_v8  ;;  %v4963_v52 = vmul.f32 %v9243_v50, %v4937_v57 }
0x3cb7   :  { %v4970_v40 = vsel %vm3284_vm5, %v4961_v7, 0.0  ;;  %v4974_v28 = vsel %vm3284_vm5, %v4963_v52, 0.0 }
0x3cb8   :  { %v4930_v15 = vpop.permute.xlu1 %4929  ;;  %v4971_v14 = vadd.f32 %v4970_v40, %v4969_v54  ;;  %v4951_v36 = vpop.permute.xlu0 %4950 }
0x3cb9   :  { %v4962_v59 = vmul.f32 %v9238_v41, %v4930_v15  ;;  %v4965_v3 = vmul.f32 %v9251_v47, %v4951_v36 }
0x3cbb   :  { %v4972_v5 = vsel %vm3284_vm5, %v4962_v59, 0.0  ;;  %v4978_v57 = vsel %vm3284_vm5, %v4965_v3, 0.0 }
0x3cbc   :  { %v4973_v43 = vadd.f32 %v4972_v5, %v4971_v14  ;;  %v4944_v61 = vpop.permute.xlu1 %4943 }
0x3cbd   :  { %v4964_v22 = vmul.f32 %v9246_v39, %v4944_v61  ;;  %v9489_v61 = vld [vmem:[%s9794_s22] ss:$0 sm:$0xff] }
0x3cbe   :  { %v4975_v19 = vadd.f32 %v4974_v28, %v4973_v43 }
0x3cbf   :  { %v4976_v8 = vsel %vm3284_vm5, %v4964_v22, 0.0 }
0x3cc0   :  { %v4977_v44 = vadd.f32 %v4976_v8, %v4975_v19  ;;  %v4958_v16 = vpop.permute.xlu1 %4957 }
0x3cc1   :  { %v4966_v7 = vmul.f32 %v9254_v58, %v4958_v16 }
0x3cc2   :  { %v4979_v40 = vadd.f32 %v4978_v57, %v4977_v44 }
0x3cc3   :  { %v4980_v54 = vsel %vm3284_vm5, %v4966_v7, 0.0 }
0x3cc4   :  { %v4981_v15 = vadd.f32 %v4980_v54, %v4979_v40 }
0x3cc6   :  { %7371 = vmatmul.mubr.msk.f32.vlgmr.msra.gmra.mrb[42].mxu0 %vm2700_vm4, %v4981_v15  ;;  %7400 = vmatmul.mubr.msk.f32.vlgmr.msra.gmra.mrb[52].mxu1 %vm2700_vm4, %v4981_v15  ;;  %v5236_v15 = vld [vmem:[%s9795_s23] sm:$0xff] }
0x3cc7   :  { %7695 = vmatpush3.bf16.msra.mxu0 %v9265_v2  ;;  %7388 = vmatprep.mubr.msk.f32.mxu0 %vm8112_vm1, %v8113_v11 }
0x3cc8   :  { %7696 = vmatprep.subr.bf16.mxu0 %v9810_v9  ;;  %7713 = vmatpush3.bf16.msra.mxu1 %v9323_v21 }
0x3cc9   :  { %7714 = vmatprep.subr.bf16.mxu1 %v9810_v9  ;;  %7421 = vmatprep.mubr.msk.f32.mxu1 %vm8112_vm1, %v8113_v11 }
0x3ccb   :  { %7698 = vmatpush3.bf16.msra.mxu0 %v9277_v48 }
0x3ccc   :  { %7705 = vmatprep.subr.bf16.mxu0 %v9810_v9  ;;  %7716 = vmatpush3.bf16.msra.mxu1 %v9335_v56 }
0x3ccd   :  { %7723 = vmatprep.subr.bf16.mxu1 %v9810_v9 }
0x3cce   :  { %7389 = vmatmul.mubr.msk.f32.vlgmr.msra.gmra.mrb[44].mxu0 %vm2700_vm4, %v9305_v12 }
0x3ccf   :  { %7410 = vmatprep.mubr.msk.f32.mxu0 %vm8112_vm1, %v8113_v11 }
0x3d99   :  { %v5055_v52 = vpop.f32.mrb[42].mxu0  ;;  %v5310_v59 = vpop.f32.mrb[52].mxu1 }
0x3d9a   :  { %v5126_v14 = vadd.f32 %v9358_v34, %v5055_v52  ;;  %v7372_v36 = vpop.f32.mrb[43].mxu0  ;;  %v7401_v5 = vpop.f32.mrb[53].mxu1  ;;  %v5237_v52 = vld [vmem:[%s9795_s23 + $0x8] sm:$0xff] }
0x3d9b   :  { %v9507_v36 = vpack.c.bf16 %v5237_v52, %v5236_v15 }
0x3d9d   :  { %7707 = vmatpush3.bf16.msra.mxu0 %v9507_v36 }
0x3d9e   :  { %7708 = vmatprep.subr.bf16.mxu0 %v9810_v9 }
0x3da1   :  { %v5199_v43 = vpop.f32.mrb[44].mxu0 }
0x3da2   :  { %v5203_v28 = vadd.f32 %v5199_v43, %v5126_v14  ;;  %v7390_v3 = vpop.f32.mrb[45].mxu0  ;;  %v5238_v14 = vld [vmem:[%s9795_s23 + $0x10] sm:$0xff] }
0x3da4   :  { %v5211_v22 = vadd.f32 %v9489_v61, %v5203_v28 }
0x3da6   :  { %8007 = vtanh.f32 %v5211_v22  ;;  %v6765_v19 = vmul.f32 -1.442695, %v5211_v22 }
0x3da8   :  { %8009 = vpow2.f32 %v6765_v19 }
0x3db0   :  { %v8008_v12 = vpop.eup %8007 }
0x3db1   :  { %5221 = vrot.lane.b32.xlu0 %v8008_v12, %s8120_s28 }
0x3db2   :  { %v8010_v8 = vpop.eup %8009 }
0x3db3   :  { %v5215_v34 = vadd.f32 1.0, %v8010_v8 }
0x3db5   :  { %8011 = vrcp.f32 %v5215_v34 }
0x3dbf   :  { %v8012_v44 = vpop.eup %8011 }
0x3dc0   :  { %v5219_v7 = vmul.f32 %v8012_v44, %v9300_v46  ;;  %v5239_v46 = vld [vmem:[%s9795_s23 + $0x18] sm:$0xff] }
0x3dc1   :  { %v9513_v5 = vpack.c.bf16 %v5239_v46, %v5238_v14 }
0x3dc3   :  { %7710 = vmatpush3.bf16.msra.mxu0 %v9513_v5 }
0x3dc4   :  { %7717 = vmatprep.subr.bf16.mxu0 %v9810_v9 }
0x3e23   :  { %v5222_v16 = vpop.permute.xlu0 %5221 }
0x3e24   :  { %v5224_v57 = vmul.f32 %v8012_v44, %v5222_v16 }
0x3e26   :  { %5226 = vrot.lane.b32.xlu1 %v5224_v57, %s8117_s11  ;;  %v9547_v57 = vld [vmem:[%s9798_s26] ss:$0 sm:$0xff] }
0x3e98   :  { %v5227_v40 = vpop.permute.xlu1 %5226 }
0x3e99   :  { %v9495_v54 = vadd.f32 %v5227_v40, %v5219_v7 }
0x3e9b   :  { %8013 = vtanh.f32 %v9495_v54 }
0x3ea5   :  { %v8014_v43 = vpop.eup %8013 }
0x3ea6   :  { %5232 = vrot.lane.b32.xlu0 %v8014_v43, %s8120_s28 }
0x3f18   :  { %v5233_v28 = vpop.permute.xlu0 %5232 }
0x3f19   :  { %v5235_v3 = vmul.f32 %v8012_v44, %v5233_v28 }
0x3f1b   :  { %5315 = vrot.lane.b32.xlu1 %v5235_v3, %s8117_s11 }
0x3f8d   :  { %v5316_v22 = vpop.permute.xlu1 %5315 }
0x3f8e   :  { %7411 = vmatmul.mubr.msk.f32.vlgmr.msra.gmra.mrb[46].mxu0 %vm2700_vm4, %v5316_v22  ;;  %7422 = vmatmul.mubr.msk.f32.vlgmr.msra.gmra.mrb[54].mxu1 %vm2700_vm4, %v5316_v22 }
0x3f8f   :  { %7725 = vmatpush3.bf16.msra.mxu1 %v9265_v2  ;;  %7443 = vmatprep.mubr.msk.f32.mxu1 %vm8112_vm1, %v8113_v11 }
0x3f90   :  { %7726 = vmatprep.subr.bf16.mxu1 %v9810_v9  ;;  %7719 = vmatpush3.bf16.msra.mxu0 %v9416_v23 }
0x3f91   :  { %7720 = vmatprep.subr.bf16.mxu0 %v9810_v9  ;;  %7432 = vmatprep.mubr.msk.f32.mxu0 %vm8112_vm1, %v8113_v11 }
0x3f93   :  { %7728 = vmatpush3.bf16.msra.mxu1 %v9277_v48 }
0x3f94   :  { %7722 = vmatpush3.bf16.msra.mxu0 %v9437_v45  ;;  %7735 = vmatprep.subr.bf16.mxu1 %v9810_v9 }
0x3f95   :  { %7729 = vmatprep.subr.bf16.mxu0 %v9810_v9 }
0x3f96   :  { %7444 = vmatmul.mubr.msk.f32.vlgmr.msra.gmra.mrb[56].mxu1 %vm2700_vm4, %v5316_v22 }
0x3f97   :  { %7737 = vmatpush3.bf16.msra.mxu1 %v9507_v36  ;;  %7465 = vmatprep.mubr.msk.f32.mxu1 %vm8112_vm1, %v8113_v11 }
0x3f98   :  { %7738 = vmatprep.subr.bf16.mxu1 %v9810_v9 }
0x3f9b   :  { %7740 = vmatpush3.bf16.msra.mxu1 %v9513_v5 }
0x3f9c   :  { %7747 = vmatprep.subr.bf16.mxu1 %v9810_v9 }
0x4061   :  { %v5385_v2 = vpop.f32.mrb[46].mxu0  ;;  %v5470_v48 = vpop.f32.mrb[54].mxu1 }
0x4062   :  { %v5386_v12 = vadd.f32 %v5385_v2, %v5310_v59  ;;  %v7412_v19 = vpop.f32.mrb[47].mxu0  ;;  %v7423_v8 = vpop.f32.mrb[55].mxu1  ;;  %v5475_v34 = vadd.f32 %v5470_v48, %v8864_v13  ;;  %v5474_v44 = vadd.f32 %v5470_v48, %v8862_v30  ;;  %v5478_v16 = vadd.f32 %v5470_v48, %v8866_v33 }
0x4063   :  { %v5476_v7 = vadd.f32 %v5470_v48, %v8860_v29  ;;  %v5480_v59 = vadd.f32 %v5470_v48, %v8873_v38  ;;  %v5477_v15 = vadd.f32 %v5470_v48, %v8868_v35  ;;  %v5479_v46 = vadd.f32 %v5470_v48, %v8878_v60 }
0x4064   :  { %v5389_v40 = vadd.f32 %v5386_v12, %v9351_v1  ;;  %8015 = vtanh.f32 %v5475_v34  ;;  %v5481_v1 = vadd.f32 %v5470_v48, %v8883_v25 }
0x4065   :  { %8017 = vtanh.f32 %v5474_v44 }
0x4066   :  { %v5397_v52 = vadd.f32 %v9547_v57, %v5389_v40  ;;  %8019 = vtanh.f32 %v5478_v16 }
0x4067   :  { %8021 = vtanh.f32 %v5476_v7 }
0x4068   :  { %5399 = vst.msk [vmem:[#allocation3 + $0xc] sm:$0xf] %vm349_vm2, %v5397_v52  ;;  %8023 = vtanh.f32 %v5480_v59 }
0x4069   :  { %v9555_v14 = vpop.f32.mrb[56].mxu1  ;;  %8025 = vtanh.f32 %v5477_v15 }
0x406a   :  { %v7445_v43 = vpop.f32.mrb[57].mxu1  ;;  %8027 = vtanh.f32 %v5479_v46 }
0x406b   :  { %8029 = vtanh.f32 %v5481_v1 }
0x406e   :  { %v8016_v28 = vpop.eup %8015 }
0x406f   :  { %v8018_v3 = vpop.eup %8017  ;;  %v5498_v22 = vmul.f32 %v8016_v28, %v9366_v37 }
0x4070   :  { %v8020_v2 = vpop.eup %8019  ;;  %v5497_v12 = vmul.f32 %v8018_v3, %v9366_v37 }
0x4071   :  { %v8022_v19 = vpop.eup %8021  ;;  %v5508_v8 = vsel %vm3284_vm5, %v5498_v22, 0.0  ;;  %v5501_v34 = vmul.f32 %v8020_v2, %v9366_v37 }
0x4072   :  { %v8024_v44 = vpop.eup %8023  ;;  %5509 = vadd.xlane.f32.xlu1 %v5508_v8  ;;  %v5505_v16 = vsel %vm3284_vm5, %v5497_v12, 0.0  ;;  %v5499_v7 = vmul.f32 %v8022_v19, %v9366_v37 }
0x4073   :  { %v8026_v48 = vpop.eup %8025  ;;  %5506 = vadd.xlane.f32.xlu0 %v5505_v16  ;;  %v5517_v40 = vsel %vm3284_vm5, %v5501_v34, 0.0  ;;  %v5503_v59 = vmul.f32 %v8024_v44, %v9366_v37 }
0x4074   :  { %v5511_v15 = vsel %vm3284_vm5, %v5499_v7, 0.0  ;;  %v5500_v52 = vmul.f32 %v8026_v48, %v9366_v37  ;;  %v8028_v46 = vpop.eup %8027 }
0x4075   :  { %v5523_v43 = vsel %vm3284_vm5, %v5503_v59, 0.0  ;;  %v5502_v28 = vmul.f32 %v8028_v46, %v9366_v37  ;;  %v8030_v3 = vpop.eup %8029 }
0x4076   :  { %5518 = vadd.xlane.f32.xlu1 %v5517_v40  ;;  %v5514_v1 = vsel %vm3284_vm5, %v5500_v52, 0.0  ;;  %v5504_v2 = vmul.f32 %v8030_v3, %v9366_v37 }
0x4077   :  { %5512 = vadd.xlane.f32.xlu0 %v5511_v15  ;;  %v5520_v22 = vsel %vm3284_vm5, %v5502_v28, 0.0 }
0x4078   :  { %v5526_v12 = vsel %vm3284_vm5, %v5504_v2, 0.0 }
0x407a   :  { %5524 = vadd.xlane.f32.xlu1 %v5523_v43 }
0x407b   :  { %5515 = vadd.xlane.f32.xlu0 %v5514_v1 }
0x407f   :  { %5521 = vadd.xlane.f32.xlu0 %v5520_v22 }
0x4083   :  { %5527 = vadd.xlane.f32.xlu0 %v5526_v12 }
0x40ff   :  { %v5510_v8 = vpop.xlane.xlu1 %5509 }
0x4100   :  { %v5507_v19 = vpop.xlane.xlu0 %5506  ;;  %v5544_v44 = vrot.slane %v5510_v8, %v8922_v6 }
0x4101   :  { %v5540_v16 = vrot.slane %v5507_v19, %v8922_v6 }
0x4103   :  { %v5519_v48 = vpop.xlane.xlu1 %5518  ;;  %v5569_v59 = vsel %vm3352_vm6, %v5544_v44, %v5540_v16 }
0x4104   :  { %v5513_v34 = vpop.xlane.xlu0 %5512  ;;  %v5556_v43 = vrot.slane %v5519_v48, %v8922_v6 }
0x4105   :  { %v5548_v7 = vrot.slane %v5513_v34, %v8922_v6 }
0x4107   :  { %v5570_v52 = vsel %vm3354_vm7, %v5548_v7, %v5569_v59  ;;  %v5525_v28 = vpop.xlane.xlu1 %5524 }
0x4108   :  { %v5516_v40 = vpop.xlane.xlu0 %5515  ;;  %v5564_v12 = vrot.slane %v5525_v28, %v8922_v6 }
0x4109   :  { %v5552_v15 = vrot.slane %v5516_v40, %v8922_v6 }
0x410b   :  { %v5571_v46 = vsel %vm3356_vm8, %v5552_v15, %v5570_v52 }
0x410c   :  { %v5522_v1 = vpop.xlane.xlu0 %5521  ;;  %v5572_v22 = vsel %vm3358_vm9, %v5556_v43, %v5571_v46 }
0x410d   :  { %v5560_v3 = vrot.slane %v5522_v1, %v8922_v6 }
0x410f   :  { %v5573_v2 = vsel %vm3360_vm10, %v5560_v3, %v5572_v22 }
0x4110   :  { %v5528_v19 = vpop.xlane.xlu0 %5527  ;;  %v5574_v34 = vsel %vm3362_vm11, %v5564_v12, %v5573_v2 }
0x4111   :  { %v5568_v8 = vrot.slane %v5528_v19, %v8922_v6 }
0x4113   :  { %v5575_v44 = vsel %vm3364_vm12, %v5568_v8, %v5574_v34 }
0x4114   :  { %v5577_v16 = vsel %vm3309_vm13, %v5575_v44, -1e+10 }
0x4115   :  { %v5578_v7 = vsel %vm9840_vm14, %v5577_v16, -inf }
0x4116   :  { %v5579_v48 = vrot.slane %v5578_v7, 4 }
0x4118   :  { %v5580_v40 = vmax.f32 %v5578_v7, %v5579_v48 }
0x411a   :  { %v5581_v59 = vrot.slane %v5580_v40, 2 }
0x411c   :  { %v5582_v15 = vmax.f32 %v5580_v40, %v5581_v59 }
0x411e   :  { %v5583_v52 = vrot.slane %v5582_v15, 1 }
0x4120   :  { %v5584_v46 = vmax.f32 %v5582_v15, %v5583_v52 }
0x4122   :  { %v5585_v43 = vsub.f32 %v5577_v16, %v5584_v46 }
0x4124   :  { %v5586_v1 = vmul.f32 1.442695, %v5585_v43 }
0x4126   :  { %8031 = vpow2.f32 %v5586_v1 }
0x4130   :  { %v8032_v28 = vpop.eup %8031 }
0x4131   :  { %v5588_v3 = vsel %vm9841_vm15, %v8032_v28, 0.0 }
0x4132   :  { %v5589_v22 = vrot.slane %v5588_v3, 4 }
0x4134   :  { %v5590_v2 = vadd.f32 %v5589_v22, %v5588_v3 }
0x4136   :  { %v5591_v12 = vrot.slane %v5590_v2, 2 }
0x4138   :  { %v5592_v19 = vadd.f32 %v5591_v12, %v5590_v2 }
0x413a   :  { %v5593_v8 = vrot.slane %v5592_v19, 1 }
0x413c   :  { %v5594_v34 = vadd.f32 %v5593_v8, %v5592_v19 }
0x413e   :  { %8033 = vrcp.f32 %v5594_v34 }
0x4148   :  { %v8034_v44 = vpop.eup %8033 }
0x4149   :  { %v5596_v9 = vmul.f32 %v8034_v44, %v8032_v28 }
0x414b   :  { %v5607_v7 = vrot.slane %v5596_v9, %v8973_v26  ;;  %v5600_v48 = vrot.slane %v5596_v9, %v8976_v62  ;;  %v5628_v16 = vrot.slane %v5596_v9, %v9008_v0  ;;  %v5614_v40 = vrot.slane %v5596_v9, %v8988_v51 }
0x414c   :  { %v5642_v59 = vrot.slane %v5596_v9, %v9029_v55  ;;  %v5621_v15 = vrot.slane %v5596_v9, %v8991_v53  ;;  %v5635_v52 = vrot.slane %v5596_v9, %v9011_v31  ;;  %v5649_v46 = vrot.slane %v5596_v9, %v9032_v27 }
0x414d   :  { %5609 = vbcast.lane.b32.xlu0 %v5607_v7, 256  ;;  %5602 = vbcast.lane.b32.xlu1 %v5600_v48, 256 }
0x4151   :  { %5630 = vbcast.lane.b32.xlu0 %v5628_v16, 256  ;;  %5616 = vbcast.lane.b32.xlu1 %v5614_v40, 256 }
0x4155   :  { %5644 = vbcast.lane.b32.xlu0 %v5642_v59, 256  ;;  %5623 = vbcast.lane.b32.xlu1 %v5621_v15, 256 }
0x4159   :  { %5637 = vbcast.lane.b32.xlu1 %v5635_v52, 256 }
0x415d   :  { %5651 = vbcast.lane.b32.xlu1 %v5649_v46, 256 }
0x41bf   :  { %v5610_v43 = vpop.permute.xlu0 %5609  ;;  %v5603_v1 = vpop.permute.xlu1 %5602 }
0x41c0   :  { %v5654_v28 = vmul.f32 %v9227_v42, %v5610_v43  ;;  %v5653_v3 = vmul.f32 %v9230_v18, %v5603_v1 }
0x41c2   :  { %v5662_v12 = vsel %vm3284_vm5, %v5654_v28, 0.0  ;;  %v5661_v19 = vsel %vm3284_vm5, %v5653_v3, 0.0 }
0x41c3   :  { %v5631_v22 = vpop.permute.xlu0 %5630  ;;  %v5617_v2 = vpop.permute.xlu1 %5616  ;;  %v5663_v44 = vadd.f32 %v5662_v12, %v5661_v19 }
0x41c4   :  { %v5655_v8 = vmul.f32 %v9235_v4, %v5617_v2  ;;  %v5657_v9 = vmul.f32 %v9243_v50, %v5631_v22 }
0x41c6   :  { %v5664_v34 = vsel %vm3284_vm5, %v5655_v8, 0.0  ;;  %v5668_v15 = vsel %vm3284_vm5, %v5657_v9, 0.0 }
0x41c7   :  { %v5624_v7 = vpop.permute.xlu1 %5623  ;;  %v5665_v16 = vadd.f32 %v5664_v34, %v5663_v44  ;;  %v5645_v42 = vpop.permute.xlu0 %5644 }
0x41c8   :  { %v5656_v48 = vmul.f32 %v9238_v41, %v5624_v7  ;;  %v5659_v52 = vmul.f32 %v9251_v47, %v5645_v42  ;;  %v2925_v47 = vcombine.high %v9084_v10, %v9084_v10 }
0x41ca   :  { %v5666_v18 = vsel %vm3284_vm5, %v5656_v48, 0.0  ;;  %v5672_v50 = vsel %vm3284_vm5, %v5659_v52, 0.0 }
0x41cb   :  { %v5667_v40 = vadd.f32 %v5666_v18, %v5665_v16  ;;  %v5638_v59 = vpop.permute.xlu1 %5637 }
0x41cc   :  { %v5658_v4 = vmul.f32 %v9246_v39, %v5638_v59  ;;  %v9842_v39 = vmov 0.0|0.0  }
0x41cd   :  { %v5669_v46 = vadd.f32 %v5668_v15, %v5667_v40 }
0x41ce   :  { %v5670_v43 = vsel %vm3284_vm5, %v5658_v4, 0.0  ;;  %v6379_v4 = vld [vmem:[%s9793_s21] sm:$0xff] }
0x41cf   :  { %v5671_v1 = vadd.f32 %v5670_v43, %v5669_v46  ;;  %v5652_v28 = vpop.permute.xlu1 %5651  ;;  %v6381_v43 = vld [vmem:[%s9793_s21 + $0x10] sm:$0xff] }
0x41d0   :  { %v5660_v41 = vmul.f32 %v9254_v58, %v5652_v28 }
0x41d1   :  { %v5673_v3 = vadd.f32 %v5672_v50, %v5671_v1  ;;  %v6382_v1 = vld [vmem:[%s9793_s21 + $0x18] sm:$0xff] }
0x41d2   :  { %v5674_v22 = vsel %vm3284_vm5, %v5660_v41, 0.0  ;;  %v7757_v50 = vpack.c.bf16 %v6382_v1, %v6381_v43 }
0x41d3   :  { %v5675_v2 = vadd.f32 %v5674_v22, %v5673_v3 }
0x41d5   :  { %7433 = vmatmul.mubr.msk.f32.vlgmr.msra.gmra.mrb[48].mxu0 %vm2700_vm4, %v5675_v2 }
0x41d6   :  { %7731 = vmatpush3.bf16.msra.mxu0 %v9421_v20  ;;  %7454 = vmatprep.mubr.msk.f32.mxu0 %vm8112_vm1, %v8113_v11 }
0x41d7   :  { %7732 = vmatprep.subr.bf16.mxu0 %v9842_v39 }
0x41da   :  { %7734 = vmatpush3.bf16.msra.mxu0 %v9443_v63 }
0x41db   :  { %7741 = vmatprep.subr.bf16.mxu0 %v9842_v39 }
0x41dd   :  { %7455 = vmatmul.mubr.msk.f32.vlgmr.msra.gmra.mrb[50].mxu0 %vm2700_vm4, %v5675_v2 }
0x41de   :  { %7743 = vmatpush3.bf16.msra.mxu0 %v9323_v21  ;;  %7476 = vmatprep.mubr.msk.f32.mxu0 %vm8112_vm1, %v8113_v11 }
0x41df   :  { %7744 = vmatprep.subr.bf16.mxu0 %v9842_v39 }
0x41e2   :  { %7746 = vmatpush3.bf16.msra.mxu0 %v9335_v56 }
0x41e3   :  { %7753 = vmatprep.subr.bf16.mxu0 %v9842_v39 }
0x42a8   :  { %v5749_v58 = vpop.f32.mrb[48].mxu0 }
0x42a9   :  { %v5753_v12 = vadd.f32 %v5749_v58, %v2925_v47  ;;  %v7434_v19 = vpop.f32.mrb[49].mxu0 }
0x42ab   :  { %v5828_v8 = vadd.f32 %v9555_v14, %v5753_v12 }
0x42ad   :  { %v5836_v34 = vadd.f32 %v9489_v61, %v5828_v8 }
0x42af   :  { %8035 = vtanh.f32 %v5836_v34  ;;  %v6774_v9 = vmul.f32 -1.442695, %v5836_v34 }
0x42b0   :  { %v5935_v21 = vpop.f32.mrb[50].mxu0 }
0x42b1   :  { %v7456_v44 = vpop.f32.mrb[51].mxu0  ;;  %8037 = vpow2.f32 %v6774_v9 }
0x42b9   :  { %v8036_v7 = vpop.eup %8035 }
0x42ba   :  { %5846 = vrot.lane.b32.xlu0 %v8036_v7, %s8120_s28 }
0x42bb   :  { %v8038_v56 = vpop.eup %8037 }
0x42bc   :  { %v5840_v48 = vadd.f32 1.0, %v8038_v56 }
0x42be   :  { %8039 = vrcp.f32 %v5840_v48 }
0x42c8   :  { %v8040_v16 = vpop.eup %8039 }
0x42c9   :  { %v5844_v14 = vmul.f32 %v8040_v16, %v9495_v54  ;;  %v6380_v54 = vld [vmem:[%s9793_s21 + $0x8] sm:$0xff]  ;;  %s8122_s21 = smov [#allocation3]  }
0x42ca   :  { %v7754_v46 = vpack.c.bf16 %v6380_v54, %v6379_v4  ;;  %s6655_s4 = sshll.u32 %s8122_s21, 4  ;;  %s6656_s4 = int_to_ptr.vmem [resolvable:$true] %s6655_s4 }
0x42cb   :  { %s8087_s30 = scalar_lea.vmem %s6656_s4, 384  ;;  %p8092_p1 = scmp.lt.s32.totalorder %s6656_s4, %s6656_s4 }
0x42cc   :  { %p8088_p0 = scmp.ne.s32.totalorder %s6656_s4, %s8087_s30  ;;  %p8093_p2 = scmp.lt.s32.totalorder %s8087_s30, %s8087_s30 }
0x42ce   :  { %p8094_p3 = por %p8093_p2, %p8092_p1 }
0x42d0   :  { %p8095_p4 = pnand %p8094_p3, %p8088_p0 }
0x432c   :  { %v5847_v10 = vpop.permute.xlu0 %5846 }
0x432d   :  { %v5849_v42 = vmul.f32 %v8040_v16, %v5847_v10 }
0x432f   :  { %5851 = vrot.lane.b32.xlu1 %v5849_v42, %s8117_s11 }
0x43a1   :  { %v5852_v18 = vpop.permute.xlu1 %5851 }
0x43a2   :  { %v9639_v40 = vadd.f32 %v5852_v18, %v5844_v14 }
0x43a4   :  { %8041 = vtanh.f32 %v9639_v40 }
0x43ae   :  { %v8042_v59 = vpop.eup %8041 }
0x43af   :  { %5857 = vrot.lane.b32.xlu0 %v8042_v59, %s8120_s28 }
0x4421   :  { %v5858_v15 = vpop.permute.xlu0 %5857 }
0x4422   :  { %v5860_v52 = vmul.f32 %v8040_v16, %v5858_v15 }
0x4424   :  { %5940 = vrot.lane.b32.xlu1 %v5860_v52, %s8117_s11 }
0x4496   :  { %v5941_v28 = vpop.permute.xlu1 %5940 }
0x4497   :  { %7466 = vmatmul.mubr.msk.f32.vlgmr.msra.gmra.mrb[58].mxu1 %vm2700_vm4, %v5941_v28  ;;  %7477 = vmatmul.mubr.msk.f32.vlgmr.msra.gmra.mrb[52].mxu0 %vm2700_vm4, %v5941_v28 }
0x4498   :  { %7755 = vmatpush3.bf16.msra.mxu0 %v7754_v46  ;;  %7498 = vmatprep.mubr.msk.f32.mxu0 %vm8112_vm1, %v8113_v11 }
0x4499   :  { %7756 = vmatprep.subr.bf16.mxu0 %v9842_v39  ;;  %7749 = vmatpush3.bf16.msra.mxu1 %v9416_v23  ;;  %v3010_v23 = vcombine.high %v8853_v17, %v8853_v17 }
0x449a   :  { %7750 = vmatprep.subr.bf16.mxu1 %v9842_v39  ;;  %7487 = vmatprep.mubr.msk.f32.mxu1 %vm8112_vm1, %v8113_v11 }
0x449c   :  { %7758 = vmatpush3.bf16.msra.mxu0 %v7757_v50 }
0x449d   :  { %7752 = vmatpush3.bf16.msra.mxu1 %v9437_v45  ;;  %7765 = vmatprep.subr.bf16.mxu0 %v9842_v39 }
0x449e   :  { %7759 = vmatprep.subr.bf16.mxu1 %v9842_v39 }
0x449f   :  { %7499 = vmatmul.mubr.msk.f32.vlgmr.msra.gmra.mrb[54].mxu0 %vm2700_vm4, %v5941_v28 }
0x44a0   :  { %7767 = vmatpush3.bf16.msra.mxu0 %v9507_v36  ;;  %7520 = vmatprep.mubr.msk.f32.mxu0 %vm8112_vm1, %v8113_v11 }
0x44a1   :  { %7768 = vmatprep.subr.bf16.mxu0 %v9842_v39 }
0x44a4   :  { %7770 = vmatpush3.bf16.msra.mxu0 %v9513_v5 }
0x456a   :  { %v6010_v41 = vpop.f32.mrb[58].mxu1  ;;  %v6095_v45 = vpop.f32.mrb[52].mxu0 }
0x456b   :  { %v6011_v3 = vadd.f32 %v6010_v41, %v5935_v21  ;;  %v7467_v22 = vpop.f32.mrb[59].mxu1  ;;  %v7478_v2 = vpop.f32.mrb[53].mxu0  ;;  %v6100_v47 = vadd.f32 %v6095_v45, %v8864_v13  ;;  %v6099_v58 = vadd.f32 %v6095_v45, %v8862_v30  ;;  %v6103_v36 = vadd.f32 %v6095_v45, %v8866_v33 }
0x456c   :  { %v6101_v12 = vadd.f32 %v6095_v45, %v8860_v29  ;;  %v6105_v5 = vadd.f32 %v6095_v45, %v8873_v38  ;;  %v6102_v17 = vadd.f32 %v6095_v45, %v8868_v35  ;;  %v6104_v30 = vadd.f32 %v6095_v45, %v8878_v60 }
0x456d   :  { %v6014_v19 = vadd.f32 %v6011_v3, %v3010_v23  ;;  %8043 = vtanh.f32 %v6100_v47  ;;  %v6106_v33 = vadd.f32 %v6095_v45, %v8883_v25 }
0x456e   :  { %8045 = vtanh.f32 %v6099_v58 }
0x456f   :  { %v6022_v8 = vadd.f32 %v9547_v57, %v6014_v19  ;;  %8047 = vtanh.f32 %v6103_v36 }
0x4570   :  { %8049 = vtanh.f32 %v6101_v12 }
0x4571   :  { %6024 = vst.msk [vmem:[#allocation3 + $0x10] sm:$0xf] %vm349_vm2, %v6022_v8  ;;  %8051 = vtanh.f32 %v6105_v5 }
0x4572   :  { %v9684_v13 = vpop.f32.mrb[54].mxu0  ;;  %8053 = vtanh.f32 %v6102_v17 }
0x4573   :  { %v7500_v29 = vpop.f32.mrb[55].mxu0  ;;  %8055 = vtanh.f32 %v6104_v30 }
0x4574   :  { %8057 = vtanh.f32 %v6106_v33 }
0x4577   :  { %v8044_v38 = vpop.eup %8043 }
0x4578   :  { %v8046_v34 = vpop.eup %8045  ;;  %v6123_v35 = vmul.f32 %v8044_v38, %v9366_v37 }
0x4579   :  { %v8048_v21 = vpop.eup %8047  ;;  %v6122_v44 = vmul.f32 %v8046_v34, %v9366_v37 }
0x457a   :  { %v8050_v7 = vpop.eup %8049  ;;  %v6133_v9 = vsel %vm3284_vm5, %v6123_v35, 0.0  ;;  %v6126_v56 = vmul.f32 %v8048_v21, %v9366_v37 }
0x457b   :  { %v8052_v48 = vpop.eup %8051  ;;  %6134 = vadd.xlane.f32.xlu1 %v6133_v9  ;;  %v6130_v60 = vsel %vm3284_vm5, %v6122_v44, 0.0  ;;  %v6124_v16 = vmul.f32 %v8050_v7, %v9366_v37 }
0x457c   :  { %v8054_v25 = vpop.eup %8053  ;;  %6131 = vadd.xlane.f32.xlu0 %v6130_v60  ;;  %v6142_v10 = vsel %vm3284_vm5, %v6126_v56, 0.0  ;;  %v6128_v42 = vmul.f32 %v8052_v48, %v9366_v37 }
0x457d   :  { %v6136_v14 = vsel %vm3284_vm5, %v6124_v16, 0.0  ;;  %v6125_v18 = vmul.f32 %v8054_v25, %v9366_v37  ;;  %v8056_v59 = vpop.eup %8055 }
0x457e   :  { %v6148_v15 = vsel %vm3284_vm5, %v6128_v42, 0.0  ;;  %v6127_v4 = vmul.f32 %v8056_v59, %v9366_v37  ;;  %v8058_v54 = vpop.eup %8057 }
0x457f   :  { %6143 = vadd.xlane.f32.xlu1 %v6142_v10  ;;  %v6139_v52 = vsel %vm3284_vm5, %v6125_v18, 0.0  ;;  %v6129_v43 = vmul.f32 %v8058_v54, %v9366_v37 }
0x4580   :  { %6137 = vadd.xlane.f32.xlu0 %v6136_v14  ;;  %v6145_v46 = vsel %vm3284_vm5, %v6127_v4, 0.0 }
0x4581   :  { %v6151_v1 = vsel %vm3284_vm5, %v6129_v43, 0.0 }
0x4583   :  { %6149 = vadd.xlane.f32.xlu1 %v6148_v15 }
0x4584   :  { %6140 = vadd.xlane.f32.xlu0 %v6139_v52 }
0x4588   :  { %6146 = vadd.xlane.f32.xlu0 %v6145_v46 }
0x458c   :  { %6152 = vadd.xlane.f32.xlu0 %v6151_v1 }
0x4608   :  { %v6135_v50 = vpop.xlane.xlu1 %6134 }
0x4609   :  { %v6132_v28 = vpop.xlane.xlu0 %6131  ;;  %v6169_v41 = vrot.slane %v6135_v50, %v8922_v6 }
0x460a   :  { %v6165_v45 = vrot.slane %v6132_v28, %v8922_v6 }
0x460c   :  { %v6144_v22 = vpop.xlane.xlu1 %6143  ;;  %v6194_v47 = vsel %vm3352_vm6, %v6169_v41, %v6165_v45  ;;  %vm9843_vm6 = vmmov %vm9838_vm0 }
0x460d   :  { %v6138_v23 = vpop.xlane.xlu0 %6137  ;;  %v6181_v12 = vrot.slane %v6144_v22, %v8922_v6  ;;  %v8080_v22 = vld [vmem:[#allocation2] sm:$0xf] }
0x460e   :  { %v6173_v3 = vrot.slane %v6138_v23, %v8922_v6 }
0x4610   :  { %v6195_v37 = vsel %vm3354_vm7, %v6173_v3, %v6194_v47  ;;  %v6150_v5 = vpop.xlane.xlu1 %6149  ;;  %vm9844_vm7 = vmmov %vm9838_vm0  ;;  %v8079_v3 = vld [vmem:[#allocation2 + $0x4] sm:$0xf] }
0x4611   :  { %v6141_v2 = vpop.xlane.xlu0 %6140  ;;  %v6189_v29 = vrot.slane %v6150_v5, %v8922_v6  ;;  %v8083_v5 = vld [vmem:[#allocation2 + $0xc] sm:$0xf] }
0x4612   :  { %v6177_v58 = vrot.slane %v6141_v2, %v8922_v6 }
0x4614   :  { %v6196_v36 = vsel %vm3356_vm8, %v6177_v58, %v6195_v37  ;;  %v8081_v58 = vld [vmem:[#allocation2 + $0x8] sm:$0xf] }
0x4615   :  { %v6147_v19 = vpop.xlane.xlu0 %6146  ;;  %v6197_v8 = vsel %vm3358_vm9, %v6181_v12, %v6196_v36 }
0x4616   :  { %v6185_v17 = vrot.slane %v6147_v19, %v8922_v6 }
0x4618   :  { %v6198_v30 = vsel %vm3360_vm10, %v6185_v17, %v6197_v8 }
0x4619   :  { %v6153_v33 = vpop.xlane.xlu0 %6152  ;;  %v6199_v34 = vsel %vm3362_vm11, %v6189_v29, %v6198_v30 }
0x461a   :  { %v6193_v38 = vrot.slane %v6153_v33, %v8922_v6 }
0x461c   :  { %v6200_v35 = vsel %vm3364_vm12, %v6193_v38, %v6199_v34 }
0x461d   :  { %v6202_v21 = vsel %vm3309_vm13, %v6200_v35, -1e+10  ;;  %v8084_v35 = vld [vmem:[#allocation2 + $0x18] sm:$0xf] }
0x461e   :  { %v6203_v44 = vsel %vm9843_vm6, %v6202_v21, -inf }
0x461f   :  { %v6204_v7 = vrot.slane %v6203_v44, 4 }
0x4621   :  { %v6205_v9 = vmax.f32 %v6203_v44, %v6204_v7  ;;  %v8085_v44 = vld [vmem:[#allocation2 + $0x14] sm:$0xf] }
0x4623   :  { %v6206_v56 = vrot.slane %v6205_v9, 2 }
0x4625   :  { %v6207_v48 = vmax.f32 %v6205_v9, %v6206_v56 }
0x4627   :  { %v6208_v60 = vrot.slane %v6207_v48, 1 }
0x4629   :  { %v6209_v16 = vmax.f32 %v6207_v48, %v6208_v60 }
0x462b   :  { %v6210_v25 = vsub.f32 %v6202_v21, %v6209_v16 }
0x462d   :  { %v6211_v10 = vmul.f32 1.442695, %v6210_v25  ;;  %v8086_v25 = vld [vmem:[#allocation2 + $0x1c] sm:$0xf] }
0x462f   :  { %8059 = vpow2.f32 %v6211_v10 }
0x4639   :  { %v8060_v42 = vpop.eup %8059 }
0x463a   :  { %v6213_v6 = vsel %vm9844_vm7, %v8060_v42, 0.0 }
0x463b   :  { %v6214_v14 = vrot.slane %v6213_v6, 4 }
0x463d   :  { %v6215_v18 = vadd.f32 %v6214_v14, %v6213_v6 }
0x463f   :  { %v6216_v59 = vrot.slane %v6215_v18, 2 }
0x4641   :  { %v6217_v15 = vadd.f32 %v6216_v59, %v6215_v18 }
0x4643   :  { %v6218_v49 = vrot.slane %v6217_v15, 1 }
0x4645   :  { %v6219_v52 = vadd.f32 %v6218_v49, %v6217_v15 }
0x4647   :  { %8061 = vrcp.f32 %v6219_v52 }
0x4651   :  { %v8062_v4 = vpop.eup %8061 }
0x4652   :  { %v6221_v54 = vmul.f32 %v8062_v4, %v8060_v42 }
0x4654   :  { %v6232_v46 = vrot.slane %v6221_v54, %v8973_v26  ;;  %v6225_v43 = vrot.slane %v6221_v54, %v8976_v62  ;;  %v6253_v1 = vrot.slane %v6221_v54, %v9008_v0  ;;  %v6239_v28 = vrot.slane %v6221_v54, %v8988_v51 }
0x4655   :  { %v6267_v50 = vrot.slane %v6221_v54, %v9029_v55  ;;  %v6246_v23 = vrot.slane %v6221_v54, %v8991_v53  ;;  %v6260_v41 = vrot.slane %v6221_v54, %v9011_v31  ;;  %v6274_v26 = vrot.slane %v6221_v54, %v9032_v27  ;;  %v8082_v27 = vld [vmem:[#allocation2 + $0x10] sm:$0xf] }
0x4656   :  { %6234 = vbcast.lane.b32.xlu0 %v6232_v46, 256  ;;  %6227 = vbcast.lane.b32.xlu1 %v6225_v43, 256 }
0x465a   :  { %6255 = vbcast.lane.b32.xlu0 %v6253_v1, 256  ;;  %6241 = vbcast.lane.b32.xlu1 %v6239_v28, 256 }
0x465e   :  { %6269 = vbcast.lane.b32.xlu0 %v6267_v50, 256  ;;  %6248 = vbcast.lane.b32.xlu1 %v6246_v23, 256 }
0x4662   :  { %6262 = vbcast.lane.b32.xlu1 %v6260_v41, 256 }
0x4666   :  { %6276 = vbcast.lane.b32.xlu1 %v6274_v26, 256 }
0x46c8   :  { %v6235_v62 = vpop.permute.xlu0 %6234  ;;  %v6228_v45 = vpop.permute.xlu1 %6227 }
0x46c9   :  { %v6279_v0 = vmul.f32 %v8079_v3, %v6235_v62  ;;  %v6278_v51 = vmul.f32 %v8080_v22, %v6228_v45 }
0x46cb   :  { %v6287_v55 = vsel %vm3284_vm5, %v6279_v0, 0.0  ;;  %v6286_v53 = vsel %vm3284_vm5, %v6278_v51, 0.0 }
0x46cc   :  { %v6256_v2 = vpop.permute.xlu0 %6255  ;;  %v6242_v47 = vpop.permute.xlu1 %6241  ;;  %v6288_v36 = vadd.f32 %v6287_v55, %v6286_v53 }
0x46cd   :  { %v6280_v37 = vmul.f32 %v8081_v58, %v6242_v47  ;;  %v6282_v19 = vmul.f32 %v8082_v27, %v6256_v2 }
0x46cf   :  { %v6289_v31 = vsel %vm3284_vm5, %v6280_v37, 0.0  ;;  %v6293_v34 = vsel %vm3284_vm5, %v6282_v19, 0.0 }
0x46d0   :  { %v6249_v12 = vpop.permute.xlu1 %6248  ;;  %v6290_v8 = vadd.f32 %v6289_v31, %v6288_v36  ;;  %v6270_v30 = vpop.permute.xlu0 %6269 }
0x46d1   :  { %v6281_v17 = vmul.f32 %v8083_v5, %v6249_v12  ;;  %v6284_v21 = vmul.f32 %v8084_v35, %v6270_v30 }
0x46d3   :  { %v6291_v29 = vsel %vm3284_vm5, %v6281_v17, 0.0  ;;  %v6297_v16 = vsel %vm3284_vm5, %v6284_v21, 0.0 }
0x46d4   :  { %v6292_v33 = vadd.f32 %v6291_v29, %v6290_v8  ;;  %v6263_v38 = vpop.permute.xlu1 %6262 }
0x46d5   :  { %v6283_v7 = vmul.f32 %v8085_v44, %v6263_v38 }
0x46d6   :  { %v6294_v9 = vadd.f32 %v6293_v34, %v6292_v33 }
0x46d7   :  { %v6295_v56 = vsel %vm3284_vm5, %v6283_v7, 0.0 }
0x46d8   :  { %v6296_v48 = vadd.f32 %v6295_v56, %v6294_v9  ;;  %v6277_v60 = vpop.permute.xlu1 %6276 }
0x46d9   :  { %v6285_v10 = vmul.f32 %v8086_v25, %v6277_v60 }
0x46da   :  { %v6298_v42 = vadd.f32 %v6297_v16, %v6296_v48 }
0x46db   :  { %v6299_v6 = vsel %vm3284_vm5, %v6285_v10, 0.0 }
0x46dc   :  { %v6300_v14 = vadd.f32 %v6299_v6, %v6298_v42 }
0x46de   :  { %7488 = vmatmul.mubr.msk.f32.vlgmr.msra.gmra.mrb[60].mxu1 %vm2700_vm4, %v6300_v14 }
0x46df   :  { %7761 = vmatpush3.bf16.msra.mxu1 %v9421_v20  ;;  %7509 = vmatprep.mubr.msk.f32.mxu1 %vm8112_vm1, %v8113_v11 }
0x46e0   :  { %7762 = vmatprep.subr.bf16.mxu1 %v9842_v39 }
0x46e3   :  { %7764 = vmatpush3.bf16.msra.mxu1 %v9443_v63 }
0x46e6   :  { %7510 = vmatmul.mubr.msk.f32.vlgmr.msra.gmra.mrb[62].mxu1 %vm2700_vm4, %v6300_v14 }
0x47b1   :  { %v6374_v18 = vpop.f32.mrb[60].mxu1 }
0x47b2   :  { %v6378_v59 = vadd.f32 %v6374_v18, %v9086_v32  ;;  %v7489_v15 = vpop.f32.mrb[61].mxu1 }
0x47b4   :  { %v6453_v49 = vadd.f32 %v9684_v13, %v6378_v59 }
0x47b6   :  { %v6461_v52 = vadd.f32 %v9489_v61, %v6453_v49 }
0x47b8   :  { %8063 = vtanh.f32 %v6461_v52  ;;  %v6783_v11 = vmul.f32 -1.442695, %v6461_v52 }
0x47b9   :  { %v6560_v4 = vpop.f32.mrb[62].mxu1 }
0x47ba   :  { %v7511_v20 = vpop.f32.mrb[63].mxu1  ;;  %8065 = vpow2.f32 %v6783_v11 }
0x47c2   :  { %v8064_v54 = vpop.eup %8063 }
0x47c3   :  { %6471 = vrot.lane.b32.xlu0 %v8064_v54, %s8120_s28 }
0x47c4   :  { %v8066_v39 = vpop.eup %8065 }
0x47c5   :  { %v6465_v63 = vadd.f32 1.0, %v8066_v39 }
0x47c7   :  { %8067 = vrcp.f32 %v6465_v63 }
0x47d1   :  { %v8068_v46 = vpop.eup %8067 }
0x47d2   :  { %v6469_v32 = vmul.f32 %v8068_v46, %v9639_v40 }
0x4835   :  { %v6472_v43 = vpop.permute.xlu0 %6471 }
0x4836   :  { %v6474_v1 = vmul.f32 %v8068_v46, %v6472_v43 }
0x4838   :  { %6476 = vrot.lane.b32.xlu1 %v6474_v1, %s8117_s11 }
0x48aa   :  { %v6477_v13 = vpop.permute.xlu1 %6476 }
0x48ab   :  { %v6479_v61 = vadd.f32 %v6477_v13, %v6469_v32 }
0x48ad   :  { %8069 = vtanh.f32 %v6479_v61 }
0x48b7   :  { %v8070_v28 = vpop.eup %8069 }
0x48b8   :  { %6482 = vrot.lane.b32.xlu0 %v8070_v28, %s8120_s28 }
0x492a   :  { %v6483_v50 = vpop.permute.xlu0 %6482 }
0x492b   :  { %v6485_v23 = vmul.f32 %v8068_v46, %v6483_v50 }
0x492d   :  { %6565 = vrot.lane.b32.xlu1 %v6485_v23, %s8117_s11 }
0x499f   :  { %v6566_v41 = vpop.permute.xlu1 %6565 }
0x49a0   :  { %7521 = vmatmul.mubr.msk.f32.vlgmr.msra.gmra.mrb[56].mxu0 %vm2700_vm4, %v6566_v41 }
0x4a73   :  { %v6635_v26 = vpop.f32.mrb[56].mxu0 }
0x4a74   :  { %v6636_v62 = vadd.f32 %v6635_v26, %v6560_v4  ;;  %v7522_v45 = vpop.f32.mrb[57].mxu0 }
0x4a76   :  { %v6639_v40 = vadd.f32 %v6636_v62, %v8855_v24 }
0x4a78   :  { %v6647_v3 = vadd.f32 %v9547_v57, %v6639_v40 }
0x4a7a   :  { %6649 = vst.msk [vmem:[#allocation3 + $0x14] sm:$0xf] %vm349_vm2, %v6647_v3 }
0x4a7b   :  { %8098 = shalt.err (!%p8095_p4)
}
0x4a7c   :  { %s8099_s14 = scalar_lea.hbm %s9799_s27, 384 }
0x4a7d   :  { %p8100_p5 = scmp.ne.s32.totalorder %s9799_s27, %s8099_s14  ;;  %p8103_p6 = scmp.lt.u32.totalorder %s8099_s14, %s9799_s27 }
0x4a7f   :  { %p8105_p7 = pnand %p8103_p6, %p8100_p5 }
0x4a81   :  { %8108 = shalt.err (!%p8105_p7)
}
0x4a82   :  { %s8123_s24 = smov 4  }
0x4a83   :  { %6661 = dma.vmem_to_hbm [thread:$0]  %s6656_s4, 384, %s9799_s27, [#allocation4], %s8120_s28, %s8120_s28, %s8123_s24  }
0x4a84   :  { %8109 = dma.done.wait [#allocation4], 384  }
0x4a85   :  { %8110 = vsyncadd [#allocation4], 4294966912 }
0x4a86   :  { %6665 = vsyncpa [#allocation4], 1 }

</bundles_post_ra>
